<compile_context>
chip_gen: v7x
topology: tpu7x:2x2x1
jax: 0.10.0
libtpu: 0.0.40
codegen_flags: <defaults>
</compile_context>

<pallas_src>
import jax
import jax.numpy as jnp
from jax.experimental import pallas as pl
from jax.experimental.pallas import tpu as pltpu

INPUT_SIZE = 1500   # fixed by the module's assert (500 * 3)
HID = 350
LATENT = 200


def _round_up(n, m):
    return ((n + m - 1) // m) * m


# Only the internal hidden dim is padded (it never touches HBM-visible
# activations); input/latent feature dims stay unpadded so the kernel can
# read x and write enc/rec with no wrapper pad/slice HLOs.
HID_P = _round_up(HID, 128)         # 384

# Max batch tile: double-buffered x(f32)/rec(bf16)/enc(bf16) tiles plus the
# resident bf16 weights stay well under v7x's 64 MiB VMEM.
MAX_TB = 512


def _autoencoder_kernel(x_ref,
                        w1_ref, b1_ref,
                        w2_ref, b2_ref,
                        w3_ref, b3_ref,
                        w4_ref, b4_ref,
                        enc_ref, rec_ref):
    """One batch tile: enc = fc2(relu(fc1(x))); rec = tanh(fc4(relu(fc3(enc))))."""
    bf16 = jnp.bfloat16

    # x arrives f32; cast to bf16 in-kernel (cheap VPU work hidden under MXU).
    x = x_ref[...].astype(bf16)                                  # (TB, 1500)

    # encoder --- matmul operands bf16, accumulate f32, epilogue f32
    h1 = jnp.dot(x, w1_ref[...], preferred_element_type=jnp.float32) + b1_ref[...]
    h1 = jnp.maximum(h1, 0.0)                                    # (TB, 384)

    enc = jnp.dot(h1.astype(bf16), w2_ref[...],
                  preferred_element_type=jnp.float32) + b2_ref[...]   # (TB, 200)

    # decoder
    h3 = jnp.dot(enc.astype(bf16), w3_ref[...],
                 preferred_element_type=jnp.float32) + b3_ref[...]    # (TB, 384)
    h3 = jnp.maximum(h3, 0.0)

    rec = jnp.tanh(
        jnp.dot(h3.astype(bf16), w4_ref[...],
                preferred_element_type=jnp.float32) + b4_ref[...])    # (TB, 1500)

    # bf16 outputs: halves the dominant HBM write stream (rec).
    enc_ref[...] = enc.astype(enc_ref.dtype)
    rec_ref[...] = rec.astype(rec_ref.dtype)


def prepare_params(params):
    """Pad parameters to MXU-friendly shapes and cast weights to bf16.

    Call ONCE at parameter-load time; pass the result to autoencoder_forward.
    Weights stored (in_features, out_features).  Only the hidden dim is padded
    (350 -> 384); input (1500) and latent (200) dims stay unpadded so the dots
    produce the exact output widths.  Biases stored (1, out_features) in f32."""
    w1, b1, w2, b2, w3, b3, w4, b4 = params

    def padw(w, rows, cols):
        return jnp.pad(w, ((0, rows - w.shape[0]),
                           (0, cols - w.shape[1]))).astype(jnp.bfloat16)

    def padb(b, cols):
        return jnp.pad(b, (0, cols - b.shape[0]))[None, :].astype(jnp.float32)

    return (padw(w1, INPUT_SIZE, HID_P), padb(b1, HID_P),       # (1500, 384)
            padw(w2, HID_P, LATENT),     padb(b2, LATENT),      # (384, 200)
            padw(w3, LATENT, HID_P),     padb(b3, HID_P),       # (200, 384)
            padw(w4, HID_P, INPUT_SIZE), padb(b4, INPUT_SIZE))  # (384, 1500)


@jax.jit
def autoencoder_forward(x, padded_params):
    """x: (B, 1500) float32.  padded_params: output of prepare_params().

    Returns (enc (B, 200) bf16, rec (B, 1500) bf16)."""
    B = x.shape[0]
    assert x.shape[1] == INPUT_SIZE
    w1, b1, w2, b2, w3, b3, w4, b4 = padded_params

    # --- batch tiling: balance TB against B (no full padded tiles), and for
    # B > ~256 force an even number of grid steps so both v7x TensorCores work.
    nb = pl.cdiv(B, MAX_TB)
    if B > 256:
        nb = max(nb, 2)
        nb += nb % 2                      # even tile count for the 2 TCs
    TB = _round_up(pl.cdiv(B, nb), 8)
    if TB >= B:
        TB, nb = B, 1                     # single tile == full batch dim (legal)
    else:
        nb = pl.cdiv(B, TB)               # OOB rows of last tile are discarded

    # Weights/biases use a constant index_map -> fetched once, VMEM-resident.
    const = lambda shape: pl.BlockSpec(shape, lambda i: (0, 0))

    enc, rec = pl.pallas_call(
        _autoencoder_kernel,
        out_shape=(
            jax.ShapeDtypeStruct((B, LATENT), jnp.bfloat16),
            jax.ShapeDtypeStruct((B, INPUT_SIZE), jnp.bfloat16),
        ),
        grid_spec=pltpu.PrefetchScalarGridSpec(
            num_scalar_prefetch=0,
            grid=(nb,),
            in_specs=[
                pl.BlockSpec((TB, INPUT_SIZE), lambda i: (i, 0)),   # x tile (f32)
                const((INPUT_SIZE, HID_P)), const((1, HID_P)),      # fc1
                const((HID_P, LATENT)),     const((1, LATENT)),     # fc2
                const((LATENT, HID_P)),     const((1, HID_P)),      # fc3
                const((HID_P, INPUT_SIZE)), const((1, INPUT_SIZE)), # fc4
            ],
            out_specs=[
                pl.BlockSpec((TB, LATENT), lambda i: (i, 0)),       # enc tile
                pl.BlockSpec((TB, INPUT_SIZE), lambda i: (i, 0)),   # rec tile
            ],
        ),
        compiler_params=pltpu.CompilerParams(
            dimension_semantics=("parallel",),
            vmem_limit_bytes=48 * 1024 * 1024,   # fits v7x's 64 MiB VMEM
        ),
    )(x, w1, b1, w2, b2, w3, b3, w4, b4)

    return enc, rec


def init_params(key):
    """Deterministic init mimicking nn.Linear defaults (U(-1/sqrt(fan_in), ...)).

    Weights are stored as (in_features, out_features)."""
    def linear(key, fan_in, fan_out):
        kw, kb = jax.random.split(key)
        bound = 1.0 / jnp.sqrt(float(fan_in))
        w = jax.random.uniform(kw, (fan_in, fan_out), jnp.float32, -bound, bound)
        b = jax.random.uniform(kb, (fan_out,), jnp.float32, -bound, bound)
        return w, b

    k1, k2, k3, k4 = jax.random.split(key, 4)
    w1, b1 = linear(k1, INPUT_SIZE, HID)
    w2, b2 = linear(k2, HID, LATENT)
    w3, b3 = linear(k3, LATENT, HID)
    w4, b4 = linear(k4, HID, INPUT_SIZE)
    return (w1, b1, w2, b2, w3, b3, w4, b4)


def _reference_forward(x, params):
    """Pure-JAX reference with the same bf16-operand / f32-accumulate matmuls."""
    w1, b1, w2, b2, w3, b3, w4, b4 = params
    bf16 = jnp.bfloat16

    def mm(a, w):
        return jnp.dot(a.astype(bf16), w.astype(bf16),
                       preferred_element_type=jnp.float32)

    h1 = jnp.maximum(mm(x, w1) + b1, 0.0)
    enc = mm(h1, w2) + b2
    h3 = jnp.maximum(mm(enc, w3) + b3, 0.0)
    rec = jnp.tanh(mm(h3, w4) + b4)
    return enc, rec


if __name__ == "__main__":
    key = jax.random.PRNGKey(0)
    kx, kp = jax.random.split(key)

    params = init_params(kp)
    padded_params = prepare_params(params)   # pad + bf16-cast ONCE

    # small batch (single full-batch tile, exercises TB == B < 8 path)
    B = 6
    x = jax.random.normal(kx, (B, INPUT_SIZE), jnp.float32)
    enc, rec = autoencoder_forward(x, padded_params)
    jax.block_until_ready((enc, rec))
    enc_ref, rec_ref = _reference_forward(x, params)
    assert enc.shape == (B, LATENT) and rec.shape == (B, INPUT_SIZE)
    assert enc.dtype == jnp.bfloat16 and rec.dtype == jnp.bfloat16
    assert jnp.allclose(enc.astype(jnp.float32), enc_ref, atol=2e-2, rtol=2e-2)
    assert jnp.allclose(rec.astype(jnp.float32), rec_ref, atol=2e-2, rtol=2e-2)

    # larger batch (balanced two-tile grid, partial last tile, both v7x cores)
    B2 = 600
    x2 = jax.random.normal(kx, (B2, INPUT_SIZE), jnp.float32)
    enc2, rec2 = autoencoder_forward(x2, padded_params)
    jax.block_until_ready((enc2, rec2))
    enc2_ref, rec2_ref = _reference_forward(x2, params)
    assert enc2.shape == (B2, LATENT) and rec2.shape == (B2, INPUT_SIZE)
    assert jnp.allclose(enc2.astype(jnp.float32), enc2_ref, atol=2e-2, rtol=2e-2)
    assert jnp.allclose(rec2.astype(jnp.float32), rec2_ref, atol=2e-2, rtol=2e-2)

    print("KERNEL_OK")
</pallas_src>

<mosaic_0001>
module attributes {stable_mosaic.version = 11 : i64} {
  func.func @_autoencoder_kernel(%arg0: i32, %arg1: memref<6x1500xf32, #tpu.memory_space<vmem>>, %arg2: memref<1500x384xbf16, #tpu.memory_space<vmem>>, %arg3: memref<1x384xf32, #tpu.memory_space<vmem>>, %arg4: memref<384x200xbf16, #tpu.memory_space<vmem>>, %arg5: memref<1x200xf32, #tpu.memory_space<vmem>>, %arg6: memref<200x384xbf16, #tpu.memory_space<vmem>>, %arg7: memref<1x384xf32, #tpu.memory_space<vmem>>, %arg8: memref<384x1500xbf16, #tpu.memory_space<vmem>>, %arg9: memref<1x1500xf32, #tpu.memory_space<vmem>>, %arg10: memref<6x200xbf16, #tpu.memory_space<vmem>>, %arg11: memref<6x1500xbf16, #tpu.memory_space<vmem>>) attributes {dimension_semantics = [#tpu.dimension_semantics<parallel>], iteration_bounds = array<i64: 1>, scalar_prefetch = 0 : i64, scratch_operands = 0 : i64, tpu.core_type = #tpu.core_type<tc>, window_params = [{transform_indices = @transform_0, window_bounds = array<i64: 6, 1500>}, {pipeline_mode = #tpu.pipeline_mode<synchronous>, transform_indices = @transform_1, window_bounds = array<i64: 1500, 384>}, {pipeline_mode = #tpu.pipeline_mode<synchronous>, transform_indices = @transform_2, window_bounds = array<i64: 1, 384>}, {pipeline_mode = #tpu.pipeline_mode<synchronous>, transform_indices = @transform_3, window_bounds = array<i64: 384, 200>}, {pipeline_mode = #tpu.pipeline_mode<synchronous>, transform_indices = @transform_4, window_bounds = array<i64: 1, 200>}, {pipeline_mode = #tpu.pipeline_mode<synchronous>, transform_indices = @transform_5, window_bounds = array<i64: 200, 384>}, {pipeline_mode = #tpu.pipeline_mode<synchronous>, transform_indices = @transform_6, window_bounds = array<i64: 1, 384>}, {pipeline_mode = #tpu.pipeline_mode<synchronous>, transform_indices = @transform_7, window_bounds = array<i64: 384, 1500>}, {pipeline_mode = #tpu.pipeline_mode<synchronous>, transform_indices = @transform_8, window_bounds = array<i64: 1, 1500>}, {transform_indices = @transform_9, window_bounds = array<i64: 6, 200>}, {transform_indices = @transform_10, window_bounds = array<i64: 6, 1500>}]} {
    %c0 = arith.constant 0 : index
    %c0_0 = arith.constant 0 : index
    %0 = vector.load %arg1[%c0, %c0_0] : memref<6x1500xf32, #tpu.memory_space<vmem>>, vector<6x1500xf32>
    %1 = arith.truncf %0 : vector<6x1500xf32> to vector<6x1500xbf16>
    %c0_1 = arith.constant 0 : index
    %c0_2 = arith.constant 0 : index
    %2 = vector.load %arg2[%c0_1, %c0_2] : memref<1500x384xbf16, #tpu.memory_space<vmem>>, vector<1500x384xbf16>
    %cst = arith.constant dense<0.000000e+00> : vector<6x384xf32>
    %3 = tpu.matmul %1, %2, %cst {dimension_numbers = #tpu.dot_dimension_numbers<[1], [0], [0], [1], [0, 0, 1, 1], [], []>} : vector<6x1500xbf16>, vector<1500x384xbf16>, vector<6x384xf32> -> vector<6x384xf32>
    %c0_3 = arith.constant 0 : index
    %c0_4 = arith.constant 0 : index
    %4 = vector.load %arg3[%c0_3, %c0_4] : memref<1x384xf32, #tpu.memory_space<vmem>>, vector<1x384xf32>
    %5 = vector.broadcast %4 : vector<1x384xf32> to vector<6x384xf32>
    %6 = arith.addf %3, %5 : vector<6x384xf32>
    %cst_5 = arith.constant 0.000000e+00 : f32
    %7 = vector.broadcast %cst_5 : f32 to vector<6x384xf32>
    %8 = arith.maximumf %6, %7 : vector<6x384xf32>
    %9 = arith.truncf %8 : vector<6x384xf32> to vector<6x384xbf16>
    %c0_6 = arith.constant 0 : index
    %c0_7 = arith.constant 0 : index
    %10 = vector.load %arg4[%c0_6, %c0_7] : memref<384x200xbf16, #tpu.memory_space<vmem>>, vector<384x200xbf16>
    %cst_8 = arith.constant dense<0.000000e+00> : vector<6x200xf32>
    %11 = tpu.matmul %9, %10, %cst_8 {dimension_numbers = #tpu.dot_dimension_numbers<[1], [0], [0], [1], [0, 0, 1, 1], [], []>} : vector<6x384xbf16>, vector<384x200xbf16>, vector<6x200xf32> -> vector<6x200xf32>
    %c0_9 = arith.constant 0 : index
    %c0_10 = arith.constant 0 : index
    %12 = vector.load %arg5[%c0_9, %c0_10] : memref<1x200xf32, #tpu.memory_space<vmem>>, vector<1x200xf32>
    %13 = vector.broadcast %12 : vector<1x200xf32> to vector<6x200xf32>
    %14 = arith.addf %11, %13 : vector<6x200xf32>
    %15 = arith.truncf %14 : vector<6x200xf32> to vector<6x200xbf16>
    %c0_11 = arith.constant 0 : index
    %c0_12 = arith.constant 0 : index
    %16 = vector.load %arg6[%c0_11, %c0_12] : memref<200x384xbf16, #tpu.memory_space<vmem>>, vector<200x384xbf16>
    %cst_13 = arith.constant dense<0.000000e+00> : vector<6x384xf32>
    %17 = tpu.matmul %15, %16, %cst_13 {dimension_numbers = #tpu.dot_dimension_numbers<[1], [0], [0], [1], [0, 0, 1, 1], [], []>} : vector<6x200xbf16>, vector<200x384xbf16>, vector<6x384xf32> -> vector<6x384xf32>
    %c0_14 = arith.constant 0 : index
    %c0_15 = arith.constant 0 : index
    %18 = vector.load %arg7[%c0_14, %c0_15] : memref<1x384xf32, #tpu.memory_space<vmem>>, vector<1x384xf32>
    %19 = vector.broadcast %18 : vector<1x384xf32> to vector<6x384xf32>
    %20 = arith.addf %17, %19 : vector<6x384xf32>
    %cst_16 = arith.constant 0.000000e+00 : f32
    %21 = vector.broadcast %cst_16 : f32 to vector<6x384xf32>
    %22 = arith.maximumf %20, %21 : vector<6x384xf32>
    %23 = arith.truncf %22 : vector<6x384xf32> to vector<6x384xbf16>
    %c0_17 = arith.constant 0 : index
    %c0_18 = arith.constant 0 : index
    %24 = vector.load %arg8[%c0_17, %c0_18] : memref<384x1500xbf16, #tpu.memory_space<vmem>>, vector<384x1500xbf16>
    %cst_19 = arith.constant dense<0.000000e+00> : vector<6x1500xf32>
    %25 = tpu.matmul %23, %24, %cst_19 {dimension_numbers = #tpu.dot_dimension_numbers<[1], [0], [0], [1], [0, 0, 1, 1], [], []>} : vector<6x384xbf16>, vector<384x1500xbf16>, vector<6x1500xf32> -> vector<6x1500xf32>
    %c0_20 = arith.constant 0 : index
    %c0_21 = arith.constant 0 : index
    %26 = vector.load %arg9[%c0_20, %c0_21] : memref<1x1500xf32, #tpu.memory_space<vmem>>, vector<1x1500xf32>
    %27 = vector.broadcast %26 : vector<1x1500xf32> to vector<6x1500xf32>
    %28 = arith.addf %25, %27 : vector<6x1500xf32>
    %29 = math.tanh %28 : vector<6x1500xf32>
    %30 = arith.truncf %14 : vector<6x200xf32> to vector<6x200xbf16>
    %c0_22 = arith.constant 0 : index
    %c0_23 = arith.constant 0 : index
    %31 = vector.load %arg10[%c0_22, %c0_23] : memref<6x200xbf16, #tpu.memory_space<vmem>>, vector<6x200xbf16>
    tpu.vector_store %arg10[%c0_22, %c0_23], %30 {strides = array<i32>} : memref<6x200xbf16, #tpu.memory_space<vmem>>, vector<6x200xbf16>,
    %32 = arith.truncf %29 : vector<6x1500xf32> to vector<6x1500xbf16>
    %c0_24 = arith.constant 0 : index
    %c0_25 = arith.constant 0 : index
    %33 = vector.load %arg11[%c0_24, %c0_25] : memref<6x1500xbf16, #tpu.memory_space<vmem>>, vector<6x1500xbf16>
    tpu.vector_store %arg11[%c0_24, %c0_25], %32 {strides = array<i32>} : memref<6x1500xbf16, #tpu.memory_space<vmem>>, vector<6x1500xbf16>,
    return
  }
  func.func @transform_0(%arg0: i32) -> (i32, i32) {
    %c0_i32 = arith.constant 0 : i32
    %c0_i32_0 = arith.constant 0 : i32
    return %arg0, %c0_i32 : i32, i32
  }
  func.func @transform_1(%arg0: i32) -> (i32, i32) {
    %c0_i32 = arith.constant 0 : i32
    %c0_i32_0 = arith.constant 0 : i32
    %c0_i32_1 = arith.constant 0 : i32
    return %c0_i32, %c0_i32_0 : i32, i32
  }
  func.func @transform_2(%arg0: i32) -> (i32, i32) {
    %c0_i32 = arith.constant 0 : i32
    %c0_i32_0 = arith.constant 0 : i32
    %c0_i32_1 = arith.constant 0 : i32
    return %c0_i32, %c0_i32_0 : i32, i32
  }
  func.func @transform_3(%arg0: i32) -> (i32, i32) {
    %c0_i32 = arith.constant 0 : i32
    %c0_i32_0 = arith.constant 0 : i32
    %c0_i32_1 = arith.constant 0 : i32
    return %c0_i32, %c0_i32_0 : i32, i32
  }
  func.func @transform_4(%arg0: i32) -> (i32, i32) {
    %c0_i32 = arith.constant 0 : i32
    %c0_i32_0 = arith.constant 0 : i32
    %c0_i32_1 = arith.constant 0 : i32
    return %c0_i32, %c0_i32_0 : i32, i32
  }
  func.func @transform_5(%arg0: i32) -> (i32, i32) {
    %c0_i32 = arith.constant 0 : i32
    %c0_i32_0 = arith.constant 0 : i32
    %c0_i32_1 = arith.constant 0 : i32
    return %c0_i32, %c0_i32_0 : i32, i32
  }
  func.func @transform_6(%arg0: i32) -> (i32, i32) {
    %c0_i32 = arith.constant 0 : i32
    %c0_i32_0 = arith.constant 0 : i32
    %c0_i32_1 = arith.constant 0 : i32
    return %c0_i32, %c0_i32_0 : i32, i32
  }
  func.func @transform_7(%arg0: i32) -> (i32, i32) {
    %c0_i32 = arith.constant 0 : i32
    %c0_i32_0 = arith.constant 0 : i32
    %c0_i32_1 = arith.constant 0 : i32
    return %c0_i32, %c0_i32_0 : i32, i32
  }
  func.func @transform_8(%arg0: i32) -> (i32, i32) {
    %c0_i32 = arith.constant 0 : i32
    %c0_i32_0 = arith.constant 0 : i32
    %c0_i32_1 = arith.constant 0 : i32
    return %c0_i32, %c0_i32_0 : i32, i32
  }
  func.func @transform_9(%arg0: i32) -> (i32, i32) {
    %c0_i32 = arith.constant 0 : i32
    %c0_i32_0 = arith.constant 0 : i32
    return %arg0, %c0_i32 : i32, i32
  }
  func.func @transform_10(%arg0: i32) -> (i32, i32) {
    %c0_i32 = arith.constant 0 : i32
    %c0_i32_0 = arith.constant 0 : i32
    return %arg0, %c0_i32 : i32, i32
  }
}

</mosaic_0001>

<bundles_post_ra>
// kernel: autoencoder_forward.1
= control target key start
LH: loop header
LB: loop body
LE: loop exit
PB: predicated region body
PF: predicated region fallthrough
CT: control target
= control target key end

     0   :  { %16 = vsyncpa [#allocation3], 0  ;;  %vm1955_vm0 = vcmask 752640   ;;  %vm1959_vm1 = vcmask 1045504   ;;  %s9711_s0 = inlined_call_operand.vmem [shape: f32[6,1500], index: 0, kind: input, shape index: {}]   ;;  %s9712_s1 = inlined_call_operand.vmem [shape: bf16[1500,384], index: 1, kind: input, shape index: {}]   ;;  %s9713_s2 = inlined_call_operand.vmem [shape: f32[1,384], index: 2, kind: input, shape index: {}]   ;;  %s9714_s3 = inlined_call_operand.vmem [shape: bf16[384,200], index: 3, kind: input, shape index: {}]   ;;  %s9715_s4 = inlined_call_operand.vmem [shape: f32[1,200], index: 4, kind: input, shape index: {}]   ;;  %s9716_s5 = inlined_call_operand.vmem [shape: bf16[200,384], index: 5, kind: input, shape index: {}]   ;;  %s9717_s6 = inlined_call_operand.vmem [shape: f32[1,384], index: 6, kind: input, shape index: {}]   ;;  %s9718_s7 = inlined_call_operand.vmem [shape: bf16[384,1500], index: 7, kind: input, shape index: {}]   ;;  %s9719_s8 = inlined_call_operand.vmem [shape: f32[1,1500], index: 8, kind: input, shape index: {}]   ;;  %s9720_s9 = inlined_call_operand.hbm [shape: bf16[6,200], index: 9, kind: output, shape index: {0}]   ;;  %s9721_s10 = inlined_call_operand.hbm [shape: bf16[6,1500], index: 10, kind: output, shape index: {1}]  }
   0x1   :  { %v6457_v0 = vld [vmem:[%s9712_s1 + $0x4] ss:$12 sps:$4 sm:$0xff]   ;;  %v6459_v1 = vld [vmem:[%s9712_s1] ss:$12 sps:$4 sm:$0xff]   ;;  %v6460_v2 = vld [vmem:[%s9712_s1 + $0x1c] ss:$12 sps:$4 sm:$0xff]  }
   0x2   :  { %1969 = vmatprep.subr.bf16.mxu0 %v6457_v0  ;;  %v6462_v3 = vld [vmem:[%s9712_s1 + $0x18] ss:$12 sps:$4 sm:$0xff]   ;;  %v6463_v4 = vld [vmem:[%s9712_s1 + $0x34] ss:$12 sps:$4 sm:$0xff]   ;;  %v6465_v5 = vld [vmem:[%s9712_s1 + $0x30] ss:$12 sps:$4 sm:$0xff]  }
   0x3   :  { %1970 = vmatpush1.bf16.msra.mxu0 %v6459_v1  ;;  %v6466_v6 = vld [vmem:[%s9712_s1 + $0x4c] ss:$12 sps:$4 sm:$0xff]   ;;  %v6468_v7 = vld [vmem:[%s9712_s1 + $0x48] ss:$12 sps:$4 sm:$0xff]   ;;  %v6469_v8 = vld [vmem:[%s9712_s1 + $0x64] ss:$12 sps:$4 sm:$0xff]  }
   0x4   :  { %1971 = vmatprep.subr.bf16.mxu0 %v6460_v2  ;;  %v6471_v9 = vld [vmem:[%s9712_s1 + $0x60] ss:$12 sps:$4 sm:$0xff]   ;;  %v6472_v10 = vld [vmem:[%s9712_s1 + $0x7c] ss:$12 sps:$4 sm:$0xff]   ;;  %v6474_v11 = vld [vmem:[%s9712_s1 + $0x78] ss:$12 sps:$4 sm:$0xff]  }
   0x5   :  { %v6475_v12 = vld [vmem:[%s9712_s1 + $0x94] ss:$12 sps:$4 sm:$0xff]   ;;  %v38_v13 = vld [vmem:[%s9711_s0 + $0x8] sm:$0x3f]  ;;  %v6477_v15 = vld [vmem:[%s9712_s1 + $0x90] ss:$12 sps:$4 sm:$0xff]  }
   0x6   :  { %v7560_v14 = vpack.c.bf16 %v38_v13, %v38_v13  ;;  %v6478_v16 = vld [vmem:[%s9712_s1 + $0xac] ss:$12 sps:$4 sm:$0xff]   ;;  %v6480_v17 = vld [vmem:[%s9712_s1 + $0xa8] ss:$12 sps:$4 sm:$0xff]   ;;  %v6481_v18 = vld [vmem:[%s9712_s1 + $0xc4] ss:$12 sps:$4 sm:$0xff]  }
   0x7   :  { %1972 = vmatpush1.bf16.msra.mxu0 %v6462_v3  ;;  %v6483_v19 = vld [vmem:[%s9712_s1 + $0xc0] ss:$12 sps:$4 sm:$0xff]   ;;  %v6484_v20 = vld [vmem:[%s9712_s1 + $0xdc] ss:$12 sps:$4 sm:$0xff]   ;;  %v6486_v21 = vld [vmem:[%s9712_s1 + $0xd8] ss:$12 sps:$4 sm:$0xff]  }
   0x8   :  { %1973 = vmatprep.subr.bf16.mxu0 %v6463_v4  ;;  %2001 = vmatprep.mubr.bf16.mxu0 %v7560_v14  ;;  %v6487_v22 = vld [vmem:[%s9712_s1 + $0xf4] ss:$12 sps:$4 sm:$0xff]   ;;  %v6489_v23 = vld [vmem:[%s9712_s1 + $0xf0] ss:$12 sps:$4 sm:$0xff]   ;;  %v6490_v24 = vld [vmem:[%s9712_s1 + $0x10c] ss:$12 sps:$4 sm:$0xff]  }
   0x9   :  { %v6492_v25 = vld [vmem:[%s9712_s1 + $0x108] ss:$12 sps:$4 sm:$0xff]   ;;  %v40_v26 = vld [vmem:[%s9711_s0 + $0x18] sm:$0x3f]  ;;  %v6493_v27 = vld [vmem:[%s9712_s1 + $0x124] ss:$12 sps:$4 sm:$0xff]  }
   0xa   :  { %v52_v28 = vpack.c.bf16 %v40_v26, %v40_v26  ;;  %v6495_v29 = vld [vmem:[%s9712_s1 + $0x120] ss:$12 sps:$4 sm:$0xff]   ;;  %v6496_v30 = vld [vmem:[%s9712_s1 + $0x13c] ss:$12 sps:$4 sm:$0xff]   ;;  %v6498_v31 = vld [vmem:[%s9712_s1 + $0x138] ss:$12 sps:$4 sm:$0xff]  }
   0xb   :  { %1974 = vmatpush1.bf16.msra.mxu0 %v6465_v5  ;;  %v6499_v32 = vld [vmem:[%s9712_s1 + $0x154] ss:$12 sps:$4 sm:$0xff]   ;;  %v6501_v33 = vld [vmem:[%s9712_s1 + $0x150] ss:$12 sps:$4 sm:$0xff]   ;;  %v6502_v34 = vld [vmem:[%s9712_s1 + $0x16c] ss:$12 sps:$4 sm:$0xff]  }
   0xc   :  { %1975 = vmatprep.subr.bf16.mxu0 %v6466_v6  ;;  %2287 = vmatprep.mubr.bf16.mxu1 %v52_v28  ;;  %v6504_v35 = vld [vmem:[%s9712_s1 + $0x168] ss:$12 sps:$4 sm:$0xff]   ;;  %v37_v36 = vld [vmem:[%s9711_s0] sm:$0x3f]  ;;  %v6511_v43 = vld [vmem:[%s9712_s1 + $0x1b0] ss:$12 sps:$4 sm:$0xff]  }
   0xd   :  { %v6507_v37 = vld [vmem:[%s9712_s1 + $0x184] ss:$12 sps:$4 sm:$0xff]   ;;  %v7629_v38 = vpack.c.bf16 %v37_v36, %v37_v36  ;;  %v6505_v39 = vld [vmem:[%s9712_s1 + $0x180] ss:$12 sps:$4 sm:$0xff]   ;;  %v6510_v40 = vld [vmem:[%s9712_s1 + $0x19c] ss:$12 sps:$4 sm:$0xff]  }
   0xe   :  { %v6508_v41 = vld [vmem:[%s9712_s1 + $0x198] ss:$12 sps:$4 sm:$0xff]   ;;  %v6513_v42 = vld [vmem:[%s9712_s1 + $0x1b4] ss:$12 sps:$4 sm:$0xff]   ;;  %v6522_v48 = vld [vmem:[%s9712_s1 + $0x1fc] ss:$12 sps:$4 sm:$0xff]  }
   0xf   :  { %1976 = vmatpush1.bf16.msra.mxu0 %v6468_v7  ;;  %v6516_v44 = vld [vmem:[%s9712_s1 + $0x1cc] ss:$12 sps:$4 sm:$0xff]   ;;  %v6514_v45 = vld [vmem:[%s9712_s1 + $0x1c8] ss:$12 sps:$4 sm:$0xff]   ;;  %v6519_v46 = vld [vmem:[%s9712_s1 + $0x1e4] ss:$12 sps:$4 sm:$0xff]  }
  0x10   :  { %1977 = vmatprep.subr.bf16.mxu0 %v6469_v8  ;;  %v6517_v47 = vld [vmem:[%s9712_s1 + $0x1e0] ss:$12 sps:$4 sm:$0xff]   ;;  %v6520_v49 = vld [vmem:[%s9712_s1 + $0x1f8] ss:$12 sps:$4 sm:$0xff]   ;;  %v6523_v51 = vld [vmem:[%s9712_s1 + $0x210] ss:$12 sps:$4 sm:$0xff]  }
  0x11   :  { %v6525_v50 = vld [vmem:[%s9712_s1 + $0x214] ss:$12 sps:$4 sm:$0xff]   ;;  %v6528_v52 = vld [vmem:[%s9712_s1 + $0x22c] ss:$12 sps:$4 sm:$0xff]   ;;  %v6531_v54 = vld [vmem:[%s9712_s1 + $0x244] ss:$12 sps:$4 sm:$0xff]  }
  0x12   :  { %v6526_v53 = vld [vmem:[%s9712_s1 + $0x228] ss:$12 sps:$4 sm:$0xff]   ;;  %v6529_v55 = vld [vmem:[%s9712_s1 + $0x240] ss:$12 sps:$4 sm:$0xff]   ;;  %v6532_v57 = vld [vmem:[%s9712_s1 + $0x258] ss:$12 sps:$4 sm:$0xff]  }
  0x13   :  { %1978 = vmatpush1.bf16.msra.mxu0 %v6471_v9  ;;  %v6534_v56 = vld [vmem:[%s9712_s1 + $0x25c] ss:$12 sps:$4 sm:$0xff]   ;;  %v6537_v58 = vld [vmem:[%s9712_s1 + $0x274] ss:$12 sps:$4 sm:$0xff]   ;;  %v6540_v60 = vld [vmem:[%s9712_s1 + $0x28c] ss:$12 sps:$4 sm:$0xff]  }
  0x14   :  { %1979 = vmatprep.subr.bf16.mxu0 %v6472_v10  ;;  %v6535_v59 = vld [vmem:[%s9712_s1 + $0x270] ss:$12 sps:$4 sm:$0xff]   ;;  %v6634_v61 = vld [vmem:[%s9712_s1 + $0x248] ss:$12 sps:$4 sm:$0xff]   ;;  %v6639_v1 = vld [vmem:[%s9712_s1 + $0x260] ss:$12 sps:$4 sm:$0xff]  }
  0x15   :  { %v6538_v62 = vld [vmem:[%s9712_s1 + $0x288] ss:$12 sps:$4 sm:$0xff]   ;;  %v6543_v63 = vld [vmem:[%s9712_s1 + $0x2a4] ss:$12 sps:$4 sm:$0xff]   ;;  %6302 = vmatprep.subr.bf16.mxu1 %v6634_v61  ;;  %v6541_v2 = vld [vmem:[%s9712_s1 + $0x2a0] ss:$12 sps:$4 sm:$0xff]  }
  0x16   :  { %v6635_v0 = vld [vmem:[%s9712_s1 + $0x188] ss:$12 sps:$4 sm:$0xff]   ;;  %v6640_v4 = vld [vmem:[%s9712_s1 + $0x1a0] ss:$12 sps:$4 sm:$0xff]   ;;  %v6644_v5 = vld [vmem:[%s9712_s1 + $0x278] ss:$12 sps:$4 sm:$0xff]  }
  0x17   :  { %1980 = vmatpush1.bf16.msra.mxu0 %v6474_v11  ;;  %6303 = vmatpush3.bf16.msra.mxu1 %v6635_v0  ;;  %v6546_v3 = vld [vmem:[%s9712_s1 + $0x2bc] ss:$12 sps:$4 sm:$0xff]   ;;  %v6544_v6 = vld [vmem:[%s9712_s1 + $0x2b8] ss:$12 sps:$4 sm:$0xff]   ;;  %v6549_v7 = vld [vmem:[%s9712_s1 + $0x2d4] ss:$12 sps:$4 sm:$0xff]  }
  0x18   :  { %1981 = vmatprep.subr.bf16.mxu0 %v6475_v12  ;;  %6304 = vmatprep.subr.bf16.mxu1 %v6639_v1  ;;  %v6645_v8 = vld [vmem:[%s9712_s1 + $0x1b8] ss:$12 sps:$4 sm:$0xff]   ;;  %v6649_v9 = vld [vmem:[%s9712_s1 + $0x290] ss:$12 sps:$4 sm:$0xff]   ;;  %v6550_v13 = vld [vmem:[%s9712_s1 + $0x2e8] ss:$12 sps:$4 sm:$0xff]  }
  0x19   :  { %v6547_v10 = vld [vmem:[%s9712_s1 + $0x2d0] ss:$12 sps:$4 sm:$0xff]   ;;  %v6552_v11 = vld [vmem:[%s9712_s1 + $0x2ec] ss:$12 sps:$4 sm:$0xff]   ;;  %v6585_v61 = vld [vmem:[%s9712_s1 + $0x3f4] ss:$12 sps:$4 sm:$0xff]  }
  0x1a   :  { %v6650_v12 = vld [vmem:[%s9712_s1 + $0x1d0] ss:$12 sps:$4 sm:$0xff]   ;;  %v6664_v26 = vld [vmem:[%s9712_s1 + $0x2d8] ss:$12 sps:$4 sm:$0xff]  }
  0x1b   :  { %1982 = vmatpush1.bf16.msra.mxu0 %v6477_v15  ;;  %6305 = vmatpush3.bf16.msra.mxu1 %v6640_v4  ;;  %v6555_v15 = vld [vmem:[%s9712_s1 + $0x304] ss:$12 sps:$4 sm:$0xff]   ;;  %v6588_v0 = vld [vmem:[%s9712_s1 + $0x40c] ss:$12 sps:$4 sm:$0xff]  }
  0x1c   :  { %1983 = vmatprep.subr.bf16.mxu0 %v6478_v16  ;;  %6306 = vmatprep.subr.bf16.mxu1 %v6644_v5  ;;  %v6654_v16 = vld [vmem:[%s9712_s1 + $0x2a8] ss:$12 sps:$4 sm:$0xff]   ;;  %v6567_v36 = vld [vmem:[%s9712_s1 + $0x364] ss:$12 sps:$4 sm:$0xff]  }
  0x1d   :  { %v6709_v1 = vld [vmem:[%s9712_s1 + $0x470] ss:$12 sps:$4 sm:$0xff]   ;;  %v6714_v5 = vld [vmem:[%s9712_s1 + $0x548] ss:$12 sps:$4 sm:$0xff]  }
  0x1e   :  { %v6710_v4 = vld [vmem:[%s9712_s1 + $0x3b0] ss:$12 sps:$4 sm:$0xff]  }
  0x1f   :  { %1984 = vmatpush1.bf16.msra.mxu0 %v6480_v17  ;;  %6307 = vmatpush3.bf16.msra.mxu1 %v6645_v8  ;;  %v39_v17 = vld [vmem:[%s9711_s0 + $0x10] sm:$0x3f] }
  0x20   :  { %1985 = vmatprep.subr.bf16.mxu0 %v6481_v18  ;;  %6308 = vmatprep.subr.bf16.mxu1 %v6649_v9  ;;  %v42_v18 = vld [vmem:[%s9711_s0 + $0x28] sm:$0x3f] }
  0x21   :  { %v6715_v9 = vld [vmem:[%s9712_s1 + $0x488] ss:$12 sps:$4 sm:$0xff]  }
  0x23   :  { %1986 = vmatpush1.bf16.msra.mxu0 %v6483_v19  ;;  %6309 = vmatpush3.bf16.msra.mxu1 %v6650_v12  ;;  %v6655_v19 = vld [vmem:[%s9712_s1 + $0x1e8] ss:$12 sps:$4 sm:$0xff]   ;;  %v6589_v12 = vld [vmem:[%s9712_s1 + $0x420] ss:$12 sps:$4 sm:$0xff]  }
  0x24   :  { %1987 = vmatprep.subr.bf16.mxu0 %v6484_v20  ;;  %6310 = vmatprep.subr.bf16.mxu1 %v6654_v16  ;;  %v51_v20 = vpack.c.bf16 %v39_v17, %v39_v17  ;;  %v6724_v16 = vld [vmem:[%s9712_s1 + $0x578] ss:$12 sps:$4 sm:$0xff]  }
  0x25   :  { %v6592_v17 = vld [vmem:[%s9712_s1 + $0x438] ss:$12 sps:$4 sm:$0xff]  }
  0x27   :  { %1988 = vmatpush1.bf16.msra.mxu0 %v6486_v21  ;;  %6311 = vmatpush3.bf16.msra.mxu1 %v6655_v19  ;;  %v6659_v21 = vld [vmem:[%s9712_s1 + $0x2c0] ss:$12 sps:$4 sm:$0xff]   ;;  %v6725_v19 = vld [vmem:[%s9712_s1 + $0x4b8] ss:$12 sps:$4 sm:$0xff]  }
  0x28   :  { %1989 = vmatprep.subr.bf16.mxu0 %v6487_v22  ;;  %v6553_v22 = vld [vmem:[%s9712_s1 + $0x300] ss:$12 sps:$4 sm:$0xff]   ;;  %6312 = vmatprep.subr.bf16.mxu1 %v6659_v21  ;;  %v6595_v21 = vld [vmem:[%s9712_s1 + $0x450] ss:$12 sps:$4 sm:$0xff]  }
  0x2b   :  { %1990 = vmatpush1.bf16.msra.mxu0 %v6489_v23  ;;  %v54_v23 = vpack.c.bf16 %v42_v18, %v42_v18  ;;  %v6597_v18 = vld [vmem:[%s9712_s1 + $0x454] ss:$12 sps:$4 sm:$0xff]  }
  0x2c   :  { %1991 = vmatprep.subr.bf16.mxu0 %v6490_v24  ;;  %v6660_v24 = vld [vmem:[%s9712_s1 + $0x200] ss:$12 sps:$4 sm:$0xff]  }
  0x2d   :  { %6313 = vmatpush3.bf16.msra.mxu1 %v6660_v24  ;;  %v6734_v24 = vld [vmem:[%s9712_s1 + $0x5a8] ss:$12 sps:$4 sm:$0xff]  }
  0x2e   :  { %6314 = vmatprep.subr.bf16.mxu1 %v6664_v26  ;;  %v6603_v26 = vld [vmem:[%s9712_s1 + $0x484] ss:$12 sps:$4 sm:$0xff]  }
  0x2f   :  { %1992 = vmatpush1.bf16.msra.mxu0 %v6492_v25  ;;  %v6558_v25 = vld [vmem:[%s9712_s1 + $0x31c] ss:$12 sps:$4 sm:$0xff]  }
  0x30   :  { %1993 = vmatprep.subr.bf16.mxu0 %v6493_v27  ;;  %v6556_v27 = vld [vmem:[%s9712_s1 + $0x318] ss:$12 sps:$4 sm:$0xff]  }
  0x33   :  { %1994 = vmatpush1.bf16.msra.mxu0 %v6495_v29  ;;  %v6665_v29 = vld [vmem:[%s9712_s1 + $0x218] ss:$12 sps:$4 sm:$0xff]  }
  0x34   :  { %1995 = vmatprep.subr.bf16.mxu0 %v6496_v30  ;;  %6315 = vmatpush3.bf16.msra.mxu1 %v6665_v29  ;;  %v6669_v30 = vld [vmem:[%s9712_s1 + $0x2f0] ss:$12 sps:$4 sm:$0xff]   ;;  %v6601_v29 = vld [vmem:[%s9712_s1 + $0x480] ss:$12 sps:$4 sm:$0xff]  }
  0x35   :  { %6316 = vmatprep.subr.bf16.mxu1 %v6669_v30  ;;  %v6740_v30 = vld [vmem:[%s9712_s1 + $0x500] ss:$12 sps:$4 sm:$0xff]  }
  0x37   :  { %1996 = vmatpush1.bf16.msra.mxu0 %v6498_v31  ;;  %v6559_v31 = vld [vmem:[%s9712_s1 + $0x330] ss:$12 sps:$4 sm:$0xff]  }
  0x38   :  { %1997 = vmatprep.subr.bf16.mxu0 %v6499_v32  ;;  %v6564_v32 = vld [vmem:[%s9712_s1 + $0x34c] ss:$12 sps:$4 sm:$0xff]  }
  0x3b   :  { %1998 = vmatpush1.bf16.msra.mxu0 %v6501_v33  ;;  %v6670_v33 = vld [vmem:[%s9712_s1 + $0x230] ss:$12 sps:$4 sm:$0xff]  }
  0x3c   :  { %1999 = vmatprep.subr.bf16.mxu0 %v6502_v34  ;;  %6317 = vmatpush3.bf16.msra.mxu1 %v6670_v33  ;;  %v6674_v34 = vld [vmem:[%s9712_s1 + $0x3c8] ss:$12 sps:$4 sm:$0xff]   ;;  %v6604_v33 = vld [vmem:[%s9712_s1 + $0x498] ss:$12 sps:$4 sm:$0xff]  }
  0x3d   :  { %6324 = vmatprep.subr.bf16.mxu1 %v6674_v34  ;;  %v6609_v34 = vld [vmem:[%s9712_s1 + $0x4b4] ss:$12 sps:$4 sm:$0xff]  }
  0x3f   :  { %2000 = vmatpush1.bf16.msra.mxu0 %v6504_v35  ;;  %v6562_v35 = vld [vmem:[%s9712_s1 + $0x348] ss:$12 sps:$4 sm:$0xff]   ;;  %2288 = vmatmul.mubr.bf16.vlgmr.msra.gmra.mrb[0].mxu1 %v51_v20 }
  0x40   :  { %2010 = vmatprep.subr.bf16.mxu0 %v6507_v37  ;;  %v6675_v37 = vld [vmem:[%s9712_s1 + $0x308] ss:$12 sps:$4 sm:$0xff]   ;;  %2327 = vmatprep.mubr.bf16.mxu1 %v54_v23 }
  0x41   :  { %6325 = vmatpush3.bf16.msra.mxu1 %v6675_v37  ;;  %v6612_v37 = vld [vmem:[%s9712_s1 + $0x4cc] ss:$12 sps:$4 sm:$0xff]  }
  0x42   :  { %2002 = vmatmul.mubr.bf16.vlgmr.msra.gmra.mrb[0].mxu0 %v7629_v38 }
  0x43   :  { %2011 = vmatpush1.bf16.msra.mxu0 %v6505_v39  ;;  %2042 = vmatprep.mubr.bf16.mxu0 %v52_v28  ;;  %v6561_v28 = vld [vmem:[%s9712_s1 + $0x334] ss:$12 sps:$4 sm:$0xff]  }
  0x44   :  { %2012 = vmatprep.subr.bf16.mxu0 %v6510_v40  ;;  %v6679_v39 = vld [vmem:[%s9712_s1 + $0x3e0] ss:$12 sps:$4 sm:$0xff]  }
  0x45   :  { %v6565_v40 = vld [vmem:[%s9712_s1 + $0x360] ss:$12 sps:$4 sm:$0xff]   ;;  %6326 = vmatprep.subr.bf16.mxu1 %v6679_v39  ;;  %v6749_v39 = vld [vmem:[%s9712_s1 + $0x5f0] ss:$12 sps:$4 sm:$0xff]  }
  0x47   :  { %2013 = vmatpush1.bf16.msra.mxu0 %v6508_v41  ;;  %v6570_v41 = vld [vmem:[%s9712_s1 + $0x37c] ss:$12 sps:$4 sm:$0xff]  }
  0x48   :  { %2014 = vmatprep.subr.bf16.mxu0 %v6513_v42  ;;  %v6680_v42 = vld [vmem:[%s9712_s1 + $0x320] ss:$12 sps:$4 sm:$0xff]  }
  0x49   :  { %6327 = vmatpush3.bf16.msra.mxu1 %v6680_v42  ;;  %v6750_v42 = vld [vmem:[%s9712_s1 + $0x530] ss:$12 sps:$4 sm:$0xff]  }
  0x4b   :  { %2015 = vmatpush1.bf16.msra.mxu0 %v6511_v43  ;;  %v6684_v43 = vld [vmem:[%s9712_s1 + $0x3f8] ss:$12 sps:$4 sm:$0xff]  }
  0x4c   :  { %2016 = vmatprep.subr.bf16.mxu0 %v6516_v44  ;;  %v6568_v44 = vld [vmem:[%s9712_s1 + $0x378] ss:$12 sps:$4 sm:$0xff]   ;;  %6328 = vmatprep.subr.bf16.mxu1 %v6684_v43  ;;  %v6754_v43 = vld [vmem:[%s9712_s1 + $0x6c8] ss:$12 sps:$4 sm:$0xff]  }
  0x4f   :  { %2017 = vmatpush1.bf16.msra.mxu0 %v6514_v45  ;;  %v6573_v45 = vld [vmem:[%s9712_s1 + $0x394] ss:$12 sps:$4 sm:$0xff]  }
  0x50   :  { %2018 = vmatprep.subr.bf16.mxu0 %v6519_v46  ;;  %v6685_v46 = vld [vmem:[%s9712_s1 + $0x338] ss:$12 sps:$4 sm:$0xff]  }
  0x51   :  { %6329 = vmatpush3.bf16.msra.mxu1 %v6685_v46 }
  0x53   :  { %2019 = vmatpush1.bf16.msra.mxu0 %v6517_v47  ;;  %v6689_v47 = vld [vmem:[%s9712_s1 + $0x410] ss:$12 sps:$4 sm:$0xff]  }
  0x54   :  { %2020 = vmatprep.subr.bf16.mxu0 %v6522_v48  ;;  %v6571_v48 = vld [vmem:[%s9712_s1 + $0x390] ss:$12 sps:$4 sm:$0xff]   ;;  %6330 = vmatprep.subr.bf16.mxu1 %v6689_v47  ;;  %v6755_v47 = vld [vmem:[%s9712_s1 + $0x608] ss:$12 sps:$4 sm:$0xff]  }
  0x57   :  { %2021 = vmatpush1.bf16.msra.mxu0 %v6520_v49  ;;  %v6576_v49 = vld [vmem:[%s9712_s1 + $0x3ac] ss:$12 sps:$4 sm:$0xff]  }
  0x58   :  { %2022 = vmatprep.subr.bf16.mxu0 %v6525_v50  ;;  %v6690_v50 = vld [vmem:[%s9712_s1 + $0x350] ss:$12 sps:$4 sm:$0xff]  }
  0x59   :  { %6331 = vmatpush3.bf16.msra.mxu1 %v6690_v50  ;;  %v6613_v50 = vld [vmem:[%s9712_s1 + $0x4e0] ss:$12 sps:$4 sm:$0xff]  }
  0x5b   :  { %2023 = vmatpush1.bf16.msra.mxu0 %v6523_v51  ;;  %v6694_v51 = vld [vmem:[%s9712_s1 + $0x428] ss:$12 sps:$4 sm:$0xff]  }
  0x5c   :  { %2024 = vmatprep.subr.bf16.mxu0 %v6528_v52  ;;  %v6574_v52 = vld [vmem:[%s9712_s1 + $0x3a8] ss:$12 sps:$4 sm:$0xff]   ;;  %6332 = vmatprep.subr.bf16.mxu1 %v6694_v51 }
  0x5d   :  { %v6618_v51 = vld [vmem:[%s9712_s1 + $0x4fc] ss:$12 sps:$4 sm:$0xff]  }
  0x5f   :  { %2025 = vmatpush1.bf16.msra.mxu0 %v6526_v53  ;;  %v6579_v53 = vld [vmem:[%s9712_s1 + $0x3c4] ss:$12 sps:$4 sm:$0xff]  }
  0x60   :  { %2026 = vmatprep.subr.bf16.mxu0 %v6531_v54  ;;  %v6695_v54 = vld [vmem:[%s9712_s1 + $0x368] ss:$12 sps:$4 sm:$0xff]  }
  0x61   :  { %6333 = vmatpush3.bf16.msra.mxu1 %v6695_v54  ;;  %v6616_v54 = vld [vmem:[%s9712_s1 + $0x4f8] ss:$12 sps:$4 sm:$0xff]  }
  0x63   :  { %2027 = vmatpush1.bf16.msra.mxu0 %v6529_v55  ;;  %v6699_v55 = vld [vmem:[%s9712_s1 + $0x440] ss:$12 sps:$4 sm:$0xff]  }
  0x64   :  { %2028 = vmatprep.subr.bf16.mxu0 %v6534_v56  ;;  %v6577_v56 = vld [vmem:[%s9712_s1 + $0x3c0] ss:$12 sps:$4 sm:$0xff]   ;;  %6334 = vmatprep.subr.bf16.mxu1 %v6699_v55 }
  0x65   :  { %v6621_v55 = vld [vmem:[%s9712_s1 + $0x514] ss:$12 sps:$4 sm:$0xff]  }
  0x67   :  { %2029 = vmatpush1.bf16.msra.mxu0 %v6532_v57  ;;  %v6582_v57 = vld [vmem:[%s9712_s1 + $0x3dc] ss:$12 sps:$4 sm:$0xff]  }
  0x68   :  { %2030 = vmatprep.subr.bf16.mxu0 %v6537_v58  ;;  %v6700_v58 = vld [vmem:[%s9712_s1 + $0x380] ss:$12 sps:$4 sm:$0xff]  }
  0x69   :  { %6335 = vmatpush3.bf16.msra.mxu1 %v6700_v58  ;;  %v6619_v58 = vld [vmem:[%s9712_s1 + $0x510] ss:$12 sps:$4 sm:$0xff]  }
  0x6b   :  { %2031 = vmatpush1.bf16.msra.mxu0 %v6535_v59  ;;  %v6704_v59 = vld [vmem:[%s9712_s1 + $0x458] ss:$12 sps:$4 sm:$0xff]  }
  0x6c   :  { %2032 = vmatprep.subr.bf16.mxu0 %v6540_v60  ;;  %v6580_v60 = vld [vmem:[%s9712_s1 + $0x3d8] ss:$12 sps:$4 sm:$0xff]   ;;  %6336 = vmatprep.subr.bf16.mxu1 %v6704_v59 }
  0x6d   :  { %v6624_v59 = vld [vmem:[%s9712_s1 + $0x52c] ss:$12 sps:$4 sm:$0xff]  }
  0x6f   :  { %2033 = vmatpush1.bf16.msra.mxu0 %v6538_v62  ;;  %v6705_v62 = vld [vmem:[%s9712_s1 + $0x398] ss:$12 sps:$4 sm:$0xff]  }
  0x70   :  { %2034 = vmatprep.subr.bf16.mxu0 %v6543_v63  ;;  %v6583_v63 = vld [vmem:[%s9712_s1 + $0x3f0] ss:$12 sps:$4 sm:$0xff]   ;;  %6337 = vmatpush3.bf16.msra.mxu1 %v6705_v62  ;;  %v6622_v62 = vld [vmem:[%s9712_s1 + $0x528] ss:$12 sps:$4 sm:$0xff]  }
  0x71   :  { %6338 = vmatprep.subr.bf16.mxu1 %v6709_v1  ;;  %v6779_v1 = vld [vmem:[%s9712_s1 + $0x740] ss:$12 sps:$4 sm:$0xff]  }
  0x73   :  { %2035 = vmatpush1.bf16.msra.mxu0 %v6541_v2  ;;  %v41_v2 = vld [vmem:[%s9711_s0 + $0x20] sm:$0x3f] }
  0x74   :  { %2036 = vmatprep.subr.bf16.mxu0 %v6546_v3  ;;  %v44_v3 = vld [vmem:[%s9711_s0 + $0x38] sm:$0x3f]  ;;  %6339 = vmatpush3.bf16.msra.mxu1 %v6710_v4  ;;  %v53_v8 = vpack.c.bf16 %v41_v2, %v41_v2  ;;  %v6625_v2 = vld [vmem:[%s9712_s1 + $0x540] ss:$12 sps:$4 sm:$0xff]  }
  0x75   :  { %6346 = vmatprep.subr.bf16.mxu1 %v6714_v5  ;;  %v6780_v4 = vld [vmem:[%s9712_s1 + $0x680] ss:$12 sps:$4 sm:$0xff]   ;;  %v6784_v5 = vld [vmem:[%s9712_s1 + $0x758] ss:$12 sps:$4 sm:$0xff]  }
  0x77   :  { %2037 = vmatpush1.bf16.msra.mxu0 %v6544_v6  ;;  %v6586_v6 = vld [vmem:[%s9712_s1 + $0x408] ss:$12 sps:$4 sm:$0xff]   ;;  %2328 = vmatmul.mubr.bf16.vlgmr.msra.gmra.mrb[4].mxu1 %v53_v8 }
  0x78   :  { %2038 = vmatprep.subr.bf16.mxu0 %v6549_v7  ;;  %v6591_v7 = vld [vmem:[%s9712_s1 + $0x424] ss:$12 sps:$4 sm:$0xff]   ;;  %6347 = vmatpush3.bf16.msra.mxu1 %v6715_v9 }
  0x79   :  { %v6631_v9 = vld [vmem:[%s9712_s1 + $0x570] ss:$12 sps:$4 sm:$0xff]  }
  0x7b   :  { %2039 = vmatpush1.bf16.msra.mxu0 %v6547_v10  ;;  %v56_v10 = vpack.c.bf16 %v44_v3, %v44_v3  ;;  %v6630_v3 = vld [vmem:[%s9712_s1 + $0x55c] ss:$12 sps:$4 sm:$0xff]  }
  0x7c   :  { %2040 = vmatprep.subr.bf16.mxu0 %v6552_v11  ;;  %v6719_v11 = vld [vmem:[%s9712_s1 + $0x560] ss:$12 sps:$4 sm:$0xff]  }
  0x7d   :  { %2367 = vmatprep.mubr.bf16.mxu1 %v56_v10  ;;  %6348 = vmatprep.subr.bf16.mxu1 %v6719_v11  ;;  %v6638_v11 = vld [vmem:[%s9712_s1 + $0x58c] ss:$12 sps:$4 sm:$0xff]  }
  0x7f   :  { %2041 = vmatpush1.bf16.msra.mxu0 %v6550_v13  ;;  %v6594_v13 = vld [vmem:[%s9712_s1 + $0x43c] ss:$12 sps:$4 sm:$0xff]  }
  0x80   :  { %2051 = vmatprep.subr.bf16.mxu0 %v6555_v15  ;;  %v6720_v15 = vld [vmem:[%s9712_s1 + $0x4a0] ss:$12 sps:$4 sm:$0xff]  }
  0x81   :  { %6349 = vmatpush3.bf16.msra.mxu1 %v6720_v15  ;;  %v6636_v15 = vld [vmem:[%s9712_s1 + $0x588] ss:$12 sps:$4 sm:$0xff]  }
  0x82   :  { %2043 = vmatmul.mubr.bf16.vlgmr.msra.gmra.mrb[0].mxu0 %v51_v20  ;;  %6350 = vmatprep.subr.bf16.mxu1 %v6724_v16  ;;  %v6729_v20 = vld [vmem:[%s9712_s1 + $0x590] ss:$12 sps:$4 sm:$0xff]  }
  0x83   :  { %2052 = vmatpush1.bf16.msra.mxu0 %v6553_v22  ;;  %2083 = vmatprep.mubr.bf16.mxu0 %v54_v23  ;;  %v6600_v22 = vld [vmem:[%s9712_s1 + $0x46c] ss:$12 sps:$4 sm:$0xff]   ;;  %v6730_v23 = vld [vmem:[%s9712_s1 + $0x4d0] ss:$12 sps:$4 sm:$0xff]  }
  0x84   :  { %2053 = vmatprep.subr.bf16.mxu0 %v6558_v25  ;;  %v6598_v25 = vld [vmem:[%s9712_s1 + $0x468] ss:$12 sps:$4 sm:$0xff]  }
  0x85   :  { %6351 = vmatpush3.bf16.msra.mxu1 %v6725_v19  ;;  %v7460_v19 = vmov 0  }
  0x86   :  { %6352 = vmatprep.subr.bf16.mxu1 %v6729_v20  ;;  %v6641_v20 = vld [vmem:[%s9712_s1 + $0x5a0] ss:$12 sps:$4 sm:$0xff]  }
  0x87   :  { %2054 = vmatpush1.bf16.msra.mxu0 %v6556_v27  ;;  %v6735_v27 = vld [vmem:[%s9712_s1 + $0x4e8] ss:$12 sps:$4 sm:$0xff]  }
  0x88   :  { %2055 = vmatprep.subr.bf16.mxu0 %v6561_v28  ;;  %v6739_v28 = vld [vmem:[%s9712_s1 + $0x5c0] ss:$12 sps:$4 sm:$0xff]  }
  0x89   :  { %6353 = vmatpush3.bf16.msra.mxu1 %v6730_v23  ;;  %v6646_v23 = vld [vmem:[%s9712_s1 + $0x5b8] ss:$12 sps:$4 sm:$0xff]  }
  0x8a   :  { %6354 = vmatprep.subr.bf16.mxu1 %v6734_v24  ;;  %v6802_v24 = vld [vmem:[%s9712_s1 + $0x7b8] ss:$12 sps:$4 sm:$0xff]  }
  0x8b   :  { %2056 = vmatpush1.bf16.msra.mxu0 %v6559_v31  ;;  %v6606_v31 = vld [vmem:[%s9712_s1 + $0x49c] ss:$12 sps:$4 sm:$0xff]  }
  0x8c   :  { %2057 = vmatprep.subr.bf16.mxu0 %v6564_v32  ;;  %v6744_v32 = vld [vmem:[%s9712_s1 + $0x5d8] ss:$12 sps:$4 sm:$0xff]  }
  0x8d   :  { %6355 = vmatpush3.bf16.msra.mxu1 %v6735_v27  ;;  %v48_v27 = vld [vmem:[%s9711_s0 + $0x58] sm:$0x3f] }
  0x8e   :  { %6356 = vmatprep.subr.bf16.mxu1 %v6739_v28  ;;  %v6658_v28 = vld [vmem:[%s9712_s1 + $0x5ec] ss:$12 sps:$4 sm:$0xff]  }
  0x8f   :  { %2058 = vmatpush1.bf16.msra.mxu0 %v6562_v35  ;;  %v6745_v35 = vld [vmem:[%s9712_s1 + $0x518] ss:$12 sps:$4 sm:$0xff]  }
  0x90   :  { %2059 = vmatprep.subr.bf16.mxu0 %v6567_v36  ;;  %v6607_v36 = vld [vmem:[%s9712_s1 + $0x4b0] ss:$12 sps:$4 sm:$0xff]  }
  0x91   :  { %6357 = vmatpush3.bf16.msra.mxu1 %v6740_v30  ;;  %v6806_v30 = vld [vmem:[%s9712_s1 + $0x7d0] ss:$12 sps:$4 sm:$0xff]  }
  0x92   :  { %6358 = vmatprep.subr.bf16.mxu1 %v6744_v32  ;;  %v6809_v32 = vld [vmem:[%s9712_s1 + $0x7e8] ss:$12 sps:$4 sm:$0xff]  }
  0x93   :  { %2060 = vmatpush1.bf16.msra.mxu0 %v6565_v40  ;;  %v43_v40 = vld [vmem:[%s9711_s0 + $0x30] sm:$0x3f] }
  0x94   :  { %2061 = vmatprep.subr.bf16.mxu0 %v6570_v41  ;;  %v46_v41 = vld [vmem:[%s9711_s0 + $0x48] sm:$0x3f]  ;;  %v8013_v46 = vpack.c.bf16 %v43_v40, %v43_v40  ;;  %v6673_v40 = vld [vmem:[%s9712_s1 + $0x634] ss:$12 sps:$4 sm:$0xff]  }
  0x95   :  { %6359 = vmatpush3.bf16.msra.mxu1 %v6745_v35  ;;  %v6812_v35 = vld [vmem:[%s9712_s1 + $0x800] ss:$12 sps:$4 sm:$0xff]  }
  0x96   :  { %6360 = vmatprep.subr.bf16.mxu1 %v6749_v39  ;;  %v6815_v39 = vld [vmem:[%s9712_s1 + $0x818] ss:$12 sps:$4 sm:$0xff]  }
  0x97   :  { %2062 = vmatpush1.bf16.msra.mxu0 %v6568_v44  ;;  %v6610_v44 = vld [vmem:[%s9712_s1 + $0x4c8] ss:$12 sps:$4 sm:$0xff]  }
  0x98   :  { %2063 = vmatprep.subr.bf16.mxu0 %v6573_v45  ;;  %v6615_v45 = vld [vmem:[%s9712_s1 + $0x4e4] ss:$12 sps:$4 sm:$0xff]  }
  0x99   :  { %6361 = vmatpush3.bf16.msra.mxu1 %v6750_v42  ;;  %v6818_v42 = vld [vmem:[%s9712_s1 + $0x830] ss:$12 sps:$4 sm:$0xff]  }
  0x9a   :  { %6368 = vmatprep.subr.bf16.mxu1 %v6754_v43  ;;  %v6678_v43 = vld [vmem:[%s9712_s1 + $0x64c] ss:$12 sps:$4 sm:$0xff]  }
  0x9b   :  { %2064 = vmatpush1.bf16.msra.mxu0 %v6571_v48  ;;  %v8018_v48 = vpack.c.bf16 %v46_v41, %v46_v41  ;;  %v6671_v41 = vld [vmem:[%s9712_s1 + $0x630] ss:$12 sps:$4 sm:$0xff]  }
  0x9c   :  { %2065 = vmatprep.subr.bf16.mxu0 %v6576_v49  ;;  %2368 = vmatmul.mubr.bf16.vlgmr.msra.gmra.mrb[8].mxu1 %v8013_v46  ;;  %v6759_v49 = vld [vmem:[%s9712_s1 + $0x6e0] ss:$12 sps:$4 sm:$0xff]  }
  0x9d   :  { %6369 = vmatpush3.bf16.msra.mxu1 %v6755_v47  ;;  %2407 = vmatprep.mubr.bf16.mxu1 %v8018_v48  ;;  %v6681_v47 = vld [vmem:[%s9712_s1 + $0x660] ss:$12 sps:$4 sm:$0xff]  }
  0x9e   :  { %6370 = vmatprep.subr.bf16.mxu1 %v6759_v49  ;;  %v6688_v49 = vld [vmem:[%s9712_s1 + $0x67c] ss:$12 sps:$4 sm:$0xff]  }
  0x9f   :  { %2066 = vmatpush1.bf16.msra.mxu0 %v6574_v52  ;;  %v6760_v52 = vld [vmem:[%s9712_s1 + $0x620] ss:$12 sps:$4 sm:$0xff]  }
  0xa0   :  { %2067 = vmatprep.subr.bf16.mxu0 %v6579_v53  ;;  %v6764_v53 = vld [vmem:[%s9712_s1 + $0x6f8] ss:$12 sps:$4 sm:$0xff]  }
  0xa1   :  { %6371 = vmatpush3.bf16.msra.mxu1 %v6760_v52  ;;  %v6693_v52 = vld [vmem:[%s9712_s1 + $0x694] ss:$12 sps:$4 sm:$0xff]  }
  0xa2   :  { %6372 = vmatprep.subr.bf16.mxu1 %v6764_v53  ;;  %v6691_v53 = vld [vmem:[%s9712_s1 + $0x690] ss:$12 sps:$4 sm:$0xff]  }
  0xa3   :  { %2068 = vmatpush1.bf16.msra.mxu0 %v6577_v56  ;;  %v6765_v56 = vld [vmem:[%s9712_s1 + $0x638] ss:$12 sps:$4 sm:$0xff]  }
  0xa4   :  { %2069 = vmatprep.subr.bf16.mxu0 %v6582_v57  ;;  %v6769_v57 = vld [vmem:[%s9712_s1 + $0x710] ss:$12 sps:$4 sm:$0xff]  }
  0xa5   :  { %6373 = vmatpush3.bf16.msra.mxu1 %v6765_v56  ;;  %v6831_v56 = vld [vmem:[%s9712_s1 + $0x8a8] ss:$12 sps:$4 sm:$0xff]  }
  0xa6   :  { %6374 = vmatprep.subr.bf16.mxu1 %v6769_v57  ;;  %v6696_v57 = vld [vmem:[%s9712_s1 + $0x6a8] ss:$12 sps:$4 sm:$0xff]  }
  0xa7   :  { %2070 = vmatpush1.bf16.msra.mxu0 %v6580_v60  ;;  %v6770_v60 = vld [vmem:[%s9712_s1 + $0x650] ss:$12 sps:$4 sm:$0xff]  }
  0xa8   :  { %2071 = vmatprep.subr.bf16.mxu0 %v6585_v61  ;;  %v6774_v61 = vld [vmem:[%s9712_s1 + $0x728] ss:$12 sps:$4 sm:$0xff]  }
  0xa9   :  { %6375 = vmatpush3.bf16.msra.mxu1 %v6770_v60  ;;  %v6701_v60 = vld [vmem:[%s9712_s1 + $0x6c0] ss:$12 sps:$4 sm:$0xff]  }
  0xaa   :  { %6376 = vmatprep.subr.bf16.mxu1 %v6774_v61  ;;  %v6835_v61 = vld [vmem:[%s9714_s3 + $0x4] ss:$8 sps:$4 sm:$0xff]  }
  0xab   :  { %2072 = vmatpush1.bf16.msra.mxu0 %v6583_v63  ;;  %v6627_v63 = vld [vmem:[%s9712_s1 + $0x544] ss:$12 sps:$4 sm:$0xff]  }
  0xac   :  { %2073 = vmatprep.subr.bf16.mxu0 %v6588_v0  ;;  %v6775_v0 = vld [vmem:[%s9712_s1 + $0x668] ss:$12 sps:$4 sm:$0xff]  }
  0xad   :  { %6377 = vmatpush3.bf16.msra.mxu1 %v6775_v0 }
  0xae   :  { %6378 = vmatprep.subr.bf16.mxu1 %v6779_v1  ;;  %v6833_v1 = vld [vmem:[%s9714_s3] ss:$8 sps:$4 sm:$0xff]  }
  0xaf   :  { %2074 = vmatpush1.bf16.msra.mxu0 %v6586_v6  ;;  %v6628_v6 = vld [vmem:[%s9712_s1 + $0x558] ss:$12 sps:$4 sm:$0xff]  }
  0xb0   :  { %2075 = vmatprep.subr.bf16.mxu0 %v6591_v7  ;;  %v6633_v7 = vld [vmem:[%s9712_s1 + $0x574] ss:$12 sps:$4 sm:$0xff]  }
  0xb1   :  { %6379 = vmatpush3.bf16.msra.mxu1 %v6780_v4  ;;  %v6838_v4 = vld [vmem:[%s9714_s3 + $0x14] ss:$8 sps:$4 sm:$0xff]  }
  0xb2   :  { %6380 = vmatprep.subr.bf16.mxu1 %v6784_v5  ;;  %v6713_v5 = vld [vmem:[%s9712_s1 + $0x6f4] ss:$12 sps:$4 sm:$0xff]  }
  0xb3   :  { %2076 = vmatpush1.bf16.msra.mxu0 %v6589_v12  ;;  %v45_v12 = vld [vmem:[%s9711_s0 + $0x40] sm:$0x3f] }
  0xb4   :  { %2077 = vmatprep.subr.bf16.mxu0 %v6594_v13  ;;  %v6790_v13 = vld [vmem:[%s9712_s1 + $0x6b0] ss:$12 sps:$4 sm:$0xff]   ;;  %v8112_v16 = vpack.c.bf16 %v45_v12, %v45_v12 }
  0xb5   :  { %v6844_v12 = vld [vmem:[%s9714_s3 + $0x34] ss:$8 sps:$4 sm:$0xff]  }
  0xb7   :  { %2078 = vmatpush1.bf16.msra.mxu0 %v6592_v17  ;;  %v6794_v17 = vld [vmem:[%s9712_s1 + $0x788] ss:$12 sps:$4 sm:$0xff]  }
  0xb8   :  { %2079 = vmatprep.subr.bf16.mxu0 %v6597_v18  ;;  %v6643_v18 = vld [vmem:[%s9712_s1 + $0x5a4] ss:$12 sps:$4 sm:$0xff]  }
  0xbb   :  { %2080 = vmatpush1.bf16.msra.mxu0 %v6595_v21  ;;  %v6648_v21 = vld [vmem:[%s9712_s1 + $0x5bc] ss:$12 sps:$4 sm:$0xff]  }
  0xbc   :  { %2081 = vmatprep.subr.bf16.mxu0 %v6600_v22  ;;  %v6798_v22 = vld [vmem:[%s9712_s1 + $0x7a0] ss:$12 sps:$4 sm:$0xff]  }
  0xbf   :  { %2082 = vmatpush1.bf16.msra.mxu0 %v6598_v25  ;;  %v6653_v25 = vld [vmem:[%s9712_s1 + $0x5d4] ss:$12 sps:$4 sm:$0xff]  }
  0xc0   :  { %2092 = vmatprep.subr.bf16.mxu0 %v6603_v26  ;;  %v6651_v26 = vld [vmem:[%s9712_s1 + $0x5d0] ss:$12 sps:$4 sm:$0xff]  }
  0xc2   :  { %2084 = vmatmul.mubr.bf16.vlgmr.msra.gmra.mrb[0].mxu0 %v53_v8  ;;  %v6785_v8 = vld [vmem:[%s9712_s1 + $0x698] ss:$12 sps:$4 sm:$0xff]  }
  0xc3   :  { %2093 = vmatpush1.bf16.msra.mxu0 %v6601_v29  ;;  %2124 = vmatprep.mubr.bf16.mxu0 %v56_v10  ;;  %v6789_v10 = vld [vmem:[%s9712_s1 + $0x770] ss:$12 sps:$4 sm:$0xff]   ;;  %v8152_v29 = vpack.c.bf16 %v48_v27, %v48_v27  ;;  %v6853_v27 = vld [vmem:[%s9714_s3 + $0x64] ss:$8 sps:$4 sm:$0xff]  }
  0xc4   :  { %2094 = vmatprep.subr.bf16.mxu0 %v6606_v31  ;;  %6381 = vmatpush3.bf16.msra.mxu1 %v6785_v8  ;;  %v6656_v31 = vld [vmem:[%s9712_s1 + $0x5e8] ss:$12 sps:$4 sm:$0xff]   ;;  %v6718_v8 = vld [vmem:[%s9712_s1 + $0x70c] ss:$12 sps:$4 sm:$0xff]  }
  0xc5   :  { %6382 = vmatprep.subr.bf16.mxu1 %v6789_v10  ;;  %v6839_v10 = vld [vmem:[%s9714_s3 + $0x20] ss:$8 sps:$4 sm:$0xff]  }
  0xc7   :  { %2095 = vmatpush1.bf16.msra.mxu0 %v6604_v33  ;;  %v6663_v33 = vld [vmem:[%s9712_s1 + $0x604] ss:$12 sps:$4 sm:$0xff]  }
  0xc8   :  { %2096 = vmatprep.subr.bf16.mxu0 %v6609_v34  ;;  %6383 = vmatpush3.bf16.msra.mxu1 %v6790_v13  ;;  %v6661_v34 = vld [vmem:[%s9712_s1 + $0x600] ss:$12 sps:$4 sm:$0xff]   ;;  %v6723_v13 = vld [vmem:[%s9712_s1 + $0x724] ss:$12 sps:$4 sm:$0xff]  }
  0xc9   :  { %2415 = vmatprep.subr.bf16.mxu1 %v7460_v19 }
  0xcb   :  { %2097 = vmatpush1.bf16.msra.mxu0 %v6607_v36  ;;  %2408 = vmatmul.mubr.bf16.vlgmr.msra.gmra.mrb[12].mxu1 %v8112_v16  ;;  %v6668_v36 = vld [vmem:[%s9712_s1 + $0x61c] ss:$12 sps:$4 sm:$0xff]  }
  0xcc   :  { %2098 = vmatprep.subr.bf16.mxu0 %v6612_v37  ;;  %2416 = vmatpush1.bf16.msra.mxu1 %v6794_v17  ;;  %v6666_v37 = vld [vmem:[%s9712_s1 + $0x618] ss:$12 sps:$4 sm:$0xff]   ;;  %v6721_v17 = vld [vmem:[%s9712_s1 + $0x720] ss:$12 sps:$4 sm:$0xff]  }
  0xcd   :  { %2417 = vmatprep.subr.bf16.mxu1 %v7460_v19  ;;  %5887 = vmatprep.mubr.msk.bf16.mxu1 %vm1955_vm0, %v8152_v29 }
  0xcf   :  { %2099 = vmatpush1.bf16.msra.mxu0 %v6610_v44  ;;  %v6676_v44 = vld [vmem:[%s9712_s1 + $0x648] ss:$12 sps:$4 sm:$0xff]  }
  0xd0   :  { %2100 = vmatprep.subr.bf16.mxu0 %v6615_v45  ;;  %2418 = vmatpush1.bf16.msra.mxu1 %v6798_v22  ;;  %v6821_v45 = vld [vmem:[%s9712_s1 + $0x848] ss:$12 sps:$4 sm:$0xff]   ;;  %v6726_v22 = vld [vmem:[%s9712_s1 + $0x738] ss:$12 sps:$4 sm:$0xff]  }
  0xd1   :  { %2419 = vmatprep.subr.bf16.mxu1 %v7460_v19 }
  0xd3   :  { %2101 = vmatpush1.bf16.msra.mxu0 %v6613_v50  ;;  %v6686_v50 = vld [vmem:[%s9712_s1 + $0x678] ss:$12 sps:$4 sm:$0xff]  }
  0xd4   :  { %2102 = vmatprep.subr.bf16.mxu0 %v6618_v51  ;;  %2420 = vmatpush1.bf16.msra.mxu1 %v6802_v24  ;;  %v6827_v51 = vld [vmem:[%s9712_s1 + $0x878] ss:$12 sps:$4 sm:$0xff]   ;;  %v6733_v24 = vld [vmem:[%s9712_s1 + $0x754] ss:$12 sps:$4 sm:$0xff]  }
  0xd5   :  { %2421 = vmatprep.subr.bf16.mxu1 %v7460_v19 }
  0xd7   :  { %2103 = vmatpush1.bf16.msra.mxu0 %v6616_v54  ;;  %v6698_v54 = vld [vmem:[%s9712_s1 + $0x6ac] ss:$12 sps:$4 sm:$0xff]  }
  0xd8   :  { %2104 = vmatprep.subr.bf16.mxu0 %v6621_v55  ;;  %2422 = vmatpush1.bf16.msra.mxu1 %v6806_v30  ;;  %v6830_v55 = vld [vmem:[%s9712_s1 + $0x890] ss:$12 sps:$4 sm:$0xff]   ;;  %v6851_v30 = vld [vmem:[%s9714_s3 + $0x60] ss:$8 sps:$4 sm:$0xff]  }
  0xd9   :  { %2423 = vmatprep.subr.bf16.mxu1 %v7460_v19 }
  0xdb   :  { %2105 = vmatpush1.bf16.msra.mxu0 %v6619_v58  ;;  %v6832_v58 = vld [vmem:[%s9712_s1 + $0x8c0] ss:$12 sps:$4 sm:$0x3f]  }
  0xdc   :  { %2106 = vmatprep.subr.bf16.mxu0 %v6624_v59  ;;  %2424 = vmatpush1.bf16.msra.mxu1 %v6809_v32  ;;  %v6703_v59 = vld [vmem:[%s9712_s1 + $0x6c4] ss:$12 sps:$4 sm:$0xff]   ;;  %v1967_v0 = vsel %vm1959_vm1, %v6832_v58, 0  ;;  %v6856_v32 = vld [vmem:[%s9714_s3 + $0x74] ss:$8 sps:$4 sm:$0xff]  }
  0xdd   :  { %2425 = vmatprep.subr.bf16.mxu1 %v7460_v19  ;;  %v6771_v58 = vld [vmem:[%s9712_s1 + $0x810] ss:$12 sps:$4 sm:$0xff]  }
  0xdf   :  { %2107 = vmatpush1.bf16.msra.mxu0 %v6622_v62  ;;  %v6708_v62 = vld [vmem:[%s9712_s1 + $0x6dc] ss:$12 sps:$4 sm:$0xff]  }
  0xe0   :  { %2108 = vmatprep.subr.bf16.mxu0 %v6627_v63  ;;  %2426 = vmatpush1.bf16.msra.mxu1 %v6812_v35  ;;  %v47_v63 = vld [vmem:[%s9711_s0 + $0x50] sm:$0x3f]  ;;  %v6741_v35 = vld [vmem:[%s9712_s1 + $0x780] ss:$12 sps:$4 sm:$0xff]  }
  0xe1   :  { %2427 = vmatprep.subr.bf16.mxu1 %v7460_v19 }
  0xe3   :  { %2109 = vmatpush1.bf16.msra.mxu0 %v6625_v2  ;;  %v6706_v2 = vld [vmem:[%s9712_s1 + $0x6d8] ss:$12 sps:$4 sm:$0xff]  }
  0xe4   :  { %2110 = vmatprep.subr.bf16.mxu0 %v6630_v3  ;;  %2428 = vmatpush1.bf16.msra.mxu1 %v6815_v39  ;;  %v8274_v3 = vpack.c.bf16 %v47_v63, %v47_v63  ;;  %v6857_v39 = vld [vmem:[%s9714_s3 + $0x80] ss:$8 sps:$4 sm:$0xff]  }
  0xe5   :  { %2429 = vmatprep.subr.bf16.mxu1 %v7460_v19  ;;  %v6788_v63 = vld [vmem:[%s9712_s1 + $0x85c] ss:$12 sps:$4 sm:$0xff]  }
  0xe7   :  { %2111 = vmatpush1.bf16.msra.mxu0 %v6628_v6  ;;  %v6711_v6 = vld [vmem:[%s9712_s1 + $0x6f0] ss:$12 sps:$4 sm:$0xff]  }
  0xe8   :  { %2112 = vmatprep.subr.bf16.mxu0 %v6633_v7  ;;  %2430 = vmatpush1.bf16.msra.mxu1 %v6818_v42  ;;  %v6836_v7 = vld [vmem:[%s9714_s3 + $0x10] ss:$8 sps:$4 sm:$0xff]  }
  0xe9   :  { %2431 = vmatprep.subr.bf16.mxu1 %v7460_v19  ;;  %v6860_v42 = vld [vmem:[%s9714_s3 + $0x90] ss:$8 sps:$4 sm:$0xff]  }
  0xeb   :  { %2113 = vmatpush1.bf16.msra.mxu0 %v6631_v9  ;;  %v6841_v9 = vld [vmem:[%s9714_s3 + $0x24] ss:$8 sps:$4 sm:$0xff]  }
  0xec   :  { %2114 = vmatprep.subr.bf16.mxu0 %v6638_v11  ;;  %2432 = vmatpush1.bf16.msra.mxu1 %v6821_v45  ;;  %v6716_v11 = vld [vmem:[%s9712_s1 + $0x708] ss:$12 sps:$4 sm:$0xff]  }
  0xed   :  { %2433 = vmatprep.subr.bf16.mxu1 %v7460_v19  ;;  %v6863_v45 = vld [vmem:[%s9714_s3 + $0xa0] ss:$8 sps:$4 sm:$0xff]  }
  0xef   :  { %2115 = vmatpush1.bf16.msra.mxu0 %v6636_v15  ;;  %v6842_v15 = vld [vmem:[%s9714_s3 + $0x30] ss:$8 sps:$4 sm:$0xff]  }
  0xf0   :  { %2116 = vmatprep.subr.bf16.mxu0 %v6643_v18  ;;  %v6847_v18 = vld [vmem:[%s9714_s3 + $0x44] ss:$8 sps:$4 sm:$0xff]  }
  0xf3   :  { %2117 = vmatpush1.bf16.msra.mxu0 %v6641_v20  ;;  %v6728_v20 = vld [vmem:[%s9712_s1 + $0x73c] ss:$12 sps:$4 sm:$0xff]  }
  0xf4   :  { %2118 = vmatprep.subr.bf16.mxu0 %v6648_v21  ;;  %v6845_v21 = vld [vmem:[%s9714_s3 + $0x40] ss:$8 sps:$4 sm:$0xff]  }
  0xf7   :  { %2119 = vmatpush1.bf16.msra.mxu0 %v6646_v23  ;;  %v6850_v23 = vld [vmem:[%s9714_s3 + $0x54] ss:$8 sps:$4 sm:$0xff]  }
  0xf8   :  { %2120 = vmatprep.subr.bf16.mxu0 %v6653_v25  ;;  %v6848_v25 = vld [vmem:[%s9714_s3 + $0x50] ss:$8 sps:$4 sm:$0xff]  }
  0xfb   :  { %2121 = vmatpush1.bf16.msra.mxu0 %v6651_v26  ;;  %v6731_v26 = vld [vmem:[%s9712_s1 + $0x750] ss:$12 sps:$4 sm:$0xff]  }
  0xfc   :  { %2122 = vmatprep.subr.bf16.mxu0 %v6658_v28  ;;  %v6738_v28 = vld [vmem:[%s9712_s1 + $0x76c] ss:$12 sps:$4 sm:$0xff]  }
  0xff   :  { %2123 = vmatpush1.bf16.msra.mxu0 %v6656_v31  ;;  %v6736_v31 = vld [vmem:[%s9712_s1 + $0x768] ss:$12 sps:$4 sm:$0xff]  }
 0x100   :  { %2133 = vmatprep.subr.bf16.mxu0 %v6663_v33  ;;  %v6743_v33 = vld [vmem:[%s9712_s1 + $0x784] ss:$12 sps:$4 sm:$0xff]  }
 0x102   :  { %2125 = vmatmul.mubr.bf16.vlgmr.msra.gmra.mrb[0].mxu0 %v8013_v46  ;;  %v6683_v46 = vld [vmem:[%s9712_s1 + $0x664] ss:$12 sps:$4 sm:$0xff]  }
 0x103   :  { %2134 = vmatpush1.bf16.msra.mxu0 %v6661_v34  ;;  %2165 = vmatprep.mubr.bf16.mxu0 %v8018_v48  ;;  %v6824_v48 = vld [vmem:[%s9712_s1 + $0x860] ss:$12 sps:$4 sm:$0xff]   ;;  %v6854_v34 = vld [vmem:[%s9714_s3 + $0x70] ss:$8 sps:$4 sm:$0xff]  }
 0x104   :  { %2135 = vmatprep.subr.bf16.mxu0 %v6668_v36  ;;  %2434 = vmatpush1.bf16.msra.mxu1 %v6824_v48  ;;  %v6748_v36 = vld [vmem:[%s9712_s1 + $0x79c] ss:$12 sps:$4 sm:$0xff]   ;;  %v6763_v48 = vld [vmem:[%s9712_s1 + $0x7e4] ss:$12 sps:$4 sm:$0xff]  }
 0x105   :  { %2435 = vmatprep.subr.bf16.mxu1 %v7460_v19 }
 0x107   :  { %2136 = vmatpush1.bf16.msra.mxu0 %v6666_v37  ;;  %v6859_v37 = vld [vmem:[%s9714_s3 + $0x84] ss:$8 sps:$4 sm:$0xff]  }
 0x108   :  { %2137 = vmatprep.subr.bf16.mxu0 %v6673_v40  ;;  %2436 = vmatpush1.bf16.msra.mxu1 %v6827_v51  ;;  %v6746_v40 = vld [vmem:[%s9712_s1 + $0x798] ss:$12 sps:$4 sm:$0xff]  }
 0x109   :  { %2437 = vmatprep.subr.bf16.mxu1 %v7460_v19  ;;  %v6871_v51 = vld [vmem:[%s9714_s3 + $0xc4] ss:$8 sps:$4 sm:$0xff]  }
 0x10b   :  { %2138 = vmatpush1.bf16.msra.mxu0 %v6671_v41  ;;  %v6862_v41 = vld [vmem:[%s9714_s3 + $0x94] ss:$8 sps:$4 sm:$0xff]  }
 0x10c   :  { %2139 = vmatprep.subr.bf16.mxu0 %v6678_v43  ;;  %2438 = vmatpush1.bf16.msra.mxu1 %v6830_v55  ;;  %v6751_v43 = vld [vmem:[%s9712_s1 + $0x7b0] ss:$12 sps:$4 sm:$0xff]  }
 0x10d   :  { %2439 = vmatprep.subr.bf16.mxu1 %v7460_v19  ;;  %v6874_v55 = vld [vmem:[%s9714_s3 + $0xd4] ss:$8 sps:$4 sm:$0xff]  }
 0x10f   :  { %2140 = vmatpush1.bf16.msra.mxu0 %v6676_v44  ;;  %v6758_v44 = vld [vmem:[%s9712_s1 + $0x7cc] ss:$12 sps:$4 sm:$0xff]  }
 0x110   :  { %2141 = vmatprep.subr.bf16.mxu0 %v6683_v46  ;;  %2440 = vmatpush1.bf16.msra.mxu1 %v6831_v56  ;;  %v6756_v46 = vld [vmem:[%s9712_s1 + $0x7c8] ss:$12 sps:$4 sm:$0xff]  }
 0x111   :  { %2441 = vmatprep.subr.bf16.mxu1 %v7460_v19  ;;  %v6773_v56 = vld [vmem:[%s9712_s1 + $0x814] ss:$12 sps:$4 sm:$0xff]  }
 0x113   :  { %2142 = vmatpush1.bf16.msra.mxu0 %v6681_v47  ;;  %v6868_v47 = vld [vmem:[%s9714_s3 + $0xb4] ss:$8 sps:$4 sm:$0xff]  }
 0x114   :  { %2143 = vmatprep.subr.bf16.mxu0 %v6688_v49  ;;  %2442 = vmatpush1.bf16.msra.mxu1 %v1967_v0  ;;  %v6866_v49 = vld [vmem:[%s9714_s3 + $0xb0] ss:$8 sps:$4 sm:$0xff]   ;;  %v6318_v0 = vpop.f32.mrb[0].mxu1 }
 0x115   :  { %2761 = vmatprep.subr.bf16.mxu1 %v6835_v61  ;;  %v6783_v61 = vld [vmem:[%s9712_s1 + $0x844] ss:$12 sps:$4 sm:$0xff]  }
 0x117   :  { %2144 = vmatpush1.bf16.msra.mxu0 %v6686_v50  ;;  %2448 = vmatmul.mubr.bf16.vlgmr.msra.gmra.mrb[16].mxu1 %v8274_v3  ;;  %v6761_v50 = vld [vmem:[%s9712_s1 + $0x7e0] ss:$12 sps:$4 sm:$0xff]  }
 0x118   :  { %2145 = vmatprep.subr.bf16.mxu0 %v6693_v52  ;;  %2762 = vmatpush1.bf16.msra.mxu1 %v6833_v1  ;;  %v6768_v52 = vld [vmem:[%s9712_s1 + $0x7fc] ss:$12 sps:$4 sm:$0xff]   ;;  %v6786_v1 = vld [vmem:[%s9712_s1 + $0x858] ss:$12 sps:$4 sm:$0xff]  }
 0x119   :  { %2763 = vmatprep.subr.bf16.mxu1 %v6838_v4  ;;  %v6793_v4 = vld [vmem:[%s9712_s1 + $0x874] ss:$12 sps:$4 sm:$0xff]  }
 0x11b   :  { %2146 = vmatpush1.bf16.msra.mxu0 %v6691_v53  ;;  %v6869_v53 = vld [vmem:[%s9714_s3 + $0xc0] ss:$8 sps:$4 sm:$0xff]  }
 0x11c   :  { %2147 = vmatprep.subr.bf16.mxu0 %v6698_v54  ;;  %2764 = vmatpush1.bf16.msra.mxu1 %v6836_v7  ;;  %v6766_v54 = vld [vmem:[%s9712_s1 + $0x7f8] ss:$12 sps:$4 sm:$0xff]  }
 0x11d   :  { %2765 = vmatprep.subr.bf16.mxu1 %v6841_v9  ;;  %v6797_v9 = vld [vmem:[%s9712_s1 + $0x88c] ss:$12 sps:$4 sm:$0xff]  }
 0x11f   :  { %2148 = vmatpush1.bf16.msra.mxu0 %v6696_v57  ;;  %v6872_v57 = vld [vmem:[%s9714_s3 + $0xd0] ss:$8 sps:$4 sm:$0xff]  }
 0x120   :  { %2149 = vmatprep.subr.bf16.mxu0 %v6703_v59  ;;  %2766 = vmatpush1.bf16.msra.mxu1 %v6839_v10  ;;  %v6778_v59 = vld [vmem:[%s9712_s1 + $0x82c] ss:$12 sps:$4 sm:$0xff]  }
 0x121   :  { %2767 = vmatprep.subr.bf16.mxu1 %v6844_v12 }
 0x123   :  { %2150 = vmatpush1.bf16.msra.mxu0 %v6701_v60  ;;  %v6776_v60 = vld [vmem:[%s9712_s1 + $0x828] ss:$12 sps:$4 sm:$0xff]  }
 0x124   :  { %2151 = vmatprep.subr.bf16.mxu0 %v6708_v62  ;;  %2768 = vmatpush1.bf16.msra.mxu1 %v6842_v15  ;;  %v6781_v62 = vld [vmem:[%s9712_s1 + $0x840] ss:$12 sps:$4 sm:$0xff]  }
 0x125   :  { %2769 = vmatprep.subr.bf16.mxu1 %v6847_v18 }
 0x127   :  { %2152 = vmatpush1.bf16.msra.mxu0 %v6706_v2  ;;  %v6319_v2 = vpop.f32.mrb[1].mxu1 }
 0x128   :  { %2153 = vmatprep.subr.bf16.mxu0 %v6713_v5  ;;  %2770 = vmatpush1.bf16.msra.mxu1 %v6845_v21  ;;  %v8457_v5 = vadd.f32 %v6319_v2, %v6318_v0 }
 0x129   :  { %2771 = vmatprep.subr.bf16.mxu1 %v6850_v23 }
 0x12b   :  { %2154 = vmatpush1.bf16.msra.mxu0 %v6711_v6  ;;  %v6321_v6 = vpop.f32.mrb[2].mxu1 }
 0x12c   :  { %2155 = vmatprep.subr.bf16.mxu0 %v6718_v8  ;;  %2772 = vmatpush1.bf16.msra.mxu1 %v6848_v25  ;;  %v6322_v7 = vpop.f32.mrb[3].mxu1  ;;  %v6791_v8 = vld [vmem:[%s9712_s1 + $0x870] ss:$12 sps:$4 sm:$0xff]  }
 0x12d   :  { %2773 = vmatprep.subr.bf16.mxu1 %v6853_v27 }
 0x12f   :  { %2156 = vmatpush1.bf16.msra.mxu0 %v6716_v11 }
 0x130   :  { %2157 = vmatprep.subr.bf16.mxu0 %v6723_v13  ;;  %2774 = vmatpush1.bf16.msra.mxu1 %v6851_v30 }
 0x131   :  { %2775 = vmatprep.subr.bf16.mxu1 %v6856_v32 }
 0x133   :  { %2158 = vmatpush1.bf16.msra.mxu0 %v6721_v17 }
 0x134   :  { %2159 = vmatprep.subr.bf16.mxu0 %v6728_v20  ;;  %2776 = vmatpush1.bf16.msra.mxu1 %v6854_v34 }
 0x135   :  { %2777 = vmatprep.subr.bf16.mxu1 %v6859_v37 }
 0x137   :  { %2160 = vmatpush1.bf16.msra.mxu0 %v6726_v22 }
 0x138   :  { %2161 = vmatprep.subr.bf16.mxu0 %v6733_v24  ;;  %2778 = vmatpush1.bf16.msra.mxu1 %v6857_v39 }
 0x139   :  { %2779 = vmatprep.subr.bf16.mxu1 %v6862_v41 }
 0x13b   :  { %2162 = vmatpush1.bf16.msra.mxu0 %v6731_v26 }
 0x13c   :  { %2163 = vmatprep.subr.bf16.mxu0 %v6738_v28  ;;  %2780 = vmatpush1.bf16.msra.mxu1 %v6860_v42 }
 0x13f   :  { %2164 = vmatpush1.bf16.msra.mxu0 %v6736_v31 }
 0x140   :  { %2174 = vmatprep.subr.bf16.mxu0 %v6743_v33 }
 0x142   :  { %2166 = vmatmul.mubr.bf16.vlgmr.msra.gmra.mrb[0].mxu0 %v8112_v16  ;;  %v6753_v16 = vld [vmem:[%s9712_s1 + $0x7b4] ss:$12 sps:$4 sm:$0xff]  }
 0x143   :  { %2175 = vmatpush1.bf16.msra.mxu0 %v6741_v35  ;;  %5886 = vmatprep.mubr.msk.bf16.mxu0 %vm1955_vm0, %v8152_v29  ;;  %v6865_v29 = vld [vmem:[%s9714_s3 + $0xa4] ss:$8 sps:$4 sm:$0xff]  }
 0x144   :  { %2176 = vmatprep.subr.bf16.mxu0 %v6748_v36  ;;  %2781 = vmatprep.subr.bf16.mxu1 %v6865_v29 }
 0x145   :  { %2782 = vmatpush1.bf16.msra.mxu1 %v6863_v45 }
 0x146   :  { %2783 = vmatprep.subr.bf16.mxu1 %v6868_v47 }
 0x147   :  { %2177 = vmatpush1.bf16.msra.mxu0 %v6746_v40 }
 0x148   :  { %2178 = vmatprep.subr.bf16.mxu0 %v6753_v16 }
 0x149   :  { %2784 = vmatpush1.bf16.msra.mxu1 %v6866_v49 }
 0x14a   :  { %2785 = vmatprep.subr.bf16.mxu1 %v6871_v51 }
 0x14b   :  { %2179 = vmatpush1.bf16.msra.mxu0 %v6751_v43 }
 0x14c   :  { %2180 = vmatprep.subr.bf16.mxu0 %v6758_v44 }
 0x14d   :  { %2786 = vmatpush1.bf16.msra.mxu1 %v6869_v53 }
 0x14e   :  { %2787 = vmatprep.subr.bf16.mxu1 %v6874_v55 }
 0x14f   :  { %2181 = vmatpush1.bf16.msra.mxu0 %v6756_v46 }
 0x150   :  { %2182 = vmatprep.subr.bf16.mxu0 %v6763_v48 }
 0x151   :  { %2788 = vmatpush1.bf16.msra.mxu1 %v6872_v57 }
 0x153   :  { %2183 = vmatpush1.bf16.msra.mxu0 %v6761_v50 }
 0x154   :  { %2184 = vmatprep.subr.bf16.mxu0 %v6768_v52 }
 0x157   :  { %2185 = vmatpush1.bf16.msra.mxu0 %v6766_v54 }
 0x158   :  { %2186 = vmatprep.subr.bf16.mxu0 %v6773_v56 }
 0x15b   :  { %2187 = vmatpush1.bf16.msra.mxu0 %v6771_v58 }
 0x15c   :  { %2188 = vmatprep.subr.bf16.mxu0 %v6778_v59 }
 0x15f   :  { %2189 = vmatpush1.bf16.msra.mxu0 %v6776_v60 }
 0x160   :  { %2190 = vmatprep.subr.bf16.mxu0 %v6783_v61 }
 0x163   :  { %2191 = vmatpush1.bf16.msra.mxu0 %v6781_v62 }
 0x164   :  { %2192 = vmatprep.subr.bf16.mxu0 %v6788_v63 }
 0x167   :  { %2193 = vmatpush1.bf16.msra.mxu0 %v6786_v1 }
 0x168   :  { %2194 = vmatprep.subr.bf16.mxu0 %v6793_v4 }
 0x169   :  { %17 = vsyncpa [#allocation5], 0  ;;  %v6795_v10 = vld [vmem:[%s9712_s1 + $0x888] ss:$12 sps:$4 sm:$0xff]   ;;  %v6801_v11 = vld [vmem:[%s9712_s1 + $0x8a4] ss:$12 sps:$4 sm:$0xff]   ;;  %v439_v56 = vlaneseq }
 0x16a   :  { %v6799_v12 = vld [vmem:[%s9712_s1 + $0x8a0] ss:$12 sps:$4 sm:$0xff]   ;;  %v6803_v13 = vld [vmem:[%s9712_s1 + $0x8bc] ss:$12 sps:$4 sm:$0x3f]   ;;  %v6340_v25 = vpop.f32.mrb[4].mxu1 }
 0x16b   :  { %2195 = vmatpush1.bf16.msra.mxu0 %v6791_v8  ;;  %v6805_v15 = vld [vmem:[%s9712_s1 + $0x8b8] ss:$12 sps:$4 sm:$0x3f]   ;;  %v6807_v18 = vld [vmem:[%s9712_s1 + $0xc8] ss:$12 sps:$4 sm:$0xff]   ;;  %v6341_v26 = vpop.f32.mrb[5].mxu1 }
 0x16c   :  { %2196 = vmatprep.subr.bf16.mxu0 %v6797_v9  ;;  %v1961_v17 = vsel %vm1959_vm1, %v6805_v15, 0  ;;  %v6808_v20 = vld [vmem:[%s9712_s1 + $0x8] ss:$12 sps:$4 sm:$0xff]   ;;  %v6810_v21 = vld [vmem:[%s9712_s1 + $0xe0] ss:$12 sps:$4 sm:$0xff]   ;;  %v8505_v27 = vadd.f32 %v6341_v26, %v6340_v25  ;;  %v8556_v57 = vshrl.u32 %v439_v56, 7 }
 0x16d   :  { %v6811_v22 = vld [vmem:[%s9712_s1 + $0x20] ss:$12 sps:$4 sm:$0xff]   ;;  %v6813_v23 = vld [vmem:[%s9712_s1 + $0xf8] ss:$12 sps:$4 sm:$0xff]   ;;  %v6817_v28 = vld [vmem:[%s9712_s1 + $0x50] ss:$12 sps:$4 sm:$0xff]  }
 0x16e   :  { %v6814_v24 = vld [vmem:[%s9712_s1 + $0x38] ss:$12 sps:$4 sm:$0xff]   ;;  %v6819_v31 = vld [vmem:[%s9712_s1 + $0x128] ss:$12 sps:$4 sm:$0xff]   ;;  %v6822_v33 = vld [vmem:[%s9712_s1 + $0x140] ss:$12 sps:$4 sm:$0xff]  }
 0x16f   :  { %2197 = vmatpush1.bf16.msra.mxu0 %v6795_v10  ;;  %v6820_v32 = vld [vmem:[%s9712_s1 + $0x68] ss:$12 sps:$4 sm:$0xff]   ;;  %v6823_v34 = vld [vmem:[%s9712_s1 + $0x80] ss:$12 sps:$4 sm:$0xff]   ;;  %v6825_v35 = vld [vmem:[%s9712_s1 + $0x158] ss:$12 sps:$4 sm:$0xff]  }
 0x170   :  { %2198 = vmatprep.subr.bf16.mxu0 %v6801_v11  ;;  %v6826_v36 = vld [vmem:[%s9712_s1 + $0x98] ss:$12 sps:$4 sm:$0xff]   ;;  %v6828_v37 = vld [vmem:[%s9712_s1 + $0x170] ss:$12 sps:$4 sm:$0xff]   ;;  %v8559_v58 = vsub.s32 0, %v8556_v57  ;;  %v8565_v60 = vsub.s32 1, %v8556_v57 }
 0x171   :  { %v6829_v39 = vld [vmem:[%s9712_s1 + $0xb0] ss:$12 sps:$4 sm:$0xff]   ;;  %v6877_v48 = vld [vmem:[%s9714_s3 + $0xe4] ss:$8 sps:$4 sm:$0xff]   ;;  %v437_v59 = vld [vmem:[%s9713_s2] sm:$0x7] }
 0x172   :  { %2789 = vmatprep.subr.bf16.mxu1 %v6877_v48  ;;  %v6880_v49 = vld [vmem:[%s9714_s3 + $0xf4] ss:$8 sps:$4 sm:$0xff]   ;;  %v6878_v50 = vld [vmem:[%s9714_s3 + $0xf0] ss:$8 sps:$4 sm:$0xff]   ;;  %v6883_v51 = vld [vmem:[%s9714_s3 + $0x104] ss:$8 sps:$4 sm:$0xff]   ;;  %v442_v61 = vrot.slane %v437_v59, %v8559_v58  ;;  %v446_v62 = vrot.slane %v437_v59, %v8565_v60 }
 0x173   :  { %2199 = vmatpush1.bf16.msra.mxu0 %v6799_v12  ;;  %v6881_v10 = vld [vmem:[%s9714_s3 + $0x100] ss:$8 sps:$4 sm:$0xff]   ;;  %v6886_v12 = vld [vmem:[%s9714_s3 + $0x114] ss:$8 sps:$4 sm:$0xff]   ;;  %v6889_v15 = vld [vmem:[%s9714_s3 + $0x124] ss:$8 sps:$4 sm:$0xff]  }
 0x174   :  { %5885 = vmatprep.subr.msk.bf16.mxu0 %vm1959_vm1, %v6803_v13  ;;  %v6884_v13 = vld [vmem:[%s9714_s3 + $0x110] ss:$8 sps:$4 sm:$0xff]   ;;  %v8607_v25 = vsub.s32 2, %v8556_v57  ;;  %v6899_v26 = vld [vmem:[%s9714_s3 + $0x160] ss:$8 sps:$4 sm:$0xff]   ;;  %vm3116_vm2 = vcmask 1043456  }
 0x175   :  { %v6914_v48 = vld [vmem:[%s9716_s5 + $0x48] ss:$12 sps:$4 sm:$0xff]   ;;  %v6931_v56 = vld [vmem:[%s9716_s5 + $0xc4] ss:$12 sps:$4 sm:$0xff]   ;;  %vm5515_vm3 = vcmask 1042432   ;;  %vm5516_vm4 = vcmask 587780  }
 0x176   :  { %vm3112_vm5 = vcmask 588800   ;;  %vm5517_vm6 = vmor %vm5516_vm4, %vm5515_vm3 }
 0x177   :  { %2201 = vmatpush1.bf16.msra.mxu0 %v1961_v17  ;;  %v6887_v17 = vld [vmem:[%s9714_s3 + $0x120] ss:$8 sps:$4 sm:$0xff]  }
 0x178   :  { %6280 = vmatprep.subr.bf16.mxu0 %v6807_v18  ;;  %v6892_v18 = vld [vmem:[%s9714_s3 + $0x134] ss:$8 sps:$4 sm:$0xff]  }
 0x17a   :  { %2207 = vmatmul.mubr.bf16.vlgmr.msra.gmra.mrb[0].mxu0 %v8274_v3  ;;  %v6816_v3 = vld [vmem:[%s9712_s1 + $0x110] ss:$12 sps:$4 sm:$0xff]  }
 0x17b   :  { %6281 = vmatpush3.bf16.msra.mxu0 %v6808_v20  ;;  %2247 = vmatprep.mubr.bf16.mxu0 %v7560_v14  ;;  %v6343_v14 = vpop.f32.mrb[6].mxu1  ;;  %v6890_v20 = vld [vmem:[%s9714_s3 + $0x130] ss:$8 sps:$4 sm:$0xff]  }
 0x17c   :  { %6282 = vmatprep.subr.bf16.mxu0 %v6810_v21  ;;  %v6344_v30 = vpop.f32.mrb[7].mxu1  ;;  %v6895_v21 = vld [vmem:[%s9714_s3 + $0x144] ss:$8 sps:$4 sm:$0xff]   ;;  %v6904_v14 = vld [vmem:[%s9714_s3 + $0x174] ss:$8 sps:$4 sm:$0xff]  }
 0x17d   :  { %v6362_v40 = vpop.f32.mrb[8].mxu1  ;;  %v450_v30 = vrot.slane %v437_v59, %v8607_v25  ;;  %v6929_v59 = vld [vmem:[%s9716_s5 + $0xc0] ss:$12 sps:$4 sm:$0xff]  }
 0x17e   :  { %v6363_v41 = vpop.f32.mrb[9].mxu1 }
 0x17f   :  { %6283 = vmatpush3.bf16.msra.mxu0 %v6811_v22  ;;  %v8535_v16 = vadd.f32 %v6363_v41, %v6362_v40  ;;  %v6365_v42 = vpop.f32.mrb[10].mxu1  ;;  %v6893_v22 = vld [vmem:[%s9714_s3 + $0x140] ss:$8 sps:$4 sm:$0xff]  }
 0x180   :  { %6284 = vmatprep.subr.bf16.mxu0 %v6813_v23  ;;  %v6366_v43 = vpop.f32.mrb[11].mxu1  ;;  %v6898_v23 = vld [vmem:[%s9714_s3 + $0x154] ss:$8 sps:$4 sm:$0xff]  }
 0x183   :  { %6285 = vmatpush3.bf16.msra.mxu0 %v6814_v24  ;;  %v6896_v24 = vld [vmem:[%s9714_s3 + $0x150] ss:$8 sps:$4 sm:$0xff]  }
 0x184   :  { %6286 = vmatprep.subr.bf16.mxu0 %v6816_v3  ;;  %v6901_v3 = vld [vmem:[%s9714_s3 + $0x164] ss:$8 sps:$4 sm:$0xff]  }
 0x187   :  { %6287 = vmatpush3.bf16.msra.mxu0 %v6817_v28 }
 0x188   :  { %6288 = vmatprep.subr.bf16.mxu0 %v6819_v31 }
 0x18b   :  { %6289 = vmatpush3.bf16.msra.mxu0 %v6820_v32 }
 0x18c   :  { %6290 = vmatprep.subr.bf16.mxu0 %v6822_v33 }
 0x18f   :  { %6291 = vmatpush3.bf16.msra.mxu0 %v6823_v34  ;;  %v6902_v34 = vld [vmem:[%s9714_s3 + $0x170] ss:$8 sps:$4 sm:$0xff]  }
 0x190   :  { %6292 = vmatprep.subr.bf16.mxu0 %v6825_v35 }
 0x193   :  { %6293 = vmatpush3.bf16.msra.mxu0 %v6826_v36  ;;  %v6907_v36 = vld [vmem:[%s9716_s5 + $0x4] ss:$12 sps:$4 sm:$0xff]  }
 0x194   :  { %6294 = vmatprep.subr.bf16.mxu0 %v6828_v37 }
 0x197   :  { %6295 = vmatpush3.bf16.msra.mxu0 %v6829_v39 }
 0x19a   :  { %2248 = vmatmul.mubr.bf16.vlgmr.msra.gmra.mrb[4].mxu0 %v7629_v38  ;;  %v6875_v38 = vld [vmem:[%s9714_s3 + $0xe0] ss:$8 sps:$4 sm:$0xff]  }
 0x19b   :  { %2790 = vmatpush1.bf16.msra.mxu1 %v6875_v38  ;;  %v6919_v38 = vld [vmem:[%s9716_s5 + $0x64] ss:$12 sps:$4 sm:$0xff]  }
 0x19c   :  { %2791 = vmatprep.subr.bf16.mxu1 %v6880_v49  ;;  %v6917_v49 = vld [vmem:[%s9716_s5 + $0x60] ss:$12 sps:$4 sm:$0xff]  }
 0x19e   :  { %v6384_v29 = vpop.f32.mrb[12].mxu1 }
 0x19f   :  { %v6385_v44 = vpop.f32.mrb[13].mxu1  ;;  %2792 = vmatpush1.bf16.msra.mxu1 %v6878_v50  ;;  %v6922_v50 = vld [vmem:[%s9716_s5 + $0x7c] ss:$12 sps:$4 sm:$0xff]  }
 0x1a0   :  { %v8537_v45 = vadd.f32 %v6385_v44, %v6384_v29  ;;  %v6387_v46 = vpop.f32.mrb[14].mxu1  ;;  %2802 = vmatprep.subr.bf16.mxu1 %v6883_v51  ;;  %v6905_v44 = vld [vmem:[%s9716_s5] ss:$12 sps:$4 sm:$0xff]   ;;  %v6920_v51 = vld [vmem:[%s9716_s5 + $0x78] ss:$12 sps:$4 sm:$0xff]  }
 0x1a1   :  { %v6388_v47 = vpop.f32.mrb[15].mxu1 }
 0x1a2   :  { %v6916_v47 = vld [vmem:[%s9716_s5 + $0x4c] ss:$12 sps:$4 sm:$0xff]  }
 0x1ea   :  { %v8554_v52 = vpop.f32.mrb[16].mxu1 }
 0x1eb   :  { %v2451_v53 = vpop.f32.mrb[17].mxu1 }
 0x1ec   :  { %v2452_v54 = vpop.f32.mrb[18].mxu1  ;;  %v6923_v53 = vld [vmem:[%s9716_s5 + $0x90] ss:$12 sps:$4 sm:$0xff]  }
 0x1ed   :  { %v2453_v55 = vpop.f32.mrb[19].mxu1  ;;  %v6928_v54 = vld [vmem:[%s9716_s5 + $0xac] ss:$12 sps:$4 sm:$0xff]  }
 0x1ee   :  { %v6926_v55 = vld [vmem:[%s9716_s5 + $0xa8] ss:$12 sps:$4 sm:$0xff]  }
 0x24d   :  { %v2208_v63 = vpop.f32.mrb[0].mxu0 }
 0x24e   :  { %v6390_v0 = vadd.f32 %v2208_v63, %v442_v61  ;;  %v2210_v1 = vpop.f32.mrb[1].mxu0  ;;  %v6934_v61 = vld [vmem:[%s9716_s5 + $0xdc] ss:$12 sps:$4 sm:$0xff]   ;;  %v6937_v63 = vld [vmem:[%s9716_s5 + $0xf4] ss:$12 sps:$4 sm:$0xff]  }
 0x24f   :  { %v6391_v2 = vadd.f32 %v2210_v1, %v446_v62  ;;  %v2212_v4 = vpop.f32.mrb[2].mxu0  ;;  %v6932_v62 = vld [vmem:[%s9716_s5 + $0xd8] ss:$12 sps:$4 sm:$0xff]  }
 0x250   :  { %v2455_v6 = vmax.f32 %v6390_v0, 0.0  ;;  %v2213_v7 = vpop.f32.mrb[3].mxu0  ;;  %v6935_v0 = vld [vmem:[%s9716_s5 + $0xf0] ss:$12 sps:$4 sm:$0xff]   ;;  %v6940_v1 = vld [vmem:[%s9716_s5 + $0x10c] ss:$12 sps:$4 sm:$0xff]  }
 0x251   :  { %v2456_v8 = vmax.f32 %v6391_v2, 0.0  ;;  %v6938_v2 = vld [vmem:[%s9716_s5 + $0x108] ss:$12 sps:$4 sm:$0xff]   ;;  %v2893_v4 = vld [vmem:[%s9716_s5 + $0x120] sm:$0xff] }
 0x252   :  { %v2458_v11 = vpack.c.bf16 %v2455_v6, %v2455_v6  ;;  %v5973_v6 = vcombine.high %v2893_v4, %v2893_v4  ;;  %v5972_v7 = vcombine.low %v2893_v4, %v2893_v4  ;;  %v6959_v4 = vld [vmem:[%s9718_s7 + $0x8] ss:$48 sps:$4 sm:$0xff]  }
 0x253   :  { %v2459_v9 = vpack.c.bf16 %v2456_v8, %v2456_v8 }
 0x254   :  { %v3118_v8 = vsel %vm3116_vm2, %v5972_v7, 0  ;;  %v6965_v7 = vld [vmem:[%s9718_s7 + $0x68] ss:$48 sps:$4 sm:$0xff]  }
 0x255   :  { %2793 = vmatprep.mubr.bf16.mxu1 %v2459_v9  ;;  %v6956_v9 = vld [vmem:[%s9718_s7] ss:$48 sps:$4 sm:$0xff]  }
 0x256   :  { %2794 = vmatmul.mubr.bf16.vlgmr.msra.gmra.mrb[20].mxu1 %v2458_v11  ;;  %v6964_v11 = vld [vmem:[%s9718_s7 + $0x64] ss:$48 sps:$4 sm:$0xff]  }
 0x257   :  { %2803 = vmatpush1.bf16.msra.mxu1 %v6881_v10  ;;  %2834 = vmatprep.mubr.bf16.mxu1 %v7460_v19  ;;  %v6958_v10 = vld [vmem:[%s9718_s7 + $0x4] ss:$48 sps:$4 sm:$0xff]  }
 0x258   :  { %2804 = vmatprep.subr.bf16.mxu1 %v6886_v12  ;;  %5005 = vmatprep.subr.bf16.mxu0 %v6958_v10  ;;  %v6962_v12 = vld [vmem:[%s9718_s7 + $0x60] ss:$48 sps:$4 sm:$0xff]   ;;  %v6979_v10 = vld [vmem:[%s9718_s7 + $0x12c] ss:$48 sps:$4 sm:$0xff]  }
 0x259   :  { %5006 = vmatpush1.bf16.msra.mxu0 %v6956_v9  ;;  %v6971_v9 = vld [vmem:[%s9718_s7 + $0xc8] ss:$48 sps:$4 sm:$0xff]  }
 0x25a   :  { %5007 = vmatprep.subr.bf16.mxu0 %v6964_v11  ;;  %v6977_v11 = vld [vmem:[%s9718_s7 + $0x128] ss:$48 sps:$4 sm:$0xff]  }
 0x25b   :  { %2805 = vmatpush1.bf16.msra.mxu1 %v6884_v13  ;;  %v6970_v13 = vld [vmem:[%s9718_s7 + $0xc4] ss:$48 sps:$4 sm:$0xff]  }
 0x25c   :  { %2806 = vmatprep.subr.bf16.mxu1 %v6889_v15  ;;  %v6968_v15 = vld [vmem:[%s9718_s7 + $0xc0] ss:$48 sps:$4 sm:$0xff]  }
 0x25d   :  { %5008 = vmatpush1.bf16.msra.mxu0 %v6962_v12  ;;  %v6985_v12 = vld [vmem:[%s9718_s7 + $0x18c] ss:$48 sps:$4 sm:$0xff]  }
 0x25e   :  { %5009 = vmatprep.subr.bf16.mxu0 %v6970_v13  ;;  %v6983_v13 = vld [vmem:[%s9718_s7 + $0x188] ss:$48 sps:$4 sm:$0xff]  }
 0x25f   :  { %2807 = vmatpush1.bf16.msra.mxu1 %v6887_v17  ;;  %v6976_v17 = vld [vmem:[%s9718_s7 + $0x124] ss:$48 sps:$4 sm:$0xff]  }
 0x260   :  { %2808 = vmatprep.subr.bf16.mxu1 %v6892_v18  ;;  %v6974_v18 = vld [vmem:[%s9718_s7 + $0x120] ss:$48 sps:$4 sm:$0xff]  }
 0x261   :  { %5010 = vmatpush1.bf16.msra.mxu0 %v6968_v15  ;;  %v6991_v15 = vld [vmem:[%s9718_s7 + $0x1ec] ss:$48 sps:$4 sm:$0xff]  }
 0x262   :  { %5011 = vmatprep.subr.bf16.mxu0 %v6976_v17  ;;  %v6989_v17 = vld [vmem:[%s9718_s7 + $0x1e8] ss:$48 sps:$4 sm:$0xff]  }
 0x263   :  { %2809 = vmatpush1.bf16.msra.mxu1 %v6890_v20  ;;  %v6982_v20 = vld [vmem:[%s9718_s7 + $0x184] ss:$48 sps:$4 sm:$0xff]  }
 0x264   :  { %2810 = vmatprep.subr.bf16.mxu1 %v6895_v21  ;;  %v6980_v21 = vld [vmem:[%s9718_s7 + $0x180] ss:$48 sps:$4 sm:$0xff]  }
 0x265   :  { %5012 = vmatpush1.bf16.msra.mxu0 %v6974_v18  ;;  %v6997_v18 = vld [vmem:[%s9718_s7 + $0x24c] ss:$48 sps:$4 sm:$0xff]  }
 0x266   :  { %5013 = vmatprep.subr.bf16.mxu0 %v6982_v20  ;;  %v6995_v20 = vld [vmem:[%s9718_s7 + $0x248] ss:$48 sps:$4 sm:$0xff]  }
 0x267   :  { %2811 = vmatpush1.bf16.msra.mxu1 %v6893_v22  ;;  %v6988_v22 = vld [vmem:[%s9718_s7 + $0x1e4] ss:$48 sps:$4 sm:$0xff]  }
 0x268   :  { %2812 = vmatprep.subr.bf16.mxu1 %v6898_v23  ;;  %v6986_v23 = vld [vmem:[%s9718_s7 + $0x1e0] ss:$48 sps:$4 sm:$0xff]  }
 0x269   :  { %5014 = vmatpush1.bf16.msra.mxu0 %v6980_v21  ;;  %v7003_v21 = vld [vmem:[%s9718_s7 + $0x2ac] ss:$48 sps:$4 sm:$0xff]  }
 0x26a   :  { %5015 = vmatprep.subr.bf16.mxu0 %v6988_v22  ;;  %v7001_v22 = vld [vmem:[%s9718_s7 + $0x2a8] ss:$48 sps:$4 sm:$0xff]  }
 0x26b   :  { %2813 = vmatpush1.bf16.msra.mxu1 %v6896_v24  ;;  %v6994_v24 = vld [vmem:[%s9718_s7 + $0x244] ss:$48 sps:$4 sm:$0xff]  }
 0x26c   :  { %2814 = vmatprep.subr.bf16.mxu1 %v6901_v3  ;;  %v6992_v3 = vld [vmem:[%s9718_s7 + $0x240] ss:$48 sps:$4 sm:$0xff]  }
 0x26d   :  { %v6296_v28 = vpop.f32.mrb[4].mxu0  ;;  %5016 = vmatpush1.bf16.msra.mxu0 %v6986_v23  ;;  %v7009_v23 = vld [vmem:[%s9718_s7 + $0x30c] ss:$48 sps:$4 sm:$0xff]  }
 0x26e   :  { %v6297_v31 = vpop.f32.mrb[5].mxu0  ;;  %5017 = vmatprep.subr.bf16.mxu0 %v6994_v24  ;;  %v7007_v24 = vld [vmem:[%s9718_s7 + $0x308] ss:$48 sps:$4 sm:$0xff]  }
 0x26f   :  { %v6298_v32 = vadd.f32 %v6297_v31, %v6296_v28  ;;  %v6299_v33 = vpop.f32.mrb[6].mxu0  ;;  %2815 = vmatpush1.bf16.msra.mxu1 %v6899_v26  ;;  %v7000_v26 = vld [vmem:[%s9718_s7 + $0x2a4] ss:$48 sps:$4 sm:$0xff]  }
 0x270   :  { %v6300_v35 = vpop.f32.mrb[7].mxu0  ;;  %2816 = vmatprep.subr.bf16.mxu1 %v6904_v14  ;;  %v6998_v14 = vld [vmem:[%s9718_s7 + $0x2a0] ss:$48 sps:$4 sm:$0xff]   ;;  %v7006_v28 = vld [vmem:[%s9718_s7 + $0x304] ss:$48 sps:$4 sm:$0xff]  }
 0x271   :  { %v2250_v37 = vadd.f32 %v6298_v32, %v450_v30  ;;  %5018 = vmatpush1.bf16.msra.mxu0 %v6992_v3  ;;  %v7004_v30 = vld [vmem:[%s9718_s7 + $0x300] ss:$48 sps:$4 sm:$0xff]   ;;  %v7012_v31 = vld [vmem:[%s9718_s7 + $0x364] ss:$48 sps:$4 sm:$0xff]   ;;  %v7015_v3 = vld [vmem:[%s9718_s7 + $0x36c] ss:$48 sps:$4 sm:$0xff]  }
 0x272   :  { %5019 = vmatprep.subr.bf16.mxu0 %v7000_v26  ;;  %v7010_v32 = vld [vmem:[%s9718_s7 + $0x360] ss:$48 sps:$4 sm:$0xff]   ;;  %v7018_v33 = vld [vmem:[%s9718_s7 + $0x3c4] ss:$48 sps:$4 sm:$0xff]  }
 0x273   :  { %v2290_v39 = vadd.f32 %v8457_v5, %v2250_v37  ;;  %2817 = vmatpush1.bf16.msra.mxu1 %v6902_v34  ;;  %v6910_v5 = vld [vmem:[%s9716_s5 + $0x1c] ss:$12 sps:$4 sm:$0xff]   ;;  %v7016_v34 = vld [vmem:[%s9718_s7 + $0x3c0] ss:$48 sps:$4 sm:$0xff]   ;;  %v7024_v35 = vld [vmem:[%s9718_s7 + $0x424] ss:$48 sps:$4 sm:$0xff]  }
 0x274   :  { %3126 = vmatprep.subr.bf16.mxu1 %v6907_v36  ;;  %v7022_v36 = vld [vmem:[%s9718_s7 + $0x420] ss:$48 sps:$4 sm:$0xff]   ;;  %v7030_v37 = vld [vmem:[%s9718_s7 + $0x484] ss:$48 sps:$4 sm:$0xff]  }
 0x275   :  { %v2330_v40 = vadd.f32 %v8505_v27, %v2290_v39  ;;  %v6908_v27 = vld [vmem:[%s9716_s5 + $0x18] ss:$12 sps:$4 sm:$0xff]   ;;  %5020 = vmatpush1.bf16.msra.mxu0 %v6998_v14  ;;  %v7028_v39 = vld [vmem:[%s9718_s7 + $0x480] ss:$48 sps:$4 sm:$0xff]  }
 0x276   :  { %5021 = vmatprep.subr.bf16.mxu0 %v7006_v28  ;;  %v7042_v26 = vld [vmem:[%s9718_s7 + $0x544] ss:$48 sps:$4 sm:$0xff]   ;;  %v7040_v14 = vld [vmem:[%s9718_s7 + $0x540] ss:$48 sps:$4 sm:$0xff]   ;;  %v7013_v28 = vld [vmem:[%s9718_s7 + $0x368] ss:$48 sps:$4 sm:$0xff]  }
 0x277   :  { %v2370_v41 = vadd.f32 %v8535_v16, %v2330_v40  ;;  %v6913_v16 = vld [vmem:[%s9716_s5 + $0x34] ss:$12 sps:$4 sm:$0xff]  }
 0x278   :  { %v7036_v40 = vld [vmem:[%s9718_s7 + $0x4e4] ss:$48 sps:$4 sm:$0xff]  }
 0x279   :  { %v2410_v42 = vadd.f32 %v8537_v45, %v2370_v41  ;;  %v6911_v45 = vld [vmem:[%s9716_s5 + $0x30] ss:$12 sps:$4 sm:$0xff]   ;;  %5022 = vmatpush1.bf16.msra.mxu0 %v7004_v30 }
 0x27a   :  { %5023 = vmatprep.subr.bf16.mxu0 %v7012_v31  ;;  %v7034_v41 = vld [vmem:[%s9718_s7 + $0x4e0] ss:$48 sps:$4 sm:$0xff]   ;;  %v7021_v30 = vld [vmem:[%s9718_s7 + $0x3cc] ss:$48 sps:$4 sm:$0xff]   ;;  %v7048_v31 = vld [vmem:[%s9718_s7 + $0x5a4] ss:$48 sps:$4 sm:$0xff]  }
 0x27b   :  { %v2450_v43 = vadd.f32 %v8554_v52, %v2410_v42  ;;  %v6925_v52 = vld [vmem:[%s9716_s5 + $0x94] ss:$12 sps:$4 sm:$0xff]  }
 0x27c   :  { %v2509_v42 = vld [vmem:[%s9715_s4] sm:$0x3] }
 0x27d   :  { %v2457_v29 = vmax.f32 %v2450_v43, 0.0  ;;  %5024 = vmatpush1.bf16.msra.mxu0 %v7010_v32  ;;  %v2514_v43 = vrot.slane %v2509_v42, %v8559_v58  ;;  %v7046_v32 = vld [vmem:[%s9718_s7 + $0x5a0] ss:$48 sps:$4 sm:$0xff]  }
 0x27e   :  { %5025 = vmatprep.subr.bf16.mxu0 %v7018_v33  ;;  %v7019_v33 = vld [vmem:[%s9718_s7 + $0x3c8] ss:$48 sps:$4 sm:$0xff]  }
 0x27f   :  { %v2460_v46 = vpack.c.bf16 %v2457_v29, %v2457_v29  ;;  %v2518_v29 = vrot.slane %v2509_v42, %v8565_v60  ;;  %v7045_v42 = vld [vmem:[%s9718_s7 + $0x54c] ss:$48 sps:$4 sm:$0xff]  }
 0x281   :  { %2835 = vmatmul.mubr.bf16.vlgmr.msra.gmra.mrb[20].mxu1 %v2460_v46  ;;  %5026 = vmatpush1.bf16.msra.mxu0 %v7016_v34  ;;  %v7027_v34 = vld [vmem:[%s9718_s7 + $0x42c] ss:$48 sps:$4 sm:$0xff]  }
 0x282   :  { %3127 = vmatpush1.bf16.msra.mxu1 %v6905_v44  ;;  %5027 = vmatprep.subr.bf16.mxu0 %v7024_v35  ;;  %v7054_v35 = vld [vmem:[%s9718_s7 + $0x604] ss:$48 sps:$4 sm:$0xff]  }
 0x283   :  { %3128 = vmatprep.subr.bf16.mxu1 %v6910_v5 }
 0x285   :  { %5028 = vmatpush1.bf16.msra.mxu0 %v7022_v36  ;;  %v7025_v36 = vld [vmem:[%s9718_s7 + $0x428] ss:$48 sps:$4 sm:$0xff]  }
 0x286   :  { %3129 = vmatpush1.bf16.msra.mxu1 %v6908_v27  ;;  %5029 = vmatprep.subr.bf16.mxu0 %v7030_v37  ;;  %v7033_v37 = vld [vmem:[%s9718_s7 + $0x48c] ss:$48 sps:$4 sm:$0xff]  }
 0x287   :  { %3130 = vmatprep.subr.bf16.mxu1 %v6913_v16 }
 0x289   :  { %5030 = vmatpush1.bf16.msra.mxu0 %v7028_v39  ;;  %v7031_v39 = vld [vmem:[%s9718_s7 + $0x488] ss:$48 sps:$4 sm:$0xff]  }
 0x28a   :  { %3131 = vmatpush1.bf16.msra.mxu1 %v6911_v45  ;;  %5031 = vmatprep.subr.bf16.mxu0 %v7036_v40  ;;  %v7039_v40 = vld [vmem:[%s9718_s7 + $0x4ec] ss:$48 sps:$4 sm:$0xff]  }
 0x28b   :  { %3132 = vmatprep.subr.bf16.mxu1 %v6916_v47 }
 0x28d   :  { %5032 = vmatpush1.bf16.msra.mxu0 %v7034_v41  ;;  %v7037_v41 = vld [vmem:[%s9718_s7 + $0x4e8] ss:$48 sps:$4 sm:$0xff]  }
 0x28e   :  { %3133 = vmatpush1.bf16.msra.mxu1 %v6914_v48  ;;  %v6943_v48 = vld [vmem:[%s9716_s5 + $0x8] ss:$12 sps:$4 sm:$0xff]   ;;  %5033 = vmatprep.subr.bf16.mxu0 %v7042_v26  ;;  %v7099_v26 = vld [vmem:[%s9718_s7 + $0x8ac] ss:$48 sps:$4 sm:$0xff]  }
 0x28f   :  { %3134 = vmatprep.subr.bf16.mxu1 %v6919_v38 }
 0x291   :  { %5034 = vmatpush1.bf16.msra.mxu0 %v7040_v14  ;;  %v7094_v14 = vld [vmem:[%s9718_s7 + $0x8a0] ss:$48 sps:$4 sm:$0xff]  }
 0x292   :  { %3135 = vmatpush1.bf16.msra.mxu1 %v6917_v49  ;;  %5035 = vmatprep.subr.bf16.mxu0 %v7048_v31  ;;  %v7105_v31 = vld [vmem:[%s9718_s7 + $0x1c] ss:$48 sps:$4 sm:$0xff]  }
 0x293   :  { %3136 = vmatprep.subr.bf16.mxu1 %v6922_v50  ;;  %v6944_v50 = vld [vmem:[%s9716_s5 + $0x20] ss:$12 sps:$4 sm:$0xff]  }
 0x295   :  { %5036 = vmatpush1.bf16.msra.mxu0 %v7046_v32 }
 0x296   :  { %3137 = vmatpush1.bf16.msra.mxu1 %v6920_v51  ;;  %v6945_v51 = vld [vmem:[%s9716_s5 + $0x38] ss:$12 sps:$4 sm:$0xff]   ;;  %5046 = vmatprep.subr.bf16.mxu0 %v7054_v35 }
 0x297   :  { %3138 = vmatprep.subr.bf16.mxu1 %v6925_v52  ;;  %v6946_v52 = vld [vmem:[%s9716_s5 + $0x50] ss:$12 sps:$4 sm:$0xff]  }
 0x29a   :  { %3139 = vmatpush1.bf16.msra.mxu1 %v6923_v53  ;;  %v6947_v53 = vld [vmem:[%s9716_s5 + $0x68] ss:$12 sps:$4 sm:$0xff]  }
 0x29b   :  { %3140 = vmatprep.subr.bf16.mxu1 %v6928_v54  ;;  %v6948_v54 = vld [vmem:[%s9716_s5 + $0x80] ss:$12 sps:$4 sm:$0xff]  }
 0x29e   :  { %3141 = vmatpush1.bf16.msra.mxu1 %v6926_v55  ;;  %v6949_v55 = vld [vmem:[%s9716_s5 + $0x98] ss:$12 sps:$4 sm:$0xff]  }
 0x29f   :  { %3142 = vmatprep.subr.bf16.mxu1 %v6931_v56  ;;  %v6950_v56 = vld [vmem:[%s9716_s5 + $0xb0] ss:$12 sps:$4 sm:$0xff]  }
 0x2a2   :  { %3143 = vmatpush1.bf16.msra.mxu1 %v6929_v59  ;;  %v6951_v59 = vld [vmem:[%s9716_s5 + $0xc8] ss:$12 sps:$4 sm:$0xff]  }
 0x2a3   :  { %3144 = vmatprep.subr.bf16.mxu1 %v6934_v61  ;;  %v6952_v61 = vld [vmem:[%s9716_s5 + $0xe0] ss:$12 sps:$4 sm:$0xff]  }
 0x2a6   :  { %3145 = vmatpush1.bf16.msra.mxu1 %v6932_v62  ;;  %v6953_v62 = vld [vmem:[%s9716_s5 + $0xf8] ss:$12 sps:$4 sm:$0xff]  }
 0x2a7   :  { %3146 = vmatprep.subr.bf16.mxu1 %v6937_v63  ;;  %v6954_v63 = vld [vmem:[%s9716_s5 + $0x110] ss:$12 sps:$4 sm:$0xff]  }
 0x2aa   :  { %3147 = vmatpush1.bf16.msra.mxu1 %v6935_v0  ;;  %v6955_v0 = vld [vmem:[%s9716_s5 + $0x128] ss:$0 sps:$4 sm:$0xff]  }
 0x2ab   :  { %3148 = vmatprep.subr.bf16.mxu1 %v6940_v1  ;;  %v3124_v1 = vsel %vm3116_vm2, %v6955_v0, 0  ;;  %v7066_v0 = vld [vmem:[%s9718_s7 + $0x6c4] ss:$48 sps:$4 sm:$0xff]  }
 0x2ae   :  { %3149 = vmatpush1.bf16.msra.mxu1 %v6938_v2  ;;  %v6961_v2 = vld [vmem:[%s9718_s7 + $0xc] ss:$48 sps:$4 sm:$0xff]  }
 0x2af   :  { %5975 = vmatprep.subr.msk.bf16.mxu1 %vm3116_vm2, %v5973_v6  ;;  %v6967_v6 = vld [vmem:[%s9718_s7 + $0x6c] ss:$48 sps:$4 sm:$0xff]  }
 0x2b2   :  { %3151 = vmatpush1.bf16.msra.mxu1 %v3118_v8  ;;  %v6973_v8 = vld [vmem:[%s9718_s7 + $0xcc] ss:$48 sps:$4 sm:$0xff]  }
 0x2b3   :  { %3167 = vmatprep.subr.bf16.mxu1 %v7460_v19 }
 0x354   :  { %v2836_v44 = vpop.f32.mrb[20].mxu1 }
 0x355   :  { %v6392_v46 = vadd.f32 %v2836_v44, %v2514_v43  ;;  %v2838_v5 = vpop.f32.mrb[21].mxu1  ;;  %v7043_v43 = vld [vmem:[%s9718_s7 + $0x548] ss:$48 sps:$4 sm:$0xff]  }
 0x356   :  { %v6393_v27 = vadd.f32 %v2838_v5, %v2518_v29  ;;  %v2840_v16 = vpop.f32.mrb[22].mxu1  ;;  %v7051_v29 = vld [vmem:[%s9718_s7 + $0x5ac] ss:$48 sps:$4 sm:$0xff]   ;;  %v7049_v44 = vld [vmem:[%s9718_s7 + $0x5a8] ss:$48 sps:$4 sm:$0xff]  }
 0x357   :  { %v2841_v45 = vpop.f32.mrb[23].mxu1  ;;  %v2843_v49 = vpack.c.bf16 %v6392_v46, %v6392_v46  ;;  %v8961_v5 = vld [vmem:[%s9717_s6] sm:$0x7] }
 0x358   :  { %v2844_v47 = vpack.c.bf16 %v6393_v27, %v6393_v27  ;;  %v6273_v38 = vpack.c.bf16 %v6393_v27, %v6392_v46  ;;  %v7057_v46 = vld [vmem:[%s9718_s7 + $0x60c] ss:$48 sps:$4 sm:$0xff]   ;;  %v2900_v27 = vrot.slane %v8961_v5, %v8559_v58  ;;  %v2904_v16 = vrot.slane %v8961_v5, %v8565_v60 }
 0x359   :  { %v2908_v32 = vrot.slane %v8961_v5, %v8607_v25  ;;  %v7114_v5 = vld [vmem:[%s9718_s7 + $0xd4] ss:$48 sps:$4 sm:$0xff]  }
 0x35a   :  { %5976 = vmatprep.mubr.msk.bf16.mxu1 %vm3112_vm5, %v2844_v47  ;;  %5518 = vst.msk [vmem:[#allocation2] sm:$0x77] %vm5517_vm6, %v6273_v38 }
 0x35b   :  { %3159 = vmatmul.mubr.bf16.vlgmr.msra.gmra.mrb[24].mxu1 %v2843_v49 }
 0x35c   :  { %3168 = vmatpush1.bf16.msra.mxu1 %v6943_v48  ;;  %5977 = vmatprep.mubr.msk.bf16.mxu1 %vm3112_vm5, %v2844_v47 }
 0x35d   :  { %3169 = vmatprep.subr.bf16.mxu1 %v7460_v19 }
 0x360   :  { %3170 = vmatpush1.bf16.msra.mxu1 %v6944_v50 }
 0x361   :  { %3171 = vmatprep.subr.bf16.mxu1 %v7460_v19 }
 0x364   :  { %3172 = vmatpush1.bf16.msra.mxu1 %v6945_v51 }
 0x365   :  { %3173 = vmatprep.subr.bf16.mxu1 %v7460_v19 }
 0x368   :  { %3174 = vmatpush1.bf16.msra.mxu1 %v6946_v52 }
 0x369   :  { %3175 = vmatprep.subr.bf16.mxu1 %v7460_v19 }
 0x36c   :  { %3176 = vmatpush1.bf16.msra.mxu1 %v6947_v53 }
 0x36d   :  { %3177 = vmatprep.subr.bf16.mxu1 %v7460_v19 }
 0x370   :  { %3178 = vmatpush1.bf16.msra.mxu1 %v6948_v54  ;;  %v7052_v54 = vld [vmem:[%s9718_s7 + $0x600] ss:$48 sps:$4 sm:$0xff]  }
 0x371   :  { %3179 = vmatprep.subr.bf16.mxu1 %v7460_v19 }
 0x374   :  { %3180 = vmatpush1.bf16.msra.mxu1 %v6949_v55  ;;  %v7055_v55 = vld [vmem:[%s9718_s7 + $0x608] ss:$48 sps:$4 sm:$0xff]  }
 0x375   :  { %3181 = vmatprep.subr.bf16.mxu1 %v7460_v19 }
 0x378   :  { %3182 = vmatpush1.bf16.msra.mxu1 %v6950_v56 }
 0x379   :  { %3183 = vmatprep.subr.bf16.mxu1 %v7460_v19 }
 0x37c   :  { %3184 = vmatpush1.bf16.msra.mxu1 %v6951_v59  ;;  %v7060_v59 = vld [vmem:[%s9718_s7 + $0x664] ss:$48 sps:$4 sm:$0xff]  }
 0x37d   :  { %3185 = vmatprep.subr.bf16.mxu1 %v7460_v19 }
 0x380   :  { %3186 = vmatpush1.bf16.msra.mxu1 %v6952_v61  ;;  %v7063_v61 = vld [vmem:[%s9718_s7 + $0x66c] ss:$48 sps:$4 sm:$0xff]  }
 0x381   :  { %3187 = vmatprep.subr.bf16.mxu1 %v7460_v19 }
 0x384   :  { %3188 = vmatpush1.bf16.msra.mxu1 %v6953_v62  ;;  %v7058_v62 = vld [vmem:[%s9718_s7 + $0x660] ss:$48 sps:$4 sm:$0xff]  }
 0x385   :  { %3189 = vmatprep.subr.bf16.mxu1 %v7460_v19 }
 0x388   :  { %3190 = vmatpush1.bf16.msra.mxu1 %v6954_v63  ;;  %v7061_v63 = vld [vmem:[%s9718_s7 + $0x668] ss:$48 sps:$4 sm:$0xff]  }
 0x389   :  { %3191 = vmatprep.subr.bf16.mxu1 %v7460_v19 }
 0x38c   :  { %3192 = vmatpush1.bf16.msra.mxu1 %v3124_v1  ;;  %v7069_v1 = vld [vmem:[%s9718_s7 + $0x6cc] ss:$48 sps:$4 sm:$0xff]  }
 0x38d   :  { %5087 = vmatprep.subr.bf16.mxu1 %v6961_v2  ;;  %v7064_v2 = vld [vmem:[%s9718_s7 + $0x6c0] ss:$48 sps:$4 sm:$0xff]  }
 0x38f   :  { %3200 = vmatmul.mubr.bf16.vlgmr.msra.gmra.mrb[28].mxu1 %v2843_v49 }
 0x390   :  { %5088 = vmatpush1.bf16.msra.mxu1 %v6959_v4  ;;  %v7067_v4 = vld [vmem:[%s9718_s7 + $0x6c8] ss:$48 sps:$4 sm:$0xff]  }
 0x391   :  { %5089 = vmatprep.subr.bf16.mxu1 %v6967_v6  ;;  %v7072_v6 = vld [vmem:[%s9718_s7 + $0x724] ss:$48 sps:$4 sm:$0xff]  }
 0x394   :  { %5090 = vmatpush1.bf16.msra.mxu1 %v6965_v7  ;;  %v7075_v7 = vld [vmem:[%s9718_s7 + $0x72c] ss:$48 sps:$4 sm:$0xff]  }
 0x395   :  { %5091 = vmatprep.subr.bf16.mxu1 %v6973_v8  ;;  %v7070_v8 = vld [vmem:[%s9718_s7 + $0x720] ss:$48 sps:$4 sm:$0xff]  }
 0x398   :  { %5092 = vmatpush1.bf16.msra.mxu1 %v6971_v9  ;;  %v7073_v9 = vld [vmem:[%s9718_s7 + $0x728] ss:$48 sps:$4 sm:$0xff]  }
 0x399   :  { %5093 = vmatprep.subr.bf16.mxu1 %v6979_v10  ;;  %v7078_v10 = vld [vmem:[%s9718_s7 + $0x784] ss:$48 sps:$4 sm:$0xff]  }
 0x39c   :  { %5094 = vmatpush1.bf16.msra.mxu1 %v6977_v11  ;;  %v7081_v11 = vld [vmem:[%s9718_s7 + $0x78c] ss:$48 sps:$4 sm:$0xff]  }
 0x39d   :  { %5095 = vmatprep.subr.bf16.mxu1 %v6985_v12  ;;  %v7076_v12 = vld [vmem:[%s9718_s7 + $0x780] ss:$48 sps:$4 sm:$0xff]  }
 0x3a0   :  { %5096 = vmatpush1.bf16.msra.mxu1 %v6983_v13  ;;  %v7079_v13 = vld [vmem:[%s9718_s7 + $0x788] ss:$48 sps:$4 sm:$0xff]  }
 0x3a1   :  { %5097 = vmatprep.subr.bf16.mxu1 %v6991_v15  ;;  %v7084_v15 = vld [vmem:[%s9718_s7 + $0x7e4] ss:$48 sps:$4 sm:$0xff]  }
 0x3a4   :  { %5098 = vmatpush1.bf16.msra.mxu1 %v6989_v17  ;;  %v7087_v17 = vld [vmem:[%s9718_s7 + $0x7ec] ss:$48 sps:$4 sm:$0xff]  }
 0x3a5   :  { %5099 = vmatprep.subr.bf16.mxu1 %v6997_v18  ;;  %v7082_v18 = vld [vmem:[%s9718_s7 + $0x7e0] ss:$48 sps:$4 sm:$0xff]  }
 0x3a8   :  { %5100 = vmatpush1.bf16.msra.mxu1 %v6995_v20  ;;  %v7085_v20 = vld [vmem:[%s9718_s7 + $0x7e8] ss:$48 sps:$4 sm:$0xff]  }
 0x3a9   :  { %5101 = vmatprep.subr.bf16.mxu1 %v7003_v21  ;;  %v7090_v21 = vld [vmem:[%s9718_s7 + $0x844] ss:$48 sps:$4 sm:$0xff]  }
 0x3ac   :  { %5102 = vmatpush1.bf16.msra.mxu1 %v7001_v22  ;;  %v7093_v22 = vld [vmem:[%s9718_s7 + $0x84c] ss:$48 sps:$4 sm:$0xff]  }
 0x3ad   :  { %5103 = vmatprep.subr.bf16.mxu1 %v7009_v23  ;;  %v7088_v23 = vld [vmem:[%s9718_s7 + $0x840] ss:$48 sps:$4 sm:$0xff]  }
 0x3b0   :  { %5104 = vmatpush1.bf16.msra.mxu1 %v7007_v24  ;;  %v7091_v24 = vld [vmem:[%s9718_s7 + $0x848] ss:$48 sps:$4 sm:$0xff]  }
 0x3b1   :  { %5105 = vmatprep.subr.bf16.mxu1 %v7015_v3  ;;  %v7096_v3 = vld [vmem:[%s9718_s7 + $0x8a4] ss:$48 sps:$4 sm:$0xff]  }
 0x3b4   :  { %5106 = vmatpush1.bf16.msra.mxu1 %v7013_v28  ;;  %v7097_v28 = vld [vmem:[%s9718_s7 + $0x8a8] ss:$48 sps:$4 sm:$0xff]  }
 0x3b5   :  { %5107 = vmatprep.subr.bf16.mxu1 %v7021_v30  ;;  %v7102_v30 = vld [vmem:[%s9718_s7 + $0x14] ss:$48 sps:$4 sm:$0xff]  }
 0x3b8   :  { %5108 = vmatpush1.bf16.msra.mxu1 %v7019_v33 }
 0x3b9   :  { %5109 = vmatprep.subr.bf16.mxu1 %v7027_v34 }
 0x3bc   :  { %5110 = vmatpush1.bf16.msra.mxu1 %v7025_v36 }
 0x3bd   :  { %5111 = vmatprep.subr.bf16.mxu1 %v7033_v37 }
 0x3c0   :  { %5112 = vmatpush1.bf16.msra.mxu1 %v7031_v39 }
 0x3c1   :  { %5113 = vmatprep.subr.bf16.mxu1 %v7039_v40  ;;  %v7100_v40 = vld [vmem:[%s9718_s7 + $0x10] ss:$48 sps:$4 sm:$0xff]  }
 0x3c4   :  { %5114 = vmatpush1.bf16.msra.mxu1 %v7037_v41  ;;  %v7103_v41 = vld [vmem:[%s9718_s7 + $0x18] ss:$48 sps:$4 sm:$0xff]  }
 0x3c5   :  { %5115 = vmatprep.subr.bf16.mxu1 %v7045_v42 }
 0x3c8   :  { %5116 = vmatpush1.bf16.msra.mxu1 %v7043_v43  ;;  %v7108_v43 = vld [vmem:[%s9718_s7 + $0x74] ss:$48 sps:$4 sm:$0xff]  }
 0x3c9   :  { %5117 = vmatprep.subr.bf16.mxu1 %v7051_v29  ;;  %v7111_v29 = vld [vmem:[%s9718_s7 + $0x7c] ss:$48 sps:$4 sm:$0xff]  }
 0x3cc   :  { %5118 = vmatpush1.bf16.msra.mxu1 %v7049_v44  ;;  %v7106_v44 = vld [vmem:[%s9718_s7 + $0x70] ss:$48 sps:$4 sm:$0xff]  }
 0x3cd   :  { %5128 = vmatprep.subr.bf16.mxu1 %v7057_v46  ;;  %v7109_v46 = vld [vmem:[%s9718_s7 + $0x78] ss:$48 sps:$4 sm:$0xff]  }
 0x42e   :  { %v3160_v45 = vpop.f32.mrb[24].mxu1 }
 0x42f   :  { %v3161_v47 = vadd.f32 %v3160_v45, %v2900_v27  ;;  %v3162_v48 = vpop.f32.mrb[25].mxu1  ;;  %v7117_v27 = vld [vmem:[%s9718_s7 + $0xdc] ss:$48 sps:$4 sm:$0xff]   ;;  %v7115_v45 = vld [vmem:[%s9718_s7 + $0xd8] ss:$48 sps:$4 sm:$0xff]  }
 0x430   :  { %v3163_v38 = vadd.f32 %v3162_v48, %v2904_v16  ;;  %v3164_v49 = vpop.f32.mrb[26].mxu1  ;;  %v7112_v16 = vld [vmem:[%s9718_s7 + $0xd0] ss:$48 sps:$4 sm:$0xff]   ;;  %v7123_v48 = vld [vmem:[%s9718_s7 + $0x13c] ss:$48 sps:$4 sm:$0xff]  }
 0x431   :  { %v3207_v50 = vmax.f32 %v3161_v47, 0.0  ;;  %v3165_v51 = vpop.f32.mrb[27].mxu1  ;;  %v7120_v47 = vld [vmem:[%s9718_s7 + $0x134] ss:$48 sps:$4 sm:$0xff]   ;;  %v7121_v49 = vld [vmem:[%s9718_s7 + $0x138] ss:$48 sps:$4 sm:$0xff]  }
 0x432   :  { %v3208_v52 = vmax.f32 %v3163_v38, 0.0  ;;  %v7118_v38 = vld [vmem:[%s9718_s7 + $0x130] ss:$48 sps:$4 sm:$0xff]   ;;  %v7129_v51 = vld [vmem:[%s9718_s7 + $0x19c] ss:$48 sps:$4 sm:$0xff]  }
 0x433   :  { %v8975_v56 = vpack.c.bf16 %v3207_v50, %v3207_v50  ;;  %v7126_v50 = vld [vmem:[%s9718_s7 + $0x194] ss:$48 sps:$4 sm:$0xff]  }
 0x434   :  { %v8967_v53 = vpack.c.bf16 %v3208_v52, %v3208_v52  ;;  %v7124_v52 = vld [vmem:[%s9718_s7 + $0x190] ss:$48 sps:$4 sm:$0xff]  }
 0x436   :  { %5037 = vmatprep.mubr.bf16.mxu0 %v8967_v53  ;;  %5119 = vmatprep.mubr.bf16.mxu1 %v8967_v53 }
 0x437   :  { %5038 = vmatmul.mubr.bf16.vlgmr.msra.gmra.mrb[8].mxu0 %v8975_v56  ;;  %5120 = vmatmul.mubr.bf16.vlgmr.msra.gmra.mrb[32].mxu1 %v8975_v56 }
 0x438   :  { %5047 = vmatpush1.bf16.msra.mxu0 %v7052_v54  ;;  %5129 = vmatpush1.bf16.msra.mxu1 %v7055_v55  ;;  %v7127_v54 = vld [vmem:[%s9718_s7 + $0x198] ss:$48 sps:$4 sm:$0xff]   ;;  %v7132_v55 = vld [vmem:[%s9718_s7 + $0x1f4] ss:$48 sps:$4 sm:$0xff]  }
 0x439   :  { %5048 = vmatprep.subr.bf16.mxu0 %v7060_v59  ;;  %5130 = vmatprep.subr.bf16.mxu1 %v7063_v61  ;;  %v7135_v59 = vld [vmem:[%s9718_s7 + $0x1fc] ss:$48 sps:$4 sm:$0xff]   ;;  %v7130_v61 = vld [vmem:[%s9718_s7 + $0x1f0] ss:$48 sps:$4 sm:$0xff]  }
 0x43a   :  { %5078 = vmatprep.mubr.bf16.mxu0 %v7460_v19  ;;  %5160 = vmatprep.mubr.bf16.mxu1 %v7460_v19 }
 0x43c   :  { %5049 = vmatpush1.bf16.msra.mxu0 %v7058_v62  ;;  %5131 = vmatpush1.bf16.msra.mxu1 %v7061_v63  ;;  %v7133_v62 = vld [vmem:[%s9718_s7 + $0x1f8] ss:$48 sps:$4 sm:$0xff]   ;;  %v7138_v63 = vld [vmem:[%s9718_s7 + $0x254] ss:$48 sps:$4 sm:$0xff]  }
 0x43d   :  { %5050 = vmatprep.subr.bf16.mxu0 %v7066_v0  ;;  %5132 = vmatprep.subr.bf16.mxu1 %v7069_v1  ;;  %v7141_v0 = vld [vmem:[%s9718_s7 + $0x25c] ss:$48 sps:$4 sm:$0xff]   ;;  %v7136_v1 = vld [vmem:[%s9718_s7 + $0x250] ss:$48 sps:$4 sm:$0xff]  }
 0x440   :  { %5051 = vmatpush1.bf16.msra.mxu0 %v7064_v2  ;;  %5133 = vmatpush1.bf16.msra.mxu1 %v7067_v4  ;;  %v7139_v2 = vld [vmem:[%s9718_s7 + $0x258] ss:$48 sps:$4 sm:$0xff]   ;;  %v7144_v4 = vld [vmem:[%s9718_s7 + $0x2b4] ss:$48 sps:$4 sm:$0xff]  }
 0x441   :  { %5052 = vmatprep.subr.bf16.mxu0 %v7072_v6  ;;  %5134 = vmatprep.subr.bf16.mxu1 %v7075_v7  ;;  %v7147_v6 = vld [vmem:[%s9718_s7 + $0x2bc] ss:$48 sps:$4 sm:$0xff]   ;;  %v7142_v7 = vld [vmem:[%s9718_s7 + $0x2b0] ss:$48 sps:$4 sm:$0xff]  }
 0x444   :  { %5053 = vmatpush1.bf16.msra.mxu0 %v7070_v8  ;;  %5135 = vmatpush1.bf16.msra.mxu1 %v7073_v9  ;;  %v7145_v8 = vld [vmem:[%s9718_s7 + $0x2b8] ss:$48 sps:$4 sm:$0xff]   ;;  %v7150_v9 = vld [vmem:[%s9718_s7 + $0x314] ss:$48 sps:$4 sm:$0xff]  }
 0x445   :  { %5054 = vmatprep.subr.bf16.mxu0 %v7078_v10  ;;  %5136 = vmatprep.subr.bf16.mxu1 %v7081_v11  ;;  %v7153_v10 = vld [vmem:[%s9718_s7 + $0x31c] ss:$48 sps:$4 sm:$0xff]   ;;  %v7148_v11 = vld [vmem:[%s9718_s7 + $0x310] ss:$48 sps:$4 sm:$0xff]  }
 0x448   :  { %5055 = vmatpush1.bf16.msra.mxu0 %v7076_v12  ;;  %5137 = vmatpush1.bf16.msra.mxu1 %v7079_v13  ;;  %v7151_v12 = vld [vmem:[%s9718_s7 + $0x318] ss:$48 sps:$4 sm:$0xff]   ;;  %v7156_v13 = vld [vmem:[%s9718_s7 + $0x374] ss:$48 sps:$4 sm:$0xff]  }
 0x449   :  { %5056 = vmatprep.subr.bf16.mxu0 %v7084_v15  ;;  %5138 = vmatprep.subr.bf16.mxu1 %v7087_v17  ;;  %v7159_v15 = vld [vmem:[%s9718_s7 + $0x37c] ss:$48 sps:$4 sm:$0xff]   ;;  %v7154_v17 = vld [vmem:[%s9718_s7 + $0x370] ss:$48 sps:$4 sm:$0xff]  }
 0x44c   :  { %5057 = vmatpush1.bf16.msra.mxu0 %v7082_v18  ;;  %5139 = vmatpush1.bf16.msra.mxu1 %v7085_v20  ;;  %v7157_v18 = vld [vmem:[%s9718_s7 + $0x378] ss:$48 sps:$4 sm:$0xff]   ;;  %v7162_v20 = vld [vmem:[%s9718_s7 + $0x3d4] ss:$48 sps:$4 sm:$0xff]  }
 0x44d   :  { %5058 = vmatprep.subr.bf16.mxu0 %v7090_v21  ;;  %5140 = vmatprep.subr.bf16.mxu1 %v7093_v22  ;;  %v7165_v21 = vld [vmem:[%s9718_s7 + $0x3dc] ss:$48 sps:$4 sm:$0xff]   ;;  %v7160_v22 = vld [vmem:[%s9718_s7 + $0x3d0] ss:$48 sps:$4 sm:$0xff]  }
 0x450   :  { %5059 = vmatpush1.bf16.msra.mxu0 %v7088_v23  ;;  %5141 = vmatpush1.bf16.msra.mxu1 %v7091_v24  ;;  %v7163_v23 = vld [vmem:[%s9718_s7 + $0x3d8] ss:$48 sps:$4 sm:$0xff]   ;;  %v7168_v24 = vld [vmem:[%s9718_s7 + $0x434] ss:$48 sps:$4 sm:$0xff]  }
 0x451   :  { %5060 = vmatprep.subr.bf16.mxu0 %v7096_v3  ;;  %5142 = vmatprep.subr.bf16.mxu1 %v7099_v26  ;;  %v7171_v3 = vld [vmem:[%s9718_s7 + $0x43c] ss:$48 sps:$4 sm:$0xff]   ;;  %v7166_v26 = vld [vmem:[%s9718_s7 + $0x430] ss:$48 sps:$4 sm:$0xff]  }
 0x454   :  { %5061 = vmatpush1.bf16.msra.mxu0 %v7094_v14  ;;  %5143 = vmatpush1.bf16.msra.mxu1 %v7097_v28  ;;  %v7169_v14 = vld [vmem:[%s9718_s7 + $0x438] ss:$48 sps:$4 sm:$0xff]   ;;  %v7174_v28 = vld [vmem:[%s9718_s7 + $0x494] ss:$48 sps:$4 sm:$0xff]  }
 0x455   :  { %5169 = vmatprep.subr.bf16.mxu0 %v7102_v30  ;;  %5251 = vmatprep.subr.bf16.mxu1 %v7105_v31  ;;  %v7177_v30 = vld [vmem:[%s9718_s7 + $0x49c] ss:$48 sps:$4 sm:$0xff]   ;;  %v7172_v31 = vld [vmem:[%s9718_s7 + $0x490] ss:$48 sps:$4 sm:$0xff]  }
 0x462   :  { %v3201_v33 = vpop.f32.mrb[28].mxu1 }
 0x463   :  { %v3202_v34 = vadd.f32 %v3201_v33, %v2908_v32  ;;  %v3203_v35 = vpop.f32.mrb[29].mxu1  ;;  %v7175_v32 = vld [vmem:[%s9718_s7 + $0x498] ss:$48 sps:$4 sm:$0xff]   ;;  %v7180_v33 = vld [vmem:[%s9718_s7 + $0x4f4] ss:$48 sps:$4 sm:$0xff]  }
 0x464   :  { %v3204_v36 = vpop.f32.mrb[30].mxu1  ;;  %v7178_v35 = vld [vmem:[%s9718_s7 + $0x4f0] ss:$48 sps:$4 sm:$0xff]  }
 0x465   :  { %v3209_v37 = vmax.f32 %v3202_v34, 0.0  ;;  %v3205_v39 = vpop.f32.mrb[31].mxu1  ;;  %v7183_v34 = vld [vmem:[%s9718_s7 + $0x4fc] ss:$48 sps:$4 sm:$0xff]   ;;  %v7181_v36 = vld [vmem:[%s9718_s7 + $0x4f8] ss:$48 sps:$4 sm:$0xff]  }
 0x466   :  { %v7189_v39 = vld [vmem:[%s9718_s7 + $0x55c] ss:$48 sps:$4 sm:$0xff]  }
 0x467   :  { %v9081_v42 = vpack.c.bf16 %v3209_v37, %v3209_v37  ;;  %v7186_v37 = vld [vmem:[%s9718_s7 + $0x554] ss:$48 sps:$4 sm:$0xff]  }
 0x469   :  { %5079 = vmatmul.mubr.bf16.vlgmr.msra.gmra.mrb[8].mxu0 %v9081_v42  ;;  %5161 = vmatmul.mubr.bf16.vlgmr.msra.gmra.mrb[32].mxu1 %v9081_v42 }
 0x46a   :  { %5170 = vmatpush1.bf16.msra.mxu0 %v7100_v40  ;;  %5252 = vmatpush1.bf16.msra.mxu1 %v7103_v41  ;;  %v7184_v40 = vld [vmem:[%s9718_s7 + $0x550] ss:$48 sps:$4 sm:$0xff]   ;;  %v7187_v41 = vld [vmem:[%s9718_s7 + $0x558] ss:$48 sps:$4 sm:$0xff]  }
 0x46b   :  { %5201 = vmatprep.mubr.bf16.mxu0 %v8967_v53  ;;  %5283 = vmatprep.mubr.bf16.mxu1 %v8967_v53 }
 0x46c   :  { %5171 = vmatprep.subr.bf16.mxu0 %v7108_v43  ;;  %5253 = vmatprep.subr.bf16.mxu1 %v7111_v29  ;;  %v7192_v43 = vld [vmem:[%s9718_s7 + $0x5b4] ss:$48 sps:$4 sm:$0xff]   ;;  %v7195_v29 = vld [vmem:[%s9718_s7 + $0x5bc] ss:$48 sps:$4 sm:$0xff]  }
 0x46e   :  { %5172 = vmatpush1.bf16.msra.mxu0 %v7106_v44  ;;  %5254 = vmatpush1.bf16.msra.mxu1 %v7109_v46  ;;  %v7190_v44 = vld [vmem:[%s9718_s7 + $0x5b0] ss:$48 sps:$4 sm:$0xff]   ;;  %v7193_v46 = vld [vmem:[%s9718_s7 + $0x5b8] ss:$48 sps:$4 sm:$0xff]  }
 0x46f   :  { %5173 = vmatprep.subr.bf16.mxu0 %v7114_v5  ;;  %5255 = vmatprep.subr.bf16.mxu1 %v7117_v27  ;;  %v7198_v5 = vld [vmem:[%s9718_s7 + $0x614] ss:$48 sps:$4 sm:$0xff]   ;;  %v7201_v27 = vld [vmem:[%s9718_s7 + $0x61c] ss:$48 sps:$4 sm:$0xff]  }
 0x472   :  { %5174 = vmatpush1.bf16.msra.mxu0 %v7112_v16  ;;  %5256 = vmatpush1.bf16.msra.mxu1 %v7115_v45  ;;  %v7196_v16 = vld [vmem:[%s9718_s7 + $0x610] ss:$48 sps:$4 sm:$0xff]   ;;  %v7199_v45 = vld [vmem:[%s9718_s7 + $0x618] ss:$48 sps:$4 sm:$0xff]  }
 0x473   :  { %5175 = vmatprep.subr.bf16.mxu0 %v7120_v47  ;;  %5257 = vmatprep.subr.bf16.mxu1 %v7123_v48  ;;  %v7204_v47 = vld [vmem:[%s9718_s7 + $0x674] ss:$48 sps:$4 sm:$0xff]   ;;  %v7207_v48 = vld [vmem:[%s9718_s7 + $0x67c] ss:$48 sps:$4 sm:$0xff]  }
 0x476   :  { %5176 = vmatpush1.bf16.msra.mxu0 %v7118_v38  ;;  %5258 = vmatpush1.bf16.msra.mxu1 %v7121_v49  ;;  %v7202_v38 = vld [vmem:[%s9718_s7 + $0x670] ss:$48 sps:$4 sm:$0xff]   ;;  %v7205_v49 = vld [vmem:[%s9718_s7 + $0x678] ss:$48 sps:$4 sm:$0xff]  }
 0x477   :  { %5177 = vmatprep.subr.bf16.mxu0 %v7126_v50  ;;  %5259 = vmatprep.subr.bf16.mxu1 %v7129_v51  ;;  %v7210_v50 = vld [vmem:[%s9718_s7 + $0x6d4] ss:$48 sps:$4 sm:$0xff]   ;;  %v7213_v51 = vld [vmem:[%s9718_s7 + $0x6dc] ss:$48 sps:$4 sm:$0xff]  }
 0x47a   :  { %5178 = vmatpush1.bf16.msra.mxu0 %v7124_v52  ;;  %5260 = vmatpush1.bf16.msra.mxu1 %v7127_v54  ;;  %v7208_v52 = vld [vmem:[%s9718_s7 + $0x6d0] ss:$48 sps:$4 sm:$0xff]   ;;  %v7211_v54 = vld [vmem:[%s9718_s7 + $0x6d8] ss:$48 sps:$4 sm:$0xff]  }
 0x47b   :  { %5179 = vmatprep.subr.bf16.mxu0 %v7132_v55  ;;  %5261 = vmatprep.subr.bf16.mxu1 %v7135_v59  ;;  %v7216_v55 = vld [vmem:[%s9718_s7 + $0x734] ss:$48 sps:$4 sm:$0xff]   ;;  %v7219_v59 = vld [vmem:[%s9718_s7 + $0x73c] ss:$48 sps:$4 sm:$0xff]  }
 0x47e   :  { %5180 = vmatpush1.bf16.msra.mxu0 %v7130_v61  ;;  %5262 = vmatpush1.bf16.msra.mxu1 %v7133_v62  ;;  %v7214_v61 = vld [vmem:[%s9718_s7 + $0x730] ss:$48 sps:$4 sm:$0xff]   ;;  %v7217_v62 = vld [vmem:[%s9718_s7 + $0x738] ss:$48 sps:$4 sm:$0xff]  }
 0x47f   :  { %5181 = vmatprep.subr.bf16.mxu0 %v7138_v63  ;;  %5263 = vmatprep.subr.bf16.mxu1 %v7141_v0  ;;  %v7222_v63 = vld [vmem:[%s9718_s7 + $0x794] ss:$48 sps:$4 sm:$0xff]   ;;  %v7225_v0 = vld [vmem:[%s9718_s7 + $0x79c] ss:$48 sps:$4 sm:$0xff]  }
 0x482   :  { %5182 = vmatpush1.bf16.msra.mxu0 %v7136_v1  ;;  %5264 = vmatpush1.bf16.msra.mxu1 %v7139_v2  ;;  %v7220_v1 = vld [vmem:[%s9718_s7 + $0x790] ss:$48 sps:$4 sm:$0xff]   ;;  %v7223_v2 = vld [vmem:[%s9718_s7 + $0x798] ss:$48 sps:$4 sm:$0xff]  }
 0x483   :  { %5183 = vmatprep.subr.bf16.mxu0 %v7144_v4  ;;  %5265 = vmatprep.subr.bf16.mxu1 %v7147_v6  ;;  %v7228_v4 = vld [vmem:[%s9718_s7 + $0x7f4] ss:$48 sps:$4 sm:$0xff]   ;;  %v7231_v6 = vld [vmem:[%s9718_s7 + $0x7fc] ss:$48 sps:$4 sm:$0xff]  }
 0x486   :  { %5184 = vmatpush1.bf16.msra.mxu0 %v7142_v7  ;;  %5266 = vmatpush1.bf16.msra.mxu1 %v7145_v8  ;;  %v7226_v7 = vld [vmem:[%s9718_s7 + $0x7f0] ss:$48 sps:$4 sm:$0xff]   ;;  %v7229_v8 = vld [vmem:[%s9718_s7 + $0x7f8] ss:$48 sps:$4 sm:$0xff]  }
 0x487   :  { %5185 = vmatprep.subr.bf16.mxu0 %v7150_v9  ;;  %5267 = vmatprep.subr.bf16.mxu1 %v7153_v10  ;;  %v7234_v9 = vld [vmem:[%s9718_s7 + $0x854] ss:$48 sps:$4 sm:$0xff]   ;;  %v7237_v10 = vld [vmem:[%s9718_s7 + $0x85c] ss:$48 sps:$4 sm:$0xff]  }
 0x48a   :  { %5186 = vmatpush1.bf16.msra.mxu0 %v7148_v11  ;;  %5268 = vmatpush1.bf16.msra.mxu1 %v7151_v12  ;;  %v7232_v11 = vld [vmem:[%s9718_s7 + $0x850] ss:$48 sps:$4 sm:$0xff]   ;;  %v7235_v12 = vld [vmem:[%s9718_s7 + $0x858] ss:$48 sps:$4 sm:$0xff]  }
 0x48b   :  { %5187 = vmatprep.subr.bf16.mxu0 %v7156_v13  ;;  %5269 = vmatprep.subr.bf16.mxu1 %v7159_v15  ;;  %v7240_v13 = vld [vmem:[%s9718_s7 + $0x8b4] ss:$48 sps:$4 sm:$0xff]   ;;  %v7243_v15 = vld [vmem:[%s9718_s7 + $0x8bc] ss:$48 sps:$4 sm:$0xff]  }
 0x48e   :  { %5188 = vmatpush1.bf16.msra.mxu0 %v7154_v17  ;;  %5270 = vmatpush1.bf16.msra.mxu1 %v7157_v18  ;;  %v7238_v17 = vld [vmem:[%s9718_s7 + $0x8b0] ss:$48 sps:$4 sm:$0xff]   ;;  %v7241_v18 = vld [vmem:[%s9718_s7 + $0x8b8] ss:$48 sps:$4 sm:$0xff]  }
 0x48f   :  { %5189 = vmatprep.subr.bf16.mxu0 %v7162_v20  ;;  %5271 = vmatprep.subr.bf16.mxu1 %v7165_v21  ;;  %v7246_v20 = vld [vmem:[%s9718_s7 + $0x24] ss:$48 sps:$4 sm:$0xff]   ;;  %v7249_v21 = vld [vmem:[%s9718_s7 + $0x2c] ss:$48 sps:$4 sm:$0xff]  }
 0x492   :  { %5190 = vmatpush1.bf16.msra.mxu0 %v7160_v22  ;;  %5272 = vmatpush1.bf16.msra.mxu1 %v7163_v23  ;;  %v7244_v22 = vld [vmem:[%s9718_s7 + $0x20] ss:$48 sps:$4 sm:$0xff]   ;;  %v7247_v23 = vld [vmem:[%s9718_s7 + $0x28] ss:$48 sps:$4 sm:$0xff]  }
 0x493   :  { %5191 = vmatprep.subr.bf16.mxu0 %v7168_v24  ;;  %5273 = vmatprep.subr.bf16.mxu1 %v7171_v3  ;;  %v7252_v24 = vld [vmem:[%s9718_s7 + $0x84] ss:$48 sps:$4 sm:$0xff]   ;;  %v7255_v3 = vld [vmem:[%s9718_s7 + $0x8c] ss:$48 sps:$4 sm:$0xff]  }
 0x496   :  { %5192 = vmatpush1.bf16.msra.mxu0 %v7166_v26  ;;  %5274 = vmatpush1.bf16.msra.mxu1 %v7169_v14  ;;  %v7250_v26 = vld [vmem:[%s9718_s7 + $0x80] ss:$48 sps:$4 sm:$0xff]   ;;  %v7253_v14 = vld [vmem:[%s9718_s7 + $0x88] ss:$48 sps:$4 sm:$0xff]  }
 0x497   :  { %5193 = vmatprep.subr.bf16.mxu0 %v7174_v28  ;;  %5275 = vmatprep.subr.bf16.mxu1 %v7177_v30  ;;  %v7258_v28 = vld [vmem:[%s9718_s7 + $0xe4] ss:$48 sps:$4 sm:$0xff]   ;;  %v7261_v30 = vld [vmem:[%s9718_s7 + $0xec] ss:$48 sps:$4 sm:$0xff]  }
 0x49a   :  { %5194 = vmatpush1.bf16.msra.mxu0 %v7172_v31  ;;  %5276 = vmatpush1.bf16.msra.mxu1 %v7175_v32  ;;  %v7256_v31 = vld [vmem:[%s9718_s7 + $0xe0] ss:$48 sps:$4 sm:$0xff]   ;;  %v7264_v32 = vld [vmem:[%s9718_s7 + $0x144] ss:$48 sps:$4 sm:$0xff]  }
 0x49b   :  { %5195 = vmatprep.subr.bf16.mxu0 %v7180_v33  ;;  %5277 = vmatprep.subr.bf16.mxu1 %v7183_v34  ;;  %v7267_v33 = vld [vmem:[%s9718_s7 + $0x14c] ss:$48 sps:$4 sm:$0xff]   ;;  %v7262_v34 = vld [vmem:[%s9718_s7 + $0x140] ss:$48 sps:$4 sm:$0xff]  }
 0x49e   :  { %5196 = vmatpush1.bf16.msra.mxu0 %v7178_v35  ;;  %5278 = vmatpush1.bf16.msra.mxu1 %v7181_v36  ;;  %v7265_v35 = vld [vmem:[%s9718_s7 + $0x148] ss:$48 sps:$4 sm:$0xff]   ;;  %v7270_v36 = vld [vmem:[%s9718_s7 + $0x1a4] ss:$48 sps:$4 sm:$0xff]  }
 0x49f   :  { %5197 = vmatprep.subr.bf16.mxu0 %v7186_v37  ;;  %5279 = vmatprep.subr.bf16.mxu1 %v7189_v39  ;;  %v7273_v37 = vld [vmem:[%s9718_s7 + $0x1ac] ss:$48 sps:$4 sm:$0xff]   ;;  %v7268_v39 = vld [vmem:[%s9718_s7 + $0x1a0] ss:$48 sps:$4 sm:$0xff]  }
 0x4a2   :  { %5198 = vmatpush1.bf16.msra.mxu0 %v7184_v40  ;;  %5280 = vmatpush1.bf16.msra.mxu1 %v7187_v41  ;;  %v7271_v40 = vld [vmem:[%s9718_s7 + $0x1a8] ss:$48 sps:$4 sm:$0xff]   ;;  %v7276_v41 = vld [vmem:[%s9718_s7 + $0x204] ss:$48 sps:$4 sm:$0xff]  }
 0x4a3   :  { %5199 = vmatprep.subr.bf16.mxu0 %v7192_v43  ;;  %5281 = vmatprep.subr.bf16.mxu1 %v7195_v29  ;;  %v7279_v43 = vld [vmem:[%s9718_s7 + $0x20c] ss:$48 sps:$4 sm:$0xff]   ;;  %v7274_v29 = vld [vmem:[%s9718_s7 + $0x200] ss:$48 sps:$4 sm:$0xff]  }
 0x4a6   :  { %5200 = vmatpush1.bf16.msra.mxu0 %v7190_v44  ;;  %5282 = vmatpush1.bf16.msra.mxu1 %v7193_v46  ;;  %v7277_v44 = vld [vmem:[%s9718_s7 + $0x208] ss:$48 sps:$4 sm:$0xff]   ;;  %v7282_v46 = vld [vmem:[%s9718_s7 + $0x264] ss:$48 sps:$4 sm:$0xff]  }
 0x4a7   :  { %5210 = vmatprep.subr.bf16.mxu0 %v7198_v5  ;;  %5292 = vmatprep.subr.bf16.mxu1 %v7201_v27  ;;  %v7285_v5 = vld [vmem:[%s9718_s7 + $0x26c] ss:$48 sps:$4 sm:$0xff]   ;;  %v7280_v27 = vld [vmem:[%s9718_s7 + $0x260] ss:$48 sps:$4 sm:$0xff]  }
 0x4a9   :  { %5202 = vmatmul.mubr.bf16.vlgmr.msra.gmra.mrb[12].mxu0 %v8975_v56  ;;  %5284 = vmatmul.mubr.bf16.vlgmr.msra.gmra.mrb[36].mxu1 %v8975_v56 }
 0x4aa   :  { %5211 = vmatpush1.bf16.msra.mxu0 %v7196_v16  ;;  %5293 = vmatpush1.bf16.msra.mxu1 %v7199_v45  ;;  %v7283_v16 = vld [vmem:[%s9718_s7 + $0x268] ss:$48 sps:$4 sm:$0xff]   ;;  %v7288_v45 = vld [vmem:[%s9718_s7 + $0x2c4] ss:$48 sps:$4 sm:$0xff]  }
 0x4ab   :  { %5212 = vmatprep.subr.bf16.mxu0 %v7204_v47  ;;  %5294 = vmatprep.subr.bf16.mxu1 %v7207_v48  ;;  %v7291_v47 = vld [vmem:[%s9718_s7 + $0x2cc] ss:$48 sps:$4 sm:$0xff]   ;;  %v7286_v48 = vld [vmem:[%s9718_s7 + $0x2c0] ss:$48 sps:$4 sm:$0xff]  }
 0x4ac   :  { %5242 = vmatprep.mubr.bf16.mxu0 %v7460_v19  ;;  %5324 = vmatprep.mubr.bf16.mxu1 %v7460_v19 }
 0x4ae   :  { %5213 = vmatpush1.bf16.msra.mxu0 %v7202_v38  ;;  %5295 = vmatpush1.bf16.msra.mxu1 %v7205_v49  ;;  %v7289_v38 = vld [vmem:[%s9718_s7 + $0x2c8] ss:$48 sps:$4 sm:$0xff]   ;;  %v7294_v49 = vld [vmem:[%s9718_s7 + $0x324] ss:$48 sps:$4 sm:$0xff]  }
 0x4af   :  { %5214 = vmatprep.subr.bf16.mxu0 %v7210_v50  ;;  %5296 = vmatprep.subr.bf16.mxu1 %v7213_v51  ;;  %v7297_v50 = vld [vmem:[%s9718_s7 + $0x32c] ss:$48 sps:$4 sm:$0xff]   ;;  %v7292_v51 = vld [vmem:[%s9718_s7 + $0x320] ss:$48 sps:$4 sm:$0xff]  }
 0x4b2   :  { %5215 = vmatpush1.bf16.msra.mxu0 %v7208_v52  ;;  %5297 = vmatpush1.bf16.msra.mxu1 %v7211_v54  ;;  %v7295_v52 = vld [vmem:[%s9718_s7 + $0x328] ss:$48 sps:$4 sm:$0xff]   ;;  %v7300_v54 = vld [vmem:[%s9718_s7 + $0x384] ss:$48 sps:$4 sm:$0xff]  }
 0x4b3   :  { %5216 = vmatprep.subr.bf16.mxu0 %v7216_v55  ;;  %5298 = vmatprep.subr.bf16.mxu1 %v7219_v59  ;;  %v7303_v55 = vld [vmem:[%s9718_s7 + $0x38c] ss:$48 sps:$4 sm:$0xff]   ;;  %v7298_v59 = vld [vmem:[%s9718_s7 + $0x380] ss:$48 sps:$4 sm:$0xff]  }
 0x4b6   :  { %5217 = vmatpush1.bf16.msra.mxu0 %v7214_v61  ;;  %5299 = vmatpush1.bf16.msra.mxu1 %v7217_v62  ;;  %v7301_v61 = vld [vmem:[%s9718_s7 + $0x388] ss:$48 sps:$4 sm:$0xff]   ;;  %v7306_v62 = vld [vmem:[%s9718_s7 + $0x3e4] ss:$48 sps:$4 sm:$0xff]  }
 0x4b7   :  { %5218 = vmatprep.subr.bf16.mxu0 %v7222_v63  ;;  %5300 = vmatprep.subr.bf16.mxu1 %v7225_v0  ;;  %v7309_v63 = vld [vmem:[%s9718_s7 + $0x3ec] ss:$48 sps:$4 sm:$0xff]   ;;  %v7304_v0 = vld [vmem:[%s9718_s7 + $0x3e0] ss:$48 sps:$4 sm:$0xff]  }
 0x4ba   :  { %5219 = vmatpush1.bf16.msra.mxu0 %v7220_v1  ;;  %5301 = vmatpush1.bf16.msra.mxu1 %v7223_v2  ;;  %v7307_v1 = vld [vmem:[%s9718_s7 + $0x3e8] ss:$48 sps:$4 sm:$0xff]   ;;  %v7312_v2 = vld [vmem:[%s9718_s7 + $0x444] ss:$48 sps:$4 sm:$0xff]  }
 0x4bb   :  { %5220 = vmatprep.subr.bf16.mxu0 %v7228_v4  ;;  %5302 = vmatprep.subr.bf16.mxu1 %v7231_v6  ;;  %v7315_v4 = vld [vmem:[%s9718_s7 + $0x44c] ss:$48 sps:$4 sm:$0xff]   ;;  %v7310_v6 = vld [vmem:[%s9718_s7 + $0x440] ss:$48 sps:$4 sm:$0xff]  }
 0x4be   :  { %5221 = vmatpush1.bf16.msra.mxu0 %v7226_v7  ;;  %5303 = vmatpush1.bf16.msra.mxu1 %v7229_v8  ;;  %v7313_v7 = vld [vmem:[%s9718_s7 + $0x448] ss:$48 sps:$4 sm:$0xff]   ;;  %v7318_v8 = vld [vmem:[%s9718_s7 + $0x4a4] ss:$48 sps:$4 sm:$0xff]  }
 0x4bf   :  { %5222 = vmatprep.subr.bf16.mxu0 %v7234_v9  ;;  %5304 = vmatprep.subr.bf16.mxu1 %v7237_v10  ;;  %v7321_v9 = vld [vmem:[%s9718_s7 + $0x4ac] ss:$48 sps:$4 sm:$0xff]   ;;  %v7316_v10 = vld [vmem:[%s9718_s7 + $0x4a0] ss:$48 sps:$4 sm:$0xff]  }
 0x4c2   :  { %5223 = vmatpush1.bf16.msra.mxu0 %v7232_v11  ;;  %5305 = vmatpush1.bf16.msra.mxu1 %v7235_v12  ;;  %v7319_v11 = vld [vmem:[%s9718_s7 + $0x4a8] ss:$48 sps:$4 sm:$0xff]   ;;  %v7324_v12 = vld [vmem:[%s9718_s7 + $0x504] ss:$48 sps:$4 sm:$0xff]  }
 0x4c3   :  { %5224 = vmatprep.subr.bf16.mxu0 %v7240_v13  ;;  %5306 = vmatprep.subr.bf16.mxu1 %v7243_v15  ;;  %v7327_v13 = vld [vmem:[%s9718_s7 + $0x50c] ss:$48 sps:$4 sm:$0xff]   ;;  %v7322_v15 = vld [vmem:[%s9718_s7 + $0x500] ss:$48 sps:$4 sm:$0xff]  }
 0x4c6   :  { %5225 = vmatpush1.bf16.msra.mxu0 %v7238_v17  ;;  %5307 = vmatpush1.bf16.msra.mxu1 %v7241_v18  ;;  %v7325_v17 = vld [vmem:[%s9718_s7 + $0x508] ss:$48 sps:$4 sm:$0xff]   ;;  %v7330_v18 = vld [vmem:[%s9718_s7 + $0x564] ss:$48 sps:$4 sm:$0xff]  }
 0x4c7   :  { %5333 = vmatprep.subr.bf16.mxu0 %v7246_v20  ;;  %5415 = vmatprep.subr.bf16.mxu1 %v7249_v21  ;;  %v7333_v20 = vld [vmem:[%s9718_s7 + $0x56c] ss:$48 sps:$4 sm:$0xff]   ;;  %v7328_v21 = vld [vmem:[%s9718_s7 + $0x560] ss:$48 sps:$4 sm:$0xff]  }
 0x4c9   :  { %5243 = vmatmul.mubr.bf16.vlgmr.msra.gmra.mrb[12].mxu0 %v9081_v42  ;;  %5325 = vmatmul.mubr.bf16.vlgmr.msra.gmra.mrb[36].mxu1 %v9081_v42 }
 0x4ca   :  { %5334 = vmatpush1.bf16.msra.mxu0 %v7244_v22  ;;  %5365 = vmatprep.mubr.bf16.mxu0 %v8967_v53  ;;  %v7331_v22 = vld [vmem:[%s9718_s7 + $0x568] ss:$48 sps:$4 sm:$0xff]  }
 0x4cb   :  { %5416 = vmatpush1.bf16.msra.mxu1 %v7247_v23  ;;  %5447 = vmatprep.mubr.bf16.mxu1 %v8967_v53  ;;  %v7259_v53 = vld [vmem:[%s9718_s7 + $0xe8] ss:$48 sps:$4 sm:$0xff]   ;;  %v7336_v23 = vld [vmem:[%s9718_s7 + $0x5c4] ss:$48 sps:$4 sm:$0xff]  }
 0x4cc   :  { %5335 = vmatprep.subr.bf16.mxu0 %v7252_v24  ;;  %5417 = vmatprep.subr.bf16.mxu1 %v7255_v3  ;;  %v7339_v24 = vld [vmem:[%s9718_s7 + $0x5cc] ss:$48 sps:$4 sm:$0xff]   ;;  %v7334_v3 = vld [vmem:[%s9718_s7 + $0x5c0] ss:$48 sps:$4 sm:$0xff]  }
 0x4ce   :  { %5336 = vmatpush1.bf16.msra.mxu0 %v7250_v26  ;;  %v7337_v26 = vld [vmem:[%s9718_s7 + $0x5c8] ss:$48 sps:$4 sm:$0xff]  }
 0x4cf   :  { %5418 = vmatpush1.bf16.msra.mxu1 %v7253_v14  ;;  %5337 = vmatprep.subr.bf16.mxu0 %v7258_v28  ;;  %v7342_v14 = vld [vmem:[%s9718_s7 + $0x624] ss:$48 sps:$4 sm:$0xff]   ;;  %v7345_v28 = vld [vmem:[%s9718_s7 + $0x62c] ss:$48 sps:$4 sm:$0xff]  }
 0x4d0   :  { %5419 = vmatprep.subr.bf16.mxu1 %v7261_v30  ;;  %v7340_v30 = vld [vmem:[%s9718_s7 + $0x620] ss:$48 sps:$4 sm:$0xff]  }
 0x4d2   :  { %5338 = vmatpush1.bf16.msra.mxu0 %v7256_v31  ;;  %v7343_v31 = vld [vmem:[%s9718_s7 + $0x628] ss:$48 sps:$4 sm:$0xff]  }
 0x4d3   :  { %5420 = vmatpush1.bf16.msra.mxu1 %v7259_v53  ;;  %5339 = vmatprep.subr.bf16.mxu0 %v7264_v32  ;;  %v7348_v53 = vld [vmem:[%s9718_s7 + $0x684] ss:$48 sps:$4 sm:$0xff]   ;;  %v7351_v32 = vld [vmem:[%s9718_s7 + $0x68c] ss:$48 sps:$4 sm:$0xff]  }
 0x4d4   :  { %5421 = vmatprep.subr.bf16.mxu1 %v7267_v33  ;;  %v7346_v33 = vld [vmem:[%s9718_s7 + $0x680] ss:$48 sps:$4 sm:$0xff]  }
 0x4d6   :  { %5340 = vmatpush1.bf16.msra.mxu0 %v7262_v34  ;;  %v7349_v34 = vld [vmem:[%s9718_s7 + $0x688] ss:$48 sps:$4 sm:$0xff]  }
 0x4d7   :  { %5422 = vmatpush1.bf16.msra.mxu1 %v7265_v35  ;;  %5341 = vmatprep.subr.bf16.mxu0 %v7270_v36  ;;  %v7354_v35 = vld [vmem:[%s9718_s7 + $0x6e4] ss:$48 sps:$4 sm:$0xff]   ;;  %v7352_v36 = vld [vmem:[%s9718_s7 + $0x6e0] ss:$48 sps:$4 sm:$0xff]  }
 0x4d8   :  { %5423 = vmatprep.subr.bf16.mxu1 %v7273_v37  ;;  %v7355_v37 = vld [vmem:[%s9718_s7 + $0x6e8] ss:$48 sps:$4 sm:$0xff]  }
 0x4da   :  { %5342 = vmatpush1.bf16.msra.mxu0 %v7268_v39  ;;  %v7360_v39 = vld [vmem:[%s9718_s7 + $0x744] ss:$48 sps:$4 sm:$0xff]  }
 0x4db   :  { %5424 = vmatpush1.bf16.msra.mxu1 %v7271_v40  ;;  %5343 = vmatprep.subr.bf16.mxu0 %v7276_v41  ;;  %v7358_v40 = vld [vmem:[%s9718_s7 + $0x740] ss:$48 sps:$4 sm:$0xff]   ;;  %v7361_v41 = vld [vmem:[%s9718_s7 + $0x748] ss:$48 sps:$4 sm:$0xff]  }
 0x4dc   :  { %5425 = vmatprep.subr.bf16.mxu1 %v7279_v43  ;;  %v7366_v43 = vld [vmem:[%s9718_s7 + $0x7a4] ss:$48 sps:$4 sm:$0xff]  }
 0x4de   :  { %5344 = vmatpush1.bf16.msra.mxu0 %v7274_v29  ;;  %v7369_v29 = vld [vmem:[%s9718_s7 + $0x7ac] ss:$48 sps:$4 sm:$0xff]  }
 0x4df   :  { %5426 = vmatpush1.bf16.msra.mxu1 %v7277_v44  ;;  %5345 = vmatprep.subr.bf16.mxu0 %v7282_v46  ;;  %v7364_v44 = vld [vmem:[%s9718_s7 + $0x7a0] ss:$48 sps:$4 sm:$0xff]   ;;  %v7367_v46 = vld [vmem:[%s9718_s7 + $0x7a8] ss:$48 sps:$4 sm:$0xff]  }
 0x4e0   :  { %5427 = vmatprep.subr.bf16.mxu1 %v7285_v5  ;;  %v7372_v5 = vld [vmem:[%s9718_s7 + $0x804] ss:$48 sps:$4 sm:$0xff]  }
 0x4e2   :  { %5346 = vmatpush1.bf16.msra.mxu0 %v7280_v27  ;;  %v7375_v27 = vld [vmem:[%s9718_s7 + $0x80c] ss:$48 sps:$4 sm:$0xff]  }
 0x4e3   :  { %5428 = vmatpush1.bf16.msra.mxu1 %v7283_v16  ;;  %5347 = vmatprep.subr.bf16.mxu0 %v7288_v45  ;;  %v7370_v16 = vld [vmem:[%s9718_s7 + $0x800] ss:$48 sps:$4 sm:$0xff]   ;;  %v7373_v45 = vld [vmem:[%s9718_s7 + $0x808] ss:$48 sps:$4 sm:$0xff]  }
 0x4e4   :  { %5429 = vmatprep.subr.bf16.mxu1 %v7291_v47  ;;  %v7378_v47 = vld [vmem:[%s9718_s7 + $0x864] ss:$48 sps:$4 sm:$0xff]  }
 0x4e6   :  { %5348 = vmatpush1.bf16.msra.mxu0 %v7286_v48  ;;  %v7381_v48 = vld [vmem:[%s9718_s7 + $0x86c] ss:$48 sps:$4 sm:$0xff]  }
 0x4e7   :  { %5430 = vmatpush1.bf16.msra.mxu1 %v7289_v38  ;;  %5349 = vmatprep.subr.bf16.mxu0 %v7294_v49  ;;  %v7376_v38 = vld [vmem:[%s9718_s7 + $0x860] ss:$48 sps:$4 sm:$0xff]   ;;  %v7379_v49 = vld [vmem:[%s9718_s7 + $0x868] ss:$48 sps:$4 sm:$0xff]  }
 0x4e8   :  { %5431 = vmatprep.subr.bf16.mxu1 %v7297_v50  ;;  %v7384_v50 = vld [vmem:[%s9718_s7 + $0x8c4] ss:$48 sps:$4 sm:$0xff]  }
 0x4ea   :  { %5350 = vmatpush1.bf16.msra.mxu0 %v7292_v51  ;;  %v7387_v51 = vld [vmem:[%s9718_s7 + $0x8cc] ss:$48 sps:$4 sm:$0xff]  }
 0x4eb   :  { %5432 = vmatpush1.bf16.msra.mxu1 %v7295_v52  ;;  %5351 = vmatprep.subr.bf16.mxu0 %v7300_v54  ;;  %v7382_v52 = vld [vmem:[%s9718_s7 + $0x8c0] ss:$48 sps:$4 sm:$0xff]   ;;  %v7385_v54 = vld [vmem:[%s9718_s7 + $0x8c8] ss:$48 sps:$4 sm:$0xff]  }
 0x4ec   :  { %5433 = vmatprep.subr.bf16.mxu1 %v7303_v55  ;;  %v3501_v55 = vld [vmem:[%s9719_s8] sm:$0xff] }
 0x4ee   :  { %5352 = vmatpush1.bf16.msra.mxu0 %v7298_v59  ;;  %v3519_v59 = vsub.s32 3, %v8556_v57 }
 0x4ef   :  { %5434 = vmatpush1.bf16.msra.mxu1 %v7301_v61  ;;  %5353 = vmatprep.subr.bf16.mxu0 %v7306_v62  ;;  %v3508_v61 = vrot.slane %v3501_v55, %v8559_v58  ;;  %v3516_v62 = vrot.slane %v3501_v55, %v8607_v25 }
 0x4f0   :  { %5435 = vmatprep.subr.bf16.mxu1 %v7309_v63  ;;  %v3512_v63 = vrot.slane %v3501_v55, %v8565_v60 }
 0x4f2   :  { %5354 = vmatpush1.bf16.msra.mxu0 %v7304_v0  ;;  %v3520_v0 = vrot.slane %v3501_v55, %v3519_v59 }
 0x4f3   :  { %5436 = vmatpush1.bf16.msra.mxu1 %v7307_v1  ;;  %5355 = vmatprep.subr.bf16.mxu0 %v7312_v2 }
 0x4f4   :  { %5437 = vmatprep.subr.bf16.mxu1 %v7315_v4 }
 0x4f6   :  { %5356 = vmatpush1.bf16.msra.mxu0 %v7310_v6 }
 0x4f7   :  { %5438 = vmatpush1.bf16.msra.mxu1 %v7313_v7  ;;  %5357 = vmatprep.subr.bf16.mxu0 %v7318_v8 }
 0x4f8   :  { %5439 = vmatprep.subr.bf16.mxu1 %v7321_v9 }
 0x4fa   :  { %5358 = vmatpush1.bf16.msra.mxu0 %v7316_v10 }
 0x4fb   :  { %5440 = vmatpush1.bf16.msra.mxu1 %v7319_v11  ;;  %5359 = vmatprep.subr.bf16.mxu0 %v7324_v12 }
 0x4fc   :  { %5441 = vmatprep.subr.bf16.mxu1 %v7327_v13 }
 0x4fe   :  { %5360 = vmatpush1.bf16.msra.mxu0 %v7322_v15 }
 0x4ff   :  { %5442 = vmatpush1.bf16.msra.mxu1 %v7325_v17  ;;  %5361 = vmatprep.subr.bf16.mxu0 %v7330_v18 }
 0x500   :  { %5443 = vmatprep.subr.bf16.mxu1 %v7333_v20 }
 0x502   :  { %5362 = vmatpush1.bf16.msra.mxu0 %v7328_v21 }
 0x503   :  { %5444 = vmatpush1.bf16.msra.mxu1 %v7331_v22  ;;  %5363 = vmatprep.subr.bf16.mxu0 %v7336_v23 }
 0x504   :  { %5445 = vmatprep.subr.bf16.mxu1 %v7339_v24 }
 0x506   :  { %5364 = vmatpush1.bf16.msra.mxu0 %v7334_v3 }
 0x507   :  { %5446 = vmatpush1.bf16.msra.mxu1 %v7337_v26  ;;  %5374 = vmatprep.subr.bf16.mxu0 %v7342_v14 }
 0x508   :  { %5456 = vmatprep.subr.bf16.mxu1 %v7345_v28 }
 0x509   :  { %5366 = vmatmul.mubr.bf16.vlgmr.msra.gmra.mrb[16].mxu0 %v8975_v56 }
 0x50a   :  { %5448 = vmatmul.mubr.bf16.vlgmr.msra.gmra.mrb[40].mxu1 %v8975_v56  ;;  %5375 = vmatpush1.bf16.msra.mxu0 %v7340_v30  ;;  %v7357_v56 = vld [vmem:[%s9718_s7 + $0x6ec] ss:$48 sps:$4 sm:$0xff]  }
 0x50b   :  { %5457 = vmatpush1.bf16.msra.mxu1 %v7343_v31  ;;  %5376 = vmatprep.subr.bf16.mxu0 %v7348_v53 }
 0x50c   :  { %5458 = vmatprep.subr.bf16.mxu1 %v7351_v32  ;;  %5406 = vmatprep.mubr.bf16.mxu0 %v7460_v19 }
 0x50d   :  { %5488 = vmatprep.mubr.bf16.mxu1 %v7460_v19  ;;  %v7363_v19 = vld [vmem:[%s9718_s7 + $0x74c] ss:$48 sps:$4 sm:$0xff]   ;;  %s7461_s7 = smov [#allocation2]  }
 0x50e   :  { %5377 = vmatpush1.bf16.msra.mxu0 %v7346_v33  ;;  %s5581_s25 = sshll.u32 %s7461_s7, 4  ;;  %s5582_s25 = int_to_ptr.vmem [resolvable:$true] %s5581_s25 }
 0x50f   :  { %5459 = vmatpush1.bf16.msra.mxu1 %v7349_v34  ;;  %5378 = vmatprep.subr.bf16.mxu0 %v7354_v35  ;;  %s7412_s26 = scalar_lea.vmem %s5582_s25, 128  ;;  %p7417_p1 = scmp.lt.s32.totalorder %s5582_s25, %s5582_s25 }
 0x510   :  { %5460 = vmatprep.subr.bf16.mxu1 %v7357_v56  ;;  %p7413_p0 = scmp.ne.s32.totalorder %s5582_s25, %s7412_s26  ;;  %p7418_p2 = scmp.lt.s32.totalorder %s7412_s26, %s7412_s26 }
 0x512   :  { %5379 = vmatpush1.bf16.msra.mxu0 %v7352_v36  ;;  %p7419_p3 = por %p7418_p2, %p7417_p1 }
 0x513   :  { %5461 = vmatpush1.bf16.msra.mxu1 %v7355_v37  ;;  %5380 = vmatprep.subr.bf16.mxu0 %v7360_v39 }
 0x514   :  { %5462 = vmatprep.subr.bf16.mxu1 %v7363_v19  ;;  %p7420_p4 = pnand %p7419_p3, %p7413_p0 }
 0x516   :  { %5381 = vmatpush1.bf16.msra.mxu0 %v7358_v40 }
 0x517   :  { %5463 = vmatpush1.bf16.msra.mxu1 %v7361_v41  ;;  %5382 = vmatprep.subr.bf16.mxu0 %v7366_v43 }
 0x518   :  { %5464 = vmatprep.subr.bf16.mxu1 %v7369_v29 }
 0x51a   :  { %5383 = vmatpush1.bf16.msra.mxu0 %v7364_v44 }
 0x51b   :  { %5465 = vmatpush1.bf16.msra.mxu1 %v7367_v46  ;;  %5384 = vmatprep.subr.bf16.mxu0 %v7372_v5 }
 0x51c   :  { %5466 = vmatprep.subr.bf16.mxu1 %v7375_v27 }
 0x51e   :  { %5385 = vmatpush1.bf16.msra.mxu0 %v7370_v16 }
 0x51f   :  { %5467 = vmatpush1.bf16.msra.mxu1 %v7373_v45  ;;  %5386 = vmatprep.subr.bf16.mxu0 %v7378_v47 }
 0x520   :  { %5468 = vmatprep.subr.bf16.mxu1 %v7381_v48 }
 0x522   :  { %5387 = vmatpush1.bf16.msra.mxu0 %v7376_v38 }
 0x523   :  { %5469 = vmatpush1.bf16.msra.mxu1 %v7379_v49  ;;  %5388 = vmatprep.subr.bf16.mxu0 %v7384_v50 }
 0x524   :  { %5470 = vmatprep.subr.bf16.mxu1 %v7387_v51 }
 0x526   :  { %5389 = vmatpush1.bf16.msra.mxu0 %v7382_v52 }
 0x527   :  { %5471 = vmatpush1.bf16.msra.mxu1 %v7385_v54 }
 0x529   :  { %5407 = vmatmul.mubr.bf16.vlgmr.msra.gmra.mrb[16].mxu0 %v9081_v42 }
 0x52a   :  { %5489 = vmatmul.mubr.bf16.vlgmr.msra.gmra.mrb[40].mxu1 %v9081_v42 }
 0x53c   :  { %v5080_v1 = vpop.f32.mrb[8].mxu0  ;;  %v5162_v2 = vpop.f32.mrb[32].mxu1 }
 0x53d   :  { %v6394_v4 = vadd.f32 %v5080_v1, %v3508_v61  ;;  %v6396_v6 = vadd.f32 %v5162_v2, %v3516_v62  ;;  %v5082_v42 = vpop.f32.mrb[9].mxu0  ;;  %v5164_v7 = vpop.f32.mrb[33].mxu1 }
 0x53e   :  { %v6395_v8 = vadd.f32 %v5082_v42, %v3512_v63  ;;  %v6397_v9 = vadd.f32 %v5164_v7, %v3520_v0  ;;  %v5084_v10 = vpop.f32.mrb[10].mxu0  ;;  %v5166_v11 = vpop.f32.mrb[34].mxu1 }
 0x53f   :  { %7388 = vtanh.f32 %v6394_v4  ;;  %v5085_v12 = vpop.f32.mrb[11].mxu0  ;;  %v5167_v13 = vpop.f32.mrb[35].mxu1 }
 0x540   :  { %7390 = vtanh.f32 %v6396_v6 }
 0x541   :  { %7392 = vtanh.f32 %v6395_v8 }
 0x542   :  { %7394 = vtanh.f32 %v6397_v9 }
 0x549   :  { %v7389_v15 = vpop.eup %7388 }
 0x54a   :  { %v7391_v17 = vpop.eup %7390 }
 0x54b   :  { %v7393_v18 = vpop.eup %7392 }
 0x54c   :  { %v7395_v20 = vpop.eup %7394  ;;  %v6274_v21 = vpack.c.bf16 %v7393_v18, %v7389_v15 }
 0x54d   :  { %v6275_v22 = vpack.c.bf16 %v7395_v20, %v7391_v17 }
 0x54e   :  { %5567 = vst [vmem:[#allocation4] sm:$0x77] %v6274_v21 }
 0x54f   :  { %5568 = vst [vmem:[#allocation4 + $0x8] sm:$0x77] %v6275_v22 }
 0x550   :  { %7423 = shalt.err (!%p7420_p4)
}
 0x551   :  { %s7424_s28 = scalar_lea.hbm %s9720_s9, 128 }
 0x552   :  { %p7425_p5 = scmp.ne.s32.totalorder %s9720_s9, %s7424_s28  ;;  %p7428_p6 = scmp.lt.u32.totalorder %s7424_s28, %s9720_s9 }
 0x554   :  { %p7430_p7 = pnand %p7428_p6, %p7425_p5 }
 0x556   :  { %7433 = shalt.err (!%p7430_p7)
}
 0x557   :  { %5584 = dma.vmem_to_hbm [thread:$0]  %s5582_s25, 128, %s9720_s9, [#allocation3]   ;;  %v3523_v23 = vsub.s32 4, %v8556_v57  ;;  %v3531_v24 = vsub.s32 6, %v8556_v57  ;;  %v3527_v3 = vsub.s32 5, %v8556_v57  ;;  %v3535_v26 = vsub.s32 7, %v8556_v57 }
 0x558   :  { %v3502_v16 = vld [vmem:[%s9719_s8 + $0x8] sm:$0xf]  ;;  %vm5572_vm7 = vcmask 751620   ;;  %s7462_s8 = smov [#allocation4]  }
 0x559   :  { %v3524_v14 = vrot.slane %v3501_v55, %v3523_v23  ;;  %v3532_v28 = vrot.slane %v3501_v55, %v3531_v24  ;;  %v3528_v30 = vrot.slane %v3501_v55, %v3527_v3  ;;  %v3536_v31 = vrot.slane %v3501_v55, %v3535_v26  ;;  %s5591_s14 = sshll.u32 %s7462_s8, 4  ;;  %vm5573_vm8 = vmor %vm5572_vm7, %vm5515_vm3  ;;  %s5592_s14 = int_to_ptr.vmem [resolvable:$true] %s5591_s14 }
 0x55a   :  { %v3540_v45 = vrot.slane %v3502_v16, %v8559_v58  ;;  %v3548_v47 = vrot.slane %v3502_v16, %v8607_v25  ;;  %v3544_v48 = vrot.slane %v3502_v16, %v8565_v60  ;;  %v3552_v38 = vrot.slane %v3502_v16, %v3519_v59  ;;  %s7434_s15 = scalar_lea.vmem %s5592_s14, 768  ;;  %p7439_p9 = scmp.lt.s32.totalorder %s5592_s14, %s5592_s14 }
 0x55b   :  { %p7435_p8 = scmp.ne.s32.totalorder %s5592_s14, %s7434_s15  ;;  %p7440_p10 = scmp.lt.s32.totalorder %s7434_s15, %s7434_s15 }
 0x55d   :  { %p7441_p11 = por %p7440_p10, %p7439_p9 }
 0x55f   :  { %p7442_p12 = pnand %p7441_p11, %p7435_p8 }
 0x59c   :  { %v5244_v53 = vpop.f32.mrb[12].mxu0  ;;  %v5326_v32 = vpop.f32.mrb[36].mxu1 }
 0x59d   :  { %v6398_v33 = vadd.f32 %v5244_v53, %v3524_v14  ;;  %v6400_v34 = vadd.f32 %v5326_v32, %v3532_v28  ;;  %v5246_v35 = vpop.f32.mrb[13].mxu0  ;;  %v5328_v56 = vpop.f32.mrb[37].mxu1 }
 0x59e   :  { %v6399_v36 = vadd.f32 %v5246_v35, %v3528_v30  ;;  %v6401_v37 = vadd.f32 %v5328_v56, %v3536_v31  ;;  %v5248_v39 = vpop.f32.mrb[14].mxu0  ;;  %v5330_v19 = vpop.f32.mrb[38].mxu1 }
 0x59f   :  { %7396 = vtanh.f32 %v6398_v33  ;;  %v5249_v40 = vpop.f32.mrb[15].mxu0  ;;  %v5331_v41 = vpop.f32.mrb[39].mxu1 }
 0x5a0   :  { %7398 = vtanh.f32 %v6400_v34 }
 0x5a1   :  { %7400 = vtanh.f32 %v6399_v36 }
 0x5a2   :  { %7402 = vtanh.f32 %v6401_v37 }
 0x5a9   :  { %v7397_v43 = vpop.eup %7396 }
 0x5aa   :  { %v7399_v29 = vpop.eup %7398 }
 0x5ab   :  { %v7401_v44 = vpop.eup %7400 }
 0x5ac   :  { %v7403_v46 = vpop.eup %7402  ;;  %v6276_v5 = vpack.c.bf16 %v7401_v44, %v7397_v43 }
 0x5ad   :  { %v6277_v27 = vpack.c.bf16 %v7403_v46, %v7399_v29 }
 0x5ae   :  { %5569 = vst [vmem:[#allocation4 + $0x10] sm:$0x77] %v6276_v5 }
 0x5af   :  { %5570 = vst [vmem:[#allocation4 + $0x18] sm:$0x77] %v6277_v27 }
 0x5fc   :  { %v5408_v49 = vpop.f32.mrb[16].mxu0 }
 0x5fd   :  { %v6402_v50 = vadd.f32 %v5408_v49, %v3540_v45  ;;  %v5490_v51 = vpop.f32.mrb[40].mxu1  ;;  %v5410_v52 = vpop.f32.mrb[17].mxu0 }
 0x5fe   :  { %v6404_v54 = vadd.f32 %v5490_v51, %v3548_v47  ;;  %v6403_v55 = vadd.f32 %v5410_v52, %v3544_v48  ;;  %v5492_v61 = vpop.f32.mrb[41].mxu1  ;;  %v5412_v62 = vpop.f32.mrb[18].mxu0 }
 0x5ff   :  { %7404 = vtanh.f32 %v6402_v50  ;;  %v6405_v63 = vadd.f32 %v5492_v61, %v3552_v38  ;;  %v5494_v0 = vpop.f32.mrb[42].mxu1  ;;  %v5413_v1 = vpop.f32.mrb[19].mxu0 }
 0x600   :  { %7406 = vtanh.f32 %v6404_v54  ;;  %v5495_v58 = vpop.f32.mrb[43].mxu1 }
 0x601   :  { %7408 = vtanh.f32 %v6403_v55 }
 0x602   :  { %7410 = vtanh.f32 %v6405_v63 }
 0x609   :  { %v7405_v60 = vpop.eup %7404 }
 0x60a   :  { %v7407_v57 = vpop.eup %7406 }
 0x60b   :  { %v7409_v25 = vpop.eup %7408 }
 0x60c   :  { %v7411_v59 = vpop.eup %7410  ;;  %v6278_v2 = vpack.c.bf16 %v7409_v25, %v7405_v60 }
 0x60d   :  { %v6279_v4 = vpack.c.bf16 %v7411_v59, %v7407_v57 }
 0x60e   :  { %5571 = vst [vmem:[#allocation4 + $0x20] sm:$0x77] %v6278_v2 }
 0x60f   :  { %5574 = vst.msk [vmem:[#allocation4 + $0x28] sm:$0x77] %vm5573_vm8, %v6279_v4 }
 0x610   :  { %7445 = shalt.err (!%p7442_p12)
}
 0x611   :  { %s7446_s16 = scalar_lea.hbm %s9721_s10, 768 }
 0x612   :  { %p7447_p13 = scmp.ne.s32.totalorder %s9721_s10, %s7446_s16  ;;  %p7450_p0 = scmp.lt.u32.totalorder %s7446_s16, %s9721_s10 }
 0x614   :  { %p7452_p1 = pnand %p7450_p0, %p7447_p13 }
 0x616   :  { %7455 = shalt.err (!%p7452_p1)
}
 0x617   :  { %5594 = dma.vmem_to_hbm [thread:$0]  %s5592_s14, 768, %s9721_s10, [#allocation5]  }
 0x618   :  { %7456 = dma.done.wait [#allocation3], 128  }
 0x619   :  { %7457 = vsyncadd [#allocation3], 4294967168 }
 0x61a   :  { %7458 = dma.done.wait [#allocation5], 768  }
 0x61b   :  { %7459 = vsyncadd [#allocation5], 4294966528 }
 0x61c   :  { %5601 = vsyncpa [#allocation3], 1 }
 0x61d   :  { %5602 = vsyncpa [#allocation5], 1 }

</bundles_post_ra>
